<compile_context>
chip_gen: v6e
topology: v6e:2x2x1
jax: 0.10.0
libtpu: 0.0.40
codegen_flags: <defaults>
</compile_context>

<pallas_src>
import math

import jax
import jax.numpy as jnp
from jax.experimental import pallas as pl
from jax.experimental.pallas import tpu as pltpu

# ------------------------- small config (consistent w/ module) -------------------------
SRC_VOCAB = 32
TGT_VOCAB = 32
D_MODEL = 64
NUM_HEADS = 4
D_K = D_MODEL // NUM_HEADS
D_FF = 128
NUM_LAYERS = 2
MAX_SEQ = 16
LN_EPS = 1e-5          # nn.LayerNorm default
PAD_ID = 1             # (src != 1) / (tgt != 1) in Transformer.generate_mask
NEG_INF = -1e30        # masking value used by the module for float32


# ------------------------------------ fused kernel -------------------------------------
def _transformer_kernel(
        src_ids_ref, tgt_ids_ref, src_bias_ref, tgt_bias_ref,
        pe_src_ref, pe_tgt_ref, enc_emb_ref, dec_emb_ref,
        enc_wqkv_ref, enc_bqkv_ref, enc_wo_ref, enc_bo_ref,
        enc_w1_ref, enc_b1_ref, enc_w2_ref, enc_b2_ref,
        enc_lng_ref, enc_lnb_ref, enc_ng_ref, enc_nb_ref,
        d_swqkv_ref, d_sbqkv_ref, d_swo_ref, d_sbo_ref,
        d_cwq_ref, d_cbq_ref, d_cwkv_ref, d_cbkv_ref, d_cwo_ref, d_cbo_ref,
        d_w1_ref, d_b1_ref, d_w2_ref, d_b2_ref,
        d_lng_ref, d_lnb_ref, d_ng_ref, d_nb_ref,
        fcw_ref, fcb_ref,
        out_ref):
    f32 = jnp.float32
    bf16 = jnp.bfloat16

    def layernorm(z, g, b):
        mean = jnp.mean(z, axis=-1, keepdims=True)
        c = z - mean
        var = jnp.mean(c * c, axis=-1, keepdims=True)
        return c * jax.lax.rsqrt(var + LN_EPS) * g + b

    def embed(ids_ref, emb_ref, pe_ref):
        # one-hot @ (pre-scaled) embedding == gather * sqrt(d_model), on the MXU
        ids = ids_ref[...]                                               # [S, 1] int32
        n_tok = ids.shape[0]
        vocab = emb_ref.shape[0]
        col = jax.lax.broadcasted_iota(jnp.int32, (n_tok, vocab), 1)
        onehot = (col == ids).astype(f32)
        return jnp.dot(onehot, emb_ref[...], preferred_element_type=f32) + pe_ref[...]

    def heads(x):
        # [S, D] f32 -> [H, S, D] bf16 : shared LHS for per-head batched matmuls
        return jnp.broadcast_to(x.astype(bf16)[None], (NUM_HEADS,) + x.shape)

    def qkv_proj(xh, w, b):
        # xh: [H, S, D] bf16, w: [H, D, n*dk] bf16, b: [H, 1, n*dk] f32 -> [H, S, n*dk] f32
        return jax.lax.dot_general(xh, w, (((2,), (1,)), ((0,), (0,))),
                                   preferred_element_type=f32) + b

    def mha(qh, kh, vh, bias, wo_h, bo):
        # qh: [H, Sq, dk], kh/vh: [H, Skv, dk] (f32, scale already folded into W_q);
        # bias broadcastable to [H, Sq, Skv]; wo_h: [H, dk, D] bf16; bo: [1, D] f32.
        s = jax.lax.dot_general(qh.astype(bf16), kh.astype(bf16),
                                (((2,), (2,)), ((0,), (0,))),
                                preferred_element_type=f32) + bias       # [H,Sq,Skv] f32
        s = s - jnp.max(s, axis=-1, keepdims=True)
        p = jnp.exp(s)
        p = p / jnp.sum(p, axis=-1, keepdims=True)                       # exact softmax (f32)
        ctx = jax.lax.dot_general(p.astype(bf16), vh.astype(bf16),
                                  (((2,), (1,)), ((0,), (0,))),
                                  preferred_element_type=f32)            # [H,Sq,dk]
        o = jax.lax.dot_general(ctx.astype(bf16), wo_h,
                                (((2,), (1,)), ((0,), (0,))),
                                preferred_element_type=f32)              # [H,Sq,D]
        return jnp.sum(o, axis=0) + bo                                   # combine heads: [Sq,D]

    # --------------------------------- encoder ---------------------------------
    src_bias = src_bias_ref[...]                                         # [1,1,Ss]
    x = embed(src_ids_ref, enc_emb_ref, pe_src_ref)                      # [Ss, D] f32
    # dropout: identity (inference)
    for l in range(NUM_LAYERS):
        lg, lb = enc_lng_ref[l], enc_lnb_ref[l]                          # [2, D]
        qkv = qkv_proj(heads(x), enc_wqkv_ref[l], enc_bqkv_ref[l])       # [H,Ss,3dk]
        a = mha(qkv[:, :, :D_K], qkv[:, :, D_K:2 * D_K], qkv[:, :, 2 * D_K:],
                src_bias, enc_wo_ref[l], enc_bo_ref[l])
        x = layernorm(x + a, lg[0:1, :], lb[0:1, :])
        h1 = jnp.maximum(jnp.dot(x.astype(bf16), enc_w1_ref[l],
                                 preferred_element_type=f32) + enc_b1_ref[l], 0.0)
        ff = jnp.dot(h1.astype(bf16), enc_w2_ref[l],
                     preferred_element_type=f32) + enc_b2_ref[l]
        x = layernorm(x + ff, lg[1:2, :], lb[1:2, :])
    enc_out = layernorm(x, enc_ng_ref[...], enc_nb_ref[...])             # [Ss, D]
    enc_h = heads(enc_out)                                               # hoisted: cross-attn K/V input

    # --------------------------------- decoder ---------------------------------
    tgt_bias = tgt_bias_ref[...]                                         # [1,St,St]
    y = embed(tgt_ids_ref, dec_emb_ref, pe_tgt_ref)                      # [St, D] f32
    for l in range(NUM_LAYERS):
        lg, lb = d_lng_ref[l], d_lnb_ref[l]                              # [3, D]

        # masked self-attention
        qkv = qkv_proj(heads(y), d_swqkv_ref[l], d_sbqkv_ref[l])         # [H,St,3dk]
        a = mha(qkv[:, :, :D_K], qkv[:, :, D_K:2 * D_K], qkv[:, :, 2 * D_K:],
                tgt_bias, d_swo_ref[l], d_sbo_ref[l])
        y = layernorm(y + a, lg[0:1, :], lb[0:1, :])

        # cross-attention over the VMEM-resident encoder output
        qh = qkv_proj(heads(y), d_cwq_ref[l], d_cbq_ref[l])              # [H,St,dk]
        kv = qkv_proj(enc_h, d_cwkv_ref[l], d_cbkv_ref[l])               # [H,Ss,2dk]
        a = mha(qh, kv[:, :, :D_K], kv[:, :, D_K:], src_bias,
                d_cwo_ref[l], d_cbo_ref[l])
        y = layernorm(y + a, lg[1:2, :], lb[1:2, :])

        # position-wise feed-forward
        h1 = jnp.maximum(jnp.dot(y.astype(bf16), d_w1_ref[l],
                                 preferred_element_type=f32) + d_b1_ref[l], 0.0)
        ff = jnp.dot(h1.astype(bf16), d_w2_ref[l],
                     preferred_element_type=f32) + d_b2_ref[l]
        y = layernorm(y + ff, lg[2:3, :], lb[2:3, :])

    yn = layernorm(y, d_ng_ref[...], d_nb_ref[...])
    out_ref[...] = (jnp.dot(yn.astype(bf16), fcw_ref[...],
                            preferred_element_type=f32) + fcb_ref[...]).astype(out_ref.dtype)


# ----------------------------------- forward wrapper -----------------------------------
def transformer_forward(params, src, tgt):
    """Transformer.forward(src, tgt): generate_mask -> encoder -> decoder -> fc_out."""
    B, SS = src.shape
    _, ST = tgt.shape

    # generate_mask (pad token id = 1) as tiny additive f32 biases (0 / -1e30).
    src_valid = (src != PAD_ID)
    tgt_valid = (tgt != PAD_ID)
    causal = jnp.tril(jnp.ones((ST, ST), dtype=bool))
    src_bias = jnp.where(src_valid[:, None, :], 0.0, NEG_INF).astype(jnp.float32)   # [B,1,Ss]
    tgt_bias = jnp.where(tgt_valid[:, None, :] & causal[None, :, :],
                         0.0, NEG_INF).astype(jnp.float32)                          # [B,St,St]

    src_ids = src.reshape(B * SS, 1).astype(jnp.int32)
    tgt_ids = tgt.reshape(B * ST, 1).astype(jnp.int32)
    pe_src = params['pe'][:SS]
    pe_tgt = params['pe'][:ST]

    shared = [
        pe_src, pe_tgt, params['enc_emb'], params['dec_emb'],
        params['enc_wqkv'], params['enc_bqkv'], params['enc_wo'], params['enc_bo'],
        params['enc_w1'], params['enc_b1'], params['enc_w2'], params['enc_b2'],
        params['enc_ln_g'], params['enc_ln_b'], params['enc_norm_g'], params['enc_norm_b'],
        params['dec_self_wqkv'], params['dec_self_bqkv'], params['dec_self_wo'], params['dec_self_bo'],
        params['dec_cross_wq'], params['dec_cross_bq'], params['dec_cross_wkv'], params['dec_cross_bkv'],
        params['dec_cross_wo'], params['dec_cross_bo'],
        params['dec_w1'], params['dec_b1'], params['dec_w2'], params['dec_b2'],
        params['dec_ln_g'], params['dec_ln_b'], params['dec_norm_g'], params['dec_norm_b'],
        params['fc_w'], params['fc_b'],
    ]

    def pinned(a):
        zeros = (0,) * a.ndim
        return pl.BlockSpec(a.shape, lambda i, _z=zeros: _z)

    in_specs = [
        pl.BlockSpec((SS, 1), lambda i: (i, 0)),           # src ids for batch i
        pl.BlockSpec((ST, 1), lambda i: (i, 0)),           # tgt ids for batch i
        pl.BlockSpec((1, 1, SS), lambda i: (i, 0, 0)),     # src pad bias
        pl.BlockSpec((1, ST, ST), lambda i: (i, 0, 0)),    # tgt pad+causal bias
    ] + [pinned(a) for a in shared]

    args = [src_ids, tgt_ids, src_bias, tgt_bias] + shared

    logits = pl.pallas_call(
        _transformer_kernel,
        out_shape=jax.ShapeDtypeStruct((B * ST, TGT_VOCAB), jnp.float32),
        grid=(B,),
        in_specs=in_specs,
        out_specs=pl.BlockSpec((ST, TGT_VOCAB), lambda i: (i, 0)),
        compiler_params=pltpu.CompilerParams(dimension_semantics=("parallel",)),
    )(*args)
    return logits.reshape(B, ST, TGT_VOCAB)


# ------------------------------------- parameters --------------------------------------
def make_positional_encoding(max_len, d):
    pos = jnp.arange(max_len, dtype=jnp.float32)[:, None]
    div = jnp.exp(jnp.arange(0, d, 2, dtype=jnp.float32) * (-math.log(10000.0) / d))
    pe = jnp.zeros((max_len, d), jnp.float32)
    pe = pe.at[:, 0::2].set(jnp.sin(pos * div))
    pe = pe.at[:, 1::2].set(jnp.cos(pos * div))
    return pe


def init_params(key):
    """Logical (PyTorch-layout) parameters: [in, out] dense weights, per-layer dicts."""
    keys = iter(jax.random.split(key, 160))

    def uniform(k, shape, fan_in):
        s = 1.0 / math.sqrt(fan_in)
        return jax.random.uniform(k, shape, jnp.float32, -s, s)

    def dense(k, din, dout):
        k1, k2 = jax.random.split(k)
        return uniform(k1, (din, dout), din), uniform(k2, (1, dout), din)

    def ln():
        return jnp.ones((1, D_MODEL), jnp.float32), jnp.zeros((1, D_MODEL), jnp.float32)

    p = {'enc_emb': jax.random.normal(next(keys), (SRC_VOCAB, D_MODEL), jnp.float32),
         'dec_emb': jax.random.normal(next(keys), (TGT_VOCAB, D_MODEL), jnp.float32),
         'pe': make_positional_encoding(MAX_SEQ, D_MODEL),
         'enc_layers': [], 'dec_layers': []}

    for _ in range(NUM_LAYERS):
        l = {}
        for nm in ('wq', 'wk', 'wv', 'wo'):
            l[nm], l['b' + nm[1]] = dense(next(keys), D_MODEL, D_MODEL)
        l['w1'], l['b1'] = dense(next(keys), D_MODEL, D_FF)
        l['w2'], l['b2'] = dense(next(keys), D_FF, D_MODEL)
        l['ln1_g'], l['ln1_b'] = ln()
        l['ln2_g'], l['ln2_b'] = ln()
        p['enc_layers'].append(l)

    for _ in range(NUM_LAYERS):
        l = {}
        for nm in ('swq', 'swk', 'swv', 'swo', 'cwq', 'cwk', 'cwv', 'cwo'):
            l[nm], l[nm[0] + 'b' + nm[2]] = dense(next(keys), D_MODEL, D_MODEL)
        l['w1'], l['b1'] = dense(next(keys), D_MODEL, D_FF)
        l['w2'], l['b2'] = dense(next(keys), D_FF, D_MODEL)
        l['ln1_g'], l['ln1_b'] = ln()
        l['ln2_g'], l['ln2_b'] = ln()
        l['ln3_g'], l['ln3_b'] = ln()
        p['dec_layers'].append(l)

    p['enc_norm_g'], p['enc_norm_b'] = ln()
    p['dec_norm_g'], p['dec_norm_b'] = ln()
    p['fc_w'], p['fc_b'] = dense(next(keys), D_MODEL, TGT_VOCAB)
    return p


def pack_params(p):
    """One-time wrapper-side weight prep: per-head layouts for batched dot_generals,
    bf16 matmul operands, 1/sqrt(d_k) folded into W_q/b_q, sqrt(d_model) into embeddings."""
    bf16 = jnp.bfloat16
    scale = 1.0 / math.sqrt(D_K)

    def col_heads(w):    # [D, H*dh] (head-major columns) -> [H, D, dh]
        dh = w.shape[1] // NUM_HEADS
        return jnp.transpose(w.reshape(w.shape[0], NUM_HEADS, dh), (1, 0, 2))

    def bias_heads(b):   # [1, H*dh] -> [H, 1, dh]
        dh = b.shape[1] // NUM_HEADS
        return jnp.transpose(b.reshape(1, NUM_HEADS, dh), (1, 0, 2))

    def pack_attn(layers, pfx):
        wqkv, bqkv, wo, bo = [], [], [], []
        for l in layers:
            wq = col_heads(l[pfx + 'wq']) * scale
            bq = bias_heads(l[pfx + 'bq']) * scale
            wk, bk = col_heads(l[pfx + 'wk']), bias_heads(l[pfx + 'bk'])
            wv, bv = col_heads(l[pfx + 'wv']), bias_heads(l[pfx + 'bv'])
            wqkv.append(jnp.concatenate([wq, wk, wv], axis=-1))          # [H, D, 3dk]
            bqkv.append(jnp.concatenate([bq, bk, bv], axis=-1))          # [H, 1, 3dk]
            wo.append(l[pfx + 'wo'].reshape(NUM_HEADS, D_K, D_MODEL))    # [H, dk, D]
            bo.append(l[pfx + 'bo'])
        return (jnp.stack(wqkv).astype(bf16), jnp.stack(bqkv),
                jnp.stack(wo).astype(bf16), jnp.stack(bo))

    def pack_cross(layers):
        wq, bq, wkv, bkv, wo, bo = [], [], [], [], [], []
        for l in layers:
            wq.append(col_heads(l['cwq']) * scale)
            bq.append(bias_heads(l['cbq']) * scale)
            wkv.append(jnp.concatenate([col_heads(l['cwk']), col_heads(l['cwv'])], axis=-1))
            bkv.append(jnp.concatenate([bias_heads(l['cbk']), bias_heads(l['cbv'])], axis=-1))
            wo.append(l['cwo'].reshape(NUM_HEADS, D_K, D_MODEL))
            bo.append(l['cbo'])
        return (jnp.stack(wq).astype(bf16), jnp.stack(bq),
                jnp.stack(wkv).astype(bf16), jnp.stack(bkv),
                jnp.stack(wo).astype(bf16), jnp.stack(bo))

    def pack_ffn(layers):
        return (jnp.stack([l['w1'] for l in layers]).astype(bf16),
                jnp.stack([l['b1'] for l in layers]),
                jnp.stack([l['w2'] for l in layers]).astype(bf16),
                jnp.stack([l['b2'] for l in layers]))

    def pack_ln(layers, names):
        g = jnp.stack([jnp.concatenate([l[n + '_g'] for n in names], axis=0) for l in layers])
        b = jnp.stack([jnp.concatenate([l[n + '_b'] for n in names], axis=0) for l in layers])
        return g, b

    q = {'pe': p['pe'],
         'enc_emb': p['enc_emb'] * math.sqrt(D_MODEL),
         'dec_emb': p['dec_emb'] * math.sqrt(D_MODEL),
         'fc_w': p['fc_w'].astype(bf16), 'fc_b': p['fc_b']}

    q['enc_wqkv'], q['enc_bqkv'], q['enc_wo'], q['enc_bo'] = pack_attn(p['enc_layers'], '')
    q['enc_w1'], q['enc_b1'], q['enc_w2'], q['enc_b2'] = pack_ffn(p['enc_layers'])
    q['enc_ln_g'], q['enc_ln_b'] = pack_ln(p['enc_layers'], ('ln1', 'ln2'))
    q['enc_norm_g'], q['enc_norm_b'] = p['enc_norm_g'], p['enc_norm_b']

    (q['dec_self_wqkv'], q['dec_self_bqkv'],
     q['dec_self_wo'], q['dec_self_bo']) = pack_attn(p['dec_layers'], 's')
    (q['dec_cross_wq'], q['dec_cross_bq'], q['dec_cross_wkv'], q['dec_cross_bkv'],
     q['dec_cross_wo'], q['dec_cross_bo']) = pack_cross(p['dec_layers'])
    q['dec_w1'], q['dec_b1'], q['dec_w2'], q['dec_b2'] = pack_ffn(p['dec_layers'])
    q['dec_ln_g'], q['dec_ln_b'] = pack_ln(p['dec_layers'], ('ln1', 'ln2', 'ln3'))
    q['dec_norm_g'], q['dec_norm_b'] = p['dec_norm_g'], p['dec_norm_b']
    return q


# ----------------------------------------- main -----------------------------------------
if __name__ == "__main__":
    key = jax.random.PRNGKey(0)
    kp, ks, kt = jax.random.split(key, 3)
    params = pack_params(init_params(kp))   # one-time per-head / bf16 weight prep

    B, S_SRC, S_TGT = 2, 8, 8
    src = jax.random.randint(ks, (B, S_SRC), 0, SRC_VOCAB, dtype=jnp.int32)
    tgt = jax.random.randint(kt, (B, S_TGT), 0, TGT_VOCAB, dtype=jnp.int32)

    out = jax.jit(transformer_forward)(params, src, tgt)
    jax.block_until_ready(out)
    assert out.shape == (B, S_TGT, TGT_VOCAB), out.shape
    assert bool(jnp.all(jnp.isfinite(out)))
    print("KERNEL_OK")
</pallas_src>

<mosaic_0001>
module attributes {stable_mosaic.version = 11 : i64} {
  func.func @_transformer_kernel(%arg0: i32, %arg1: memref<8x1xi32, #tpu.memory_space<vmem>>, %arg2: memref<8x1xi32, #tpu.memory_space<vmem>>, %arg3: memref<1x1x8xf32, #tpu.memory_space<vmem>>, %arg4: memref<1x8x8xf32, #tpu.memory_space<vmem>>, %arg5: memref<8x64xf32, #tpu.memory_space<vmem>>, %arg6: memref<8x64xf32, #tpu.memory_space<vmem>>, %arg7: memref<32x64xf32, #tpu.memory_space<vmem>>, %arg8: memref<32x64xf32, #tpu.memory_space<vmem>>, %arg9: memref<2x4x64x48xbf16, #tpu.memory_space<vmem>>, %arg10: memref<2x4x1x48xf32, #tpu.memory_space<vmem>>, %arg11: memref<2x4x16x64xbf16, #tpu.memory_space<vmem>>, %arg12: memref<2x1x64xf32, #tpu.memory_space<vmem>>, %arg13: memref<2x64x128xbf16, #tpu.memory_space<vmem>>, %arg14: memref<2x1x128xf32, #tpu.memory_space<vmem>>, %arg15: memref<2x128x64xbf16, #tpu.memory_space<vmem>>, %arg16: memref<2x1x64xf32, #tpu.memory_space<vmem>>, %arg17: memref<2x2x64xf32, #tpu.memory_space<vmem>>, %arg18: memref<2x2x64xf32, #tpu.memory_space<vmem>>, %arg19: memref<1x64xf32, #tpu.memory_space<vmem>>, %arg20: memref<1x64xf32, #tpu.memory_space<vmem>>, %arg21: memref<2x4x64x48xbf16, #tpu.memory_space<vmem>>, %arg22: memref<2x4x1x48xf32, #tpu.memory_space<vmem>>, %arg23: memref<2x4x16x64xbf16, #tpu.memory_space<vmem>>, %arg24: memref<2x1x64xf32, #tpu.memory_space<vmem>>, %arg25: memref<2x4x64x16xbf16, #tpu.memory_space<vmem>>, %arg26: memref<2x4x1x16xf32, #tpu.memory_space<vmem>>, %arg27: memref<2x4x64x32xbf16, #tpu.memory_space<vmem>>, %arg28: memref<2x4x1x32xf32, #tpu.memory_space<vmem>>, %arg29: memref<2x4x16x64xbf16, #tpu.memory_space<vmem>>, %arg30: memref<2x1x64xf32, #tpu.memory_space<vmem>>, %arg31: memref<2x64x128xbf16, #tpu.memory_space<vmem>>, %arg32: memref<2x1x128xf32, #tpu.memory_space<vmem>>, %arg33: memref<2x128x64xbf16, #tpu.memory_space<vmem>>, %arg34: memref<2x1x64xf32, #tpu.memory_space<vmem>>, %arg35: memref<2x3x64xf32, #tpu.memory_space<vmem>>, %arg36: memref<2x3x64xf32, #tpu.memory_space<vmem>>, %arg37: memref<1x64xf32, #tpu.memory_space<vmem>>, %arg38: memref<1x64xf32, #tpu.memory_space<vmem>>, %arg39: memref<64x32xbf16, #tpu.memory_space<vmem>>, %arg40: memref<1x32xf32, #tpu.memory_space<vmem>>, %arg41: memref<8x32xf32, #tpu.memory_space<vmem>>) attributes {dimension_semantics = [#tpu.dimension_semantics<parallel>], iteration_bounds = array<i64: 2>, scalar_prefetch = 0 : i64, scratch_operands = 0 : i64, tpu.core_type = #tpu.core_type<tc>, window_params = [{transform_indices = @transform_0, window_bounds = array<i64: 8, 1>}, {transform_indices = @transform_1, window_bounds = array<i64: 8, 1>}, {transform_indices = @transform_2, window_bounds = array<i64: 1, 1, 8>}, {transform_indices = @transform_3, window_bounds = array<i64: 1, 8, 8>}, {pipeline_mode = #tpu.pipeline_mode<synchronous>, transform_indices = @transform_4, window_bounds = array<i64: 8, 64>}, {pipeline_mode = #tpu.pipeline_mode<synchronous>, transform_indices = @transform_5, window_bounds = array<i64: 8, 64>}, {pipeline_mode = #tpu.pipeline_mode<synchronous>, transform_indices = @transform_6, window_bounds = array<i64: 32, 64>}, {pipeline_mode = #tpu.pipeline_mode<synchronous>, transform_indices = @transform_7, window_bounds = array<i64: 32, 64>}, {pipeline_mode = #tpu.pipeline_mode<synchronous>, transform_indices = @transform_8, window_bounds = array<i64: 2, 4, 64, 48>}, {pipeline_mode = #tpu.pipeline_mode<synchronous>, transform_indices = @transform_9, window_bounds = array<i64: 2, 4, 1, 48>}, {pipeline_mode = #tpu.pipeline_mode<synchronous>, transform_indices = @transform_10, window_bounds = array<i64: 2, 4, 16, 64>}, {pipeline_mode = #tpu.pipeline_mode<synchronous>, transform_indices = @transform_11, window_bounds = array<i64: 2, 1, 64>}, {pipeline_mode = #tpu.pipeline_mode<synchronous>, transform_indices = @transform_12, window_bounds = array<i64: 2, 64, 128>}, {pipeline_mode = #tpu.pipeline_mode<synchronous>, transform_indices = @transform_13, window_bounds = array<i64: 2, 1, 128>}, {pipeline_mode = #tpu.pipeline_mode<synchronous>, transform_indices = @transform_14, window_bounds = array<i64: 2, 128, 64>}, {pipeline_mode = #tpu.pipeline_mode<synchronous>, transform_indices = @transform_15, window_bounds = array<i64: 2, 1, 64>}, {pipeline_mode = #tpu.pipeline_mode<synchronous>, transform_indices = @transform_16, window_bounds = array<i64: 2, 2, 64>}, {pipeline_mode = #tpu.pipeline_mode<synchronous>, transform_indices = @transform_17, window_bounds = array<i64: 2, 2, 64>}, {pipeline_mode = #tpu.pipeline_mode<synchronous>, transform_indices = @transform_18, window_bounds = array<i64: 1, 64>}, {pipeline_mode = #tpu.pipeline_mode<synchronous>, transform_indices = @transform_19, window_bounds = array<i64: 1, 64>}, {pipeline_mode = #tpu.pipeline_mode<synchronous>, transform_indices = @transform_20, window_bounds = array<i64: 2, 4, 64, 48>}, {pipeline_mode = #tpu.pipeline_mode<synchronous>, transform_indices = @transform_21, window_bounds = array<i64: 2, 4, 1, 48>}, {pipeline_mode = #tpu.pipeline_mode<synchronous>, transform_indices = @transform_22, window_bounds = array<i64: 2, 4, 16, 64>}, {pipeline_mode = #tpu.pipeline_mode<synchronous>, transform_indices = @transform_23, window_bounds = array<i64: 2, 1, 64>}, {pipeline_mode = #tpu.pipeline_mode<synchronous>, transform_indices = @transform_24, window_bounds = array<i64: 2, 4, 64, 16>}, {pipeline_mode = #tpu.pipeline_mode<synchronous>, transform_indices = @transform_25, window_bounds = array<i64: 2, 4, 1, 16>}, {pipeline_mode = #tpu.pipeline_mode<synchronous>, transform_indices = @transform_26, window_bounds = array<i64: 2, 4, 64, 32>}, {pipeline_mode = #tpu.pipeline_mode<synchronous>, transform_indices = @transform_27, window_bounds = array<i64: 2, 4, 1, 32>}, {pipeline_mode = #tpu.pipeline_mode<synchronous>, transform_indices = @transform_28, window_bounds = array<i64: 2, 4, 16, 64>}, {pipeline_mode = #tpu.pipeline_mode<synchronous>, transform_indices = @transform_29, window_bounds = array<i64: 2, 1, 64>}, {pipeline_mode = #tpu.pipeline_mode<synchronous>, transform_indices = @transform_30, window_bounds = array<i64: 2, 64, 128>}, {pipeline_mode = #tpu.pipeline_mode<synchronous>, transform_indices = @transform_31, window_bounds = array<i64: 2, 1, 128>}, {pipeline_mode = #tpu.pipeline_mode<synchronous>, transform_indices = @transform_32, window_bounds = array<i64: 2, 128, 64>}, {pipeline_mode = #tpu.pipeline_mode<synchronous>, transform_indices = @transform_33, window_bounds = array<i64: 2, 1, 64>}, {pipeline_mode = #tpu.pipeline_mode<synchronous>, transform_indices = @transform_34, window_bounds = array<i64: 2, 3, 64>}, {pipeline_mode = #tpu.pipeline_mode<synchronous>, transform_indices = @transform_35, window_bounds = array<i64: 2, 3, 64>}, {pipeline_mode = #tpu.pipeline_mode<synchronous>, transform_indices = @transform_36, window_bounds = array<i64: 1, 64>}, {pipeline_mode = #tpu.pipeline_mode<synchronous>, transform_indices = @transform_37, window_bounds = array<i64: 1, 64>}, {pipeline_mode = #tpu.pipeline_mode<synchronous>, transform_indices = @transform_38, window_bounds = array<i64: 64, 32>}, {pipeline_mode = #tpu.pipeline_mode<synchronous>, transform_indices = @transform_39, window_bounds = array<i64: 1, 32>}, {transform_indices = @transform_40, window_bounds = array<i64: 8, 32>}]} {
    %c0 = arith.constant 0 : index
    %c0_0 = arith.constant 0 : index
    %c0_1 = arith.constant 0 : index
    %0 = vector.load %arg3[%c0, %c0_0, %c0_1] : memref<1x1x8xf32, #tpu.memory_space<vmem>>, vector<1x1x8xf32>
    %c0_2 = arith.constant 0 : index
    %c0_3 = arith.constant 0 : index
    %1 = vector.load %arg1[%c0_2, %c0_3] : memref<8x1xi32, #tpu.memory_space<vmem>>, vector<8x1xi32>
    %2 = tpu.iota {dimensions = array<i32: 1>} : vector<8x32xi32>
    %3 = vector.broadcast %1 : vector<8x1xi32> to vector<8x32xi32>
    %4 = arith.cmpi eq, %2, %3 : vector<8x32xi32>
    %5 = arith.extui %4 : vector<8x32xi1> to vector<8x32xi32>
    %6 = arith.sitofp %5 : vector<8x32xi32> to vector<8x32xf32>
    %c0_4 = arith.constant 0 : index
    %c0_5 = arith.constant 0 : index
    %7 = vector.load %arg7[%c0_4, %c0_5] : memref<32x64xf32, #tpu.memory_space<vmem>>, vector<32x64xf32>
    %cst = arith.constant dense<0.000000e+00> : vector<8x64xf32>
    %8 = tpu.matmul %6, %7, %cst {dimension_numbers = #tpu.dot_dimension_numbers<[1], [0], [0], [1], [0, 0, 1, 1], [], []>} : vector<8x32xf32>, vector<32x64xf32>, vector<8x64xf32> -> vector<8x64xf32>
    %c0_6 = arith.constant 0 : index
    %c0_7 = arith.constant 0 : index
    %9 = vector.load %arg5[%c0_6, %c0_7] : memref<8x64xf32, #tpu.memory_space<vmem>>, vector<8x64xf32>
    %10 = arith.addf %8, %9 : vector<8x64xf32>
    %c0_8 = arith.constant 0 : index
    %c0_9 = arith.constant 0 : index
    %c0_10 = arith.constant 0 : index
    %11 = vector.load %arg17[%c0_8, %c0_9, %c0_10] : memref<2x2x64xf32, #tpu.memory_space<vmem>>, vector<1x2x64xf32>
    %12 = vector.shape_cast %11 : vector<1x2x64xf32> to vector<2x64xf32>
    %c0_11 = arith.constant 0 : index
    %c0_12 = arith.constant 0 : index
    %c0_13 = arith.constant 0 : index
    %13 = vector.load %arg18[%c0_11, %c0_12, %c0_13] : memref<2x2x64xf32, #tpu.memory_space<vmem>>, vector<1x2x64xf32>
    %14 = vector.shape_cast %13 : vector<1x2x64xf32> to vector<2x64xf32>
    %15 = arith.truncf %10 : vector<8x64xf32> to vector<8x64xbf16>
    %16 = vector.shape_cast %15 : vector<8x64xbf16> to vector<1x8x64xbf16>
    %17 = vector.shape_cast %16 : vector<1x8x64xbf16> to vector<1x8x64xbf16>
    %18 = vector.broadcast %17 : vector<1x8x64xbf16> to vector<4x8x64xbf16>
    %c0_14 = arith.constant 0 : index
    %c0_15 = arith.constant 0 : index
    %c0_16 = arith.constant 0 : index
    %c0_17 = arith.constant 0 : index
    %19 = vector.load %arg9[%c0_14, %c0_15, %c0_16, %c0_17] : memref<2x4x64x48xbf16, #tpu.memory_space<vmem>>, vector<1x4x64x48xbf16>
    %20 = vector.shape_cast %19 : vector<1x4x64x48xbf16> to vector<4x64x48xbf16>
    %c0_18 = arith.constant 0 : index
    %c0_19 = arith.constant 0 : index
    %c0_20 = arith.constant 0 : index
    %c0_21 = arith.constant 0 : index
    %21 = vector.load %arg10[%c0_18, %c0_19, %c0_20, %c0_21] : memref<2x4x1x48xf32, #tpu.memory_space<vmem>>, vector<1x4x1x48xf32>
    %22 = vector.shape_cast %21 : vector<1x4x1x48xf32> to vector<4x1x48xf32>
    %cst_22 = arith.constant dense<0.000000e+00> : vector<4x8x48xf32>
    %23 = tpu.matmul %18, %20, %cst_22 {dimension_numbers = #tpu.dot_dimension_numbers<[2], [1], [1], [2], [0, 0, 0, 1, 1, 2], [0], [0]>} : vector<4x8x64xbf16>, vector<4x64x48xbf16>, vector<4x8x48xf32> -> vector<4x8x48xf32>
    %24 = vector.broadcast %22 : vector<4x1x48xf32> to vector<4x8x48xf32>
    %25 = arith.addf %23, %24 : vector<4x8x48xf32>
    %26 = vector.extract_strided_slice %25 {offsets = [0, 0, 0], sizes = [4, 8, 16], strides = [1, 1, 1]} : vector<4x8x48xf32> to vector<4x8x16xf32>
    %27 = vector.extract_strided_slice %25 {offsets = [0, 0, 16], sizes = [4, 8, 16], strides = [1, 1, 1]} : vector<4x8x48xf32> to vector<4x8x16xf32>
    %28 = vector.extract_strided_slice %25 {offsets = [0, 0, 32], sizes = [4, 8, 16], strides = [1, 1, 1]} : vector<4x8x48xf32> to vector<4x8x16xf32>
    %c0_23 = arith.constant 0 : index
    %c0_24 = arith.constant 0 : index
    %c0_25 = arith.constant 0 : index
    %c0_26 = arith.constant 0 : index
    %29 = vector.load %arg11[%c0_23, %c0_24, %c0_25, %c0_26] : memref<2x4x16x64xbf16, #tpu.memory_space<vmem>>, vector<1x4x16x64xbf16>
    %30 = vector.shape_cast %29 : vector<1x4x16x64xbf16> to vector<4x16x64xbf16>
    %c0_27 = arith.constant 0 : index
    %c0_28 = arith.constant 0 : index
    %c0_29 = arith.constant 0 : index
    %31 = vector.load %arg12[%c0_27, %c0_28, %c0_29] : memref<2x1x64xf32, #tpu.memory_space<vmem>>, vector<1x1x64xf32>
    %32 = vector.shape_cast %31 : vector<1x1x64xf32> to vector<1x64xf32>
    %33 = arith.truncf %26 : vector<4x8x16xf32> to vector<4x8x16xbf16>
    %34 = arith.truncf %27 : vector<4x8x16xf32> to vector<4x8x16xbf16>
    %cst_30 = arith.constant dense<0.000000e+00> : vector<4x8x8xf32>
    %35 = tpu.matmul %33, %34, %cst_30 {dimension_numbers = #tpu.dot_dimension_numbers<[2], [2], [1], [1], [0, 0, 0, 1, 1, 1], [0], [0]>} : vector<4x8x16xbf16>, vector<4x8x16xbf16>, vector<4x8x8xf32> -> vector<4x8x8xf32>
    %36 = vector.broadcast %0 : vector<1x1x8xf32> to vector<4x8x8xf32>
    %37 = arith.addf %35, %36 : vector<4x8x8xf32>
    %cst_31 = arith.constant dense<0xFF800000> : vector<4x8xf32>
    %38 = vector.multi_reduction <maximumf>, %37, %cst_31 [2] : vector<4x8x8xf32> to vector<4x8xf32>
    %39 = vector.shape_cast %38 : vector<4x8xf32> to vector<4x8x1xf32>
    %40 = vector.broadcast %39 : vector<4x8x1xf32> to vector<4x8x8xf32>
    %41 = arith.subf %37, %40 : vector<4x8x8xf32>
    %42 = math.exp %41 : vector<4x8x8xf32>
    %cst_32 = arith.constant dense<0.000000e+00> : vector<4x8xf32>
    %43 = vector.multi_reduction <add>, %42, %cst_32 [2] : vector<4x8x8xf32> to vector<4x8xf32>
    %44 = vector.shape_cast %43 : vector<4x8xf32> to vector<4x8x1xf32>
    %45 = vector.broadcast %44 : vector<4x8x1xf32> to vector<4x8x8xf32>
    %46 = arith.divf %42, %45 : vector<4x8x8xf32>
    %47 = arith.truncf %46 : vector<4x8x8xf32> to vector<4x8x8xbf16>
    %48 = arith.truncf %28 : vector<4x8x16xf32> to vector<4x8x16xbf16>
    %cst_33 = arith.constant dense<0.000000e+00> : vector<4x8x16xf32>
    %49 = tpu.matmul %47, %48, %cst_33 {dimension_numbers = #tpu.dot_dimension_numbers<[2], [1], [1], [2], [0, 0, 0, 1, 1, 2], [0], [0]>} : vector<4x8x8xbf16>, vector<4x8x16xbf16>, vector<4x8x16xf32> -> vector<4x8x16xf32>
    %50 = arith.truncf %49 : vector<4x8x16xf32> to vector<4x8x16xbf16>
    %cst_34 = arith.constant dense<0.000000e+00> : vector<4x8x64xf32>
    %51 = tpu.matmul %50, %30, %cst_34 {dimension_numbers = #tpu.dot_dimension_numbers<[2], [1], [1], [2], [0, 0, 0, 1, 1, 2], [0], [0]>} : vector<4x8x16xbf16>, vector<4x16x64xbf16>, vector<4x8x64xf32> -> vector<4x8x64xf32>
    %cst_35 = arith.constant dense<0.000000e+00> : vector<8x64xf32>
    %52 = vector.multi_reduction <add>, %51, %cst_35 [0] : vector<4x8x64xf32> to vector<8x64xf32>
    %53 = vector.broadcast %32 : vector<1x64xf32> to vector<8x64xf32>
    %54 = arith.addf %52, %53 : vector<8x64xf32>
    %55 = arith.addf %10, %54 : vector<8x64xf32>
    %56 = vector.extract_strided_slice %12 {offsets = [0, 0], sizes = [1, 64], strides = [1, 1]} : vector<2x64xf32> to vector<1x64xf32>
    %57 = vector.extract_strided_slice %14 {offsets = [0, 0], sizes = [1, 64], strides = [1, 1]} : vector<2x64xf32> to vector<1x64xf32>
    %cst_36 = arith.constant dense<0.000000e+00> : vector<8xf32>
    %58 = vector.multi_reduction <add>, %55, %cst_36 [1] : vector<8x64xf32> to vector<8xf32>
    %59 = vector.shape_cast %58 : vector<8xf32> to vector<8x1xf32>
    %cst_37 = arith.constant 6.400000e+01 : f32
    %60 = vector.broadcast %cst_37 : f32 to vector<8x1xf32>
    %61 = arith.divf %59, %60 : vector<8x1xf32>
    %62 = vector.broadcast %61 : vector<8x1xf32> to vector<8x64xf32>
    %63 = arith.subf %55, %62 : vector<8x64xf32>
    %64 = arith.mulf %63, %63 : vector<8x64xf32>
    %cst_38 = arith.constant dense<0.000000e+00> : vector<8xf32>
    %65 = vector.multi_reduction <add>, %64, %cst_38 [1] : vector<8x64xf32> to vector<8xf32>
    %66 = vector.shape_cast %65 : vector<8xf32> to vector<8x1xf32>
    %cst_39 = arith.constant 6.400000e+01 : f32
    %67 = vector.broadcast %cst_39 : f32 to vector<8x1xf32>
    %68 = arith.divf %66, %67 : vector<8x1xf32>
    %cst_40 = arith.constant 9.99999974E-6 : f32
    %69 = vector.broadcast %cst_40 : f32 to vector<8x1xf32>
    %70 = arith.addf %68, %69 : vector<8x1xf32>
    %71 = math.rsqrt %70 : vector<8x1xf32>
    %72 = vector.broadcast %71 : vector<8x1xf32> to vector<8x64xf32>
    %73 = arith.mulf %63, %72 : vector<8x64xf32>
    %74 = vector.broadcast %56 : vector<1x64xf32> to vector<8x64xf32>
    %75 = arith.mulf %73, %74 : vector<8x64xf32>
    %76 = vector.broadcast %57 : vector<1x64xf32> to vector<8x64xf32>
    %77 = arith.addf %75, %76 : vector<8x64xf32>
    %78 = arith.truncf %77 : vector<8x64xf32> to vector<8x64xbf16>
    %c0_41 = arith.constant 0 : index
    %c0_42 = arith.constant 0 : index
    %c0_43 = arith.constant 0 : index
    %79 = vector.load %arg13[%c0_41, %c0_42, %c0_43] : memref<2x64x128xbf16, #tpu.memory_space<vmem>>, vector<1x64x128xbf16>
    %80 = vector.shape_cast %79 : vector<1x64x128xbf16> to vector<64x128xbf16>
    %cst_44 = arith.constant dense<0.000000e+00> : vector<8x128xf32>
    %81 = tpu.matmul %78, %80, %cst_44 {dimension_numbers = #tpu.dot_dimension_numbers<[1], [0], [0], [1], [0, 0, 1, 1], [], []>} : vector<8x64xbf16>, vector<64x128xbf16>, vector<8x128xf32> -> vector<8x128xf32>
    %c0_45 = arith.constant 0 : index
    %c0_46 = arith.constant 0 : index
    %c0_47 = arith.constant 0 : index
    %82 = vector.load %arg14[%c0_45, %c0_46, %c0_47] : memref<2x1x128xf32, #tpu.memory_space<vmem>>, vector<1x1x128xf32>
    %83 = vector.shape_cast %82 : vector<1x1x128xf32> to vector<1x128xf32>
    %84 = vector.broadcast %83 : vector<1x128xf32> to vector<8x128xf32>
    %85 = arith.addf %81, %84 : vector<8x128xf32>
    %cst_48 = arith.constant 0.000000e+00 : f32
    %86 = vector.broadcast %cst_48 : f32 to vector<8x128xf32>
    %87 = arith.maximumf %85, %86 : vector<8x128xf32>
    %88 = arith.truncf %87 : vector<8x128xf32> to vector<8x128xbf16>
    %c0_49 = arith.constant 0 : index
    %c0_50 = arith.constant 0 : index
    %c0_51 = arith.constant 0 : index
    %89 = vector.load %arg15[%c0_49, %c0_50, %c0_51] : memref<2x128x64xbf16, #tpu.memory_space<vmem>>, vector<1x128x64xbf16>
    %90 = vector.shape_cast %89 : vector<1x128x64xbf16> to vector<128x64xbf16>
    %cst_52 = arith.constant dense<0.000000e+00> : vector<8x64xf32>
    %91 = tpu.matmul %88, %90, %cst_52 {dimension_numbers = #tpu.dot_dimension_numbers<[1], [0], [0], [1], [0, 0, 1, 1], [], []>} : vector<8x128xbf16>, vector<128x64xbf16>, vector<8x64xf32> -> vector<8x64xf32>
    %c0_53 = arith.constant 0 : index
    %c0_54 = arith.constant 0 : index
    %c0_55 = arith.constant 0 : index
    %92 = vector.load %arg16[%c0_53, %c0_54, %c0_55] : memref<2x1x64xf32, #tpu.memory_space<vmem>>, vector<1x1x64xf32>
    %93 = vector.shape_cast %92 : vector<1x1x64xf32> to vector<1x64xf32>
    %94 = vector.broadcast %93 : vector<1x64xf32> to vector<8x64xf32>
    %95 = arith.addf %91, %94 : vector<8x64xf32>
    %96 = arith.addf %77, %95 : vector<8x64xf32>
    %97 = vector.extract_strided_slice %12 {offsets = [1, 0], sizes = [1, 64], strides = [1, 1]} : vector<2x64xf32> to vector<1x64xf32>
    %98 = vector.extract_strided_slice %14 {offsets = [1, 0], sizes = [1, 64], strides = [1, 1]} : vector<2x64xf32> to vector<1x64xf32>
    %cst_56 = arith.constant dense<0.000000e+00> : vector<8xf32>
    %99 = vector.multi_reduction <add>, %96, %cst_56 [1] : vector<8x64xf32> to vector<8xf32>
    %100 = vector.shape_cast %99 : vector<8xf32> to vector<8x1xf32>
    %cst_57 = arith.constant 6.400000e+01 : f32
    %101 = vector.broadcast %cst_57 : f32 to vector<8x1xf32>
    %102 = arith.divf %100, %101 : vector<8x1xf32>
    %103 = vector.broadcast %102 : vector<8x1xf32> to vector<8x64xf32>
    %104 = arith.subf %96, %103 : vector<8x64xf32>
    %105 = arith.mulf %104, %104 : vector<8x64xf32>
    %cst_58 = arith.constant dense<0.000000e+00> : vector<8xf32>
    %106 = vector.multi_reduction <add>, %105, %cst_58 [1] : vector<8x64xf32> to vector<8xf32>
    %107 = vector.shape_cast %106 : vector<8xf32> to vector<8x1xf32>
    %cst_59 = arith.constant 6.400000e+01 : f32
    %108 = vector.broadcast %cst_59 : f32 to vector<8x1xf32>
    %109 = arith.divf %107, %108 : vector<8x1xf32>
    %cst_60 = arith.constant 9.99999974E-6 : f32
    %110 = vector.broadcast %cst_60 : f32 to vector<8x1xf32>
    %111 = arith.addf %109, %110 : vector<8x1xf32>
    %112 = math.rsqrt %111 : vector<8x1xf32>
    %113 = vector.broadcast %112 : vector<8x1xf32> to vector<8x64xf32>
    %114 = arith.mulf %104, %113 : vector<8x64xf32>
    %115 = vector.broadcast %97 : vector<1x64xf32> to vector<8x64xf32>
    %116 = arith.mulf %114, %115 : vector<8x64xf32>
    %117 = vector.broadcast %98 : vector<1x64xf32> to vector<8x64xf32>
    %118 = arith.addf %116, %117 : vector<8x64xf32>
    %c1 = arith.constant 1 : index
    %c0_61 = arith.constant 0 : index
    %c0_62 = arith.constant 0 : index
    %119 = vector.load %arg17[%c1, %c0_61, %c0_62] : memref<2x2x64xf32, #tpu.memory_space<vmem>>, vector<1x2x64xf32>
    %120 = vector.shape_cast %119 : vector<1x2x64xf32> to vector<2x64xf32>
    %c1_63 = arith.constant 1 : index
    %c0_64 = arith.constant 0 : index
    %c0_65 = arith.constant 0 : index
    %121 = vector.load %arg18[%c1_63, %c0_64, %c0_65] : memref<2x2x64xf32, #tpu.memory_space<vmem>>, vector<1x2x64xf32>
    %122 = vector.shape_cast %121 : vector<1x2x64xf32> to vector<2x64xf32>
    %123 = arith.truncf %118 : vector<8x64xf32> to vector<8x64xbf16>
    %124 = vector.shape_cast %123 : vector<8x64xbf16> to vector<1x8x64xbf16>
    %125 = vector.shape_cast %124 : vector<1x8x64xbf16> to vector<1x8x64xbf16>
    %126 = vector.broadcast %125 : vector<1x8x64xbf16> to vector<4x8x64xbf16>
    %c1_66 = arith.constant 1 : index
    %c0_67 = arith.constant 0 : index
    %c0_68 = arith.constant 0 : index
    %c0_69 = arith.constant 0 : index
    %127 = vector.load %arg9[%c1_66, %c0_67, %c0_68, %c0_69] : memref<2x4x64x48xbf16, #tpu.memory_space<vmem>>, vector<1x4x64x48xbf16>
    %128 = vector.shape_cast %127 : vector<1x4x64x48xbf16> to vector<4x64x48xbf16>
    %c1_70 = arith.constant 1 : index
    %c0_71 = arith.constant 0 : index
    %c0_72 = arith.constant 0 : index
    %c0_73 = arith.constant 0 : index
    %129 = vector.load %arg10[%c1_70, %c0_71, %c0_72, %c0_73] : memref<2x4x1x48xf32, #tpu.memory_space<vmem>>, vector<1x4x1x48xf32>
    %130 = vector.shape_cast %129 : vector<1x4x1x48xf32> to vector<4x1x48xf32>
    %cst_74 = arith.constant dense<0.000000e+00> : vector<4x8x48xf32>
    %131 = tpu.matmul %126, %128, %cst_74 {dimension_numbers = #tpu.dot_dimension_numbers<[2], [1], [1], [2], [0, 0, 0, 1, 1, 2], [0], [0]>} : vector<4x8x64xbf16>, vector<4x64x48xbf16>, vector<4x8x48xf32> -> vector<4x8x48xf32>
    %132 = vector.broadcast %130 : vector<4x1x48xf32> to vector<4x8x48xf32>
    %133 = arith.addf %131, %132 : vector<4x8x48xf32>
    %134 = vector.extract_strided_slice %133 {offsets = [0, 0, 0], sizes = [4, 8, 16], strides = [1, 1, 1]} : vector<4x8x48xf32> to vector<4x8x16xf32>
    %135 = vector.extract_strided_slice %133 {offsets = [0, 0, 16], sizes = [4, 8, 16], strides = [1, 1, 1]} : vector<4x8x48xf32> to vector<4x8x16xf32>
    %136 = vector.extract_strided_slice %133 {offsets = [0, 0, 32], sizes = [4, 8, 16], strides = [1, 1, 1]} : vector<4x8x48xf32> to vector<4x8x16xf32>
    %c1_75 = arith.constant 1 : index
    %c0_76 = arith.constant 0 : index
    %c0_77 = arith.constant 0 : index
    %c0_78 = arith.constant 0 : index
    %137 = vector.load %arg11[%c1_75, %c0_76, %c0_77, %c0_78] : memref<2x4x16x64xbf16, #tpu.memory_space<vmem>>, vector<1x4x16x64xbf16>
    %138 = vector.shape_cast %137 : vector<1x4x16x64xbf16> to vector<4x16x64xbf16>
    %c1_79 = arith.constant 1 : index
    %c0_80 = arith.constant 0 : index
    %c0_81 = arith.constant 0 : index
    %139 = vector.load %arg12[%c1_79, %c0_80, %c0_81] : memref<2x1x64xf32, #tpu.memory_space<vmem>>, vector<1x1x64xf32>
    %140 = vector.shape_cast %139 : vector<1x1x64xf32> to vector<1x64xf32>
    %141 = arith.truncf %134 : vector<4x8x16xf32> to vector<4x8x16xbf16>
    %142 = arith.truncf %135 : vector<4x8x16xf32> to vector<4x8x16xbf16>
    %cst_82 = arith.constant dense<0.000000e+00> : vector<4x8x8xf32>
    %143 = tpu.matmul %141, %142, %cst_82 {dimension_numbers = #tpu.dot_dimension_numbers<[2], [2], [1], [1], [0, 0, 0, 1, 1, 1], [0], [0]>} : vector<4x8x16xbf16>, vector<4x8x16xbf16>, vector<4x8x8xf32> -> vector<4x8x8xf32>
    %144 = vector.broadcast %0 : vector<1x1x8xf32> to vector<4x8x8xf32>
    %145 = arith.addf %143, %144 : vector<4x8x8xf32>
    %cst_83 = arith.constant dense<0xFF800000> : vector<4x8xf32>
    %146 = vector.multi_reduction <maximumf>, %145, %cst_83 [2] : vector<4x8x8xf32> to vector<4x8xf32>
    %147 = vector.shape_cast %146 : vector<4x8xf32> to vector<4x8x1xf32>
    %148 = vector.broadcast %147 : vector<4x8x1xf32> to vector<4x8x8xf32>
    %149 = arith.subf %145, %148 : vector<4x8x8xf32>
    %150 = math.exp %149 : vector<4x8x8xf32>
    %cst_84 = arith.constant dense<0.000000e+00> : vector<4x8xf32>
    %151 = vector.multi_reduction <add>, %150, %cst_84 [2] : vector<4x8x8xf32> to vector<4x8xf32>
    %152 = vector.shape_cast %151 : vector<4x8xf32> to vector<4x8x1xf32>
    %153 = vector.broadcast %152 : vector<4x8x1xf32> to vector<4x8x8xf32>
    %154 = arith.divf %150, %153 : vector<4x8x8xf32>
    %155 = arith.truncf %154 : vector<4x8x8xf32> to vector<4x8x8xbf16>
    %156 = arith.truncf %136 : vector<4x8x16xf32> to vector<4x8x16xbf16>
    %cst_85 = arith.constant dense<0.000000e+00> : vector<4x8x16xf32>
    %157 = tpu.matmul %155, %156, %cst_85 {dimension_numbers = #tpu.dot_dimension_numbers<[2], [1], [1], [2], [0, 0, 0, 1, 1, 2], [0], [0]>} : vector<4x8x8xbf16>, vector<4x8x16xbf16>, vector<4x8x16xf32> -> vector<4x8x16xf32>
    %158 = arith.truncf %157 : vector<4x8x16xf32> to vector<4x8x16xbf16>
    %cst_86 = arith.constant dense<0.000000e+00> : vector<4x8x64xf32>
    %159 = tpu.matmul %158, %138, %cst_86 {dimension_numbers = #tpu.dot_dimension_numbers<[2], [1], [1], [2], [0, 0, 0, 1, 1, 2], [0], [0]>} : vector<4x8x16xbf16>, vector<4x16x64xbf16>, vector<4x8x64xf32> -> vector<4x8x64xf32>
    %cst_87 = arith.constant dense<0.000000e+00> : vector<8x64xf32>
    %160 = vector.multi_reduction <add>, %159, %cst_87 [0] : vector<4x8x64xf32> to vector<8x64xf32>
    %161 = vector.broadcast %140 : vector<1x64xf32> to vector<8x64xf32>
    %162 = arith.addf %160, %161 : vector<8x64xf32>
    %163 = arith.addf %118, %162 : vector<8x64xf32>
    %164 = vector.extract_strided_slice %120 {offsets = [0, 0], sizes = [1, 64], strides = [1, 1]} : vector<2x64xf32> to vector<1x64xf32>
    %165 = vector.extract_strided_slice %122 {offsets = [0, 0], sizes = [1, 64], strides = [1, 1]} : vector<2x64xf32> to vector<1x64xf32>
    %cst_88 = arith.constant dense<0.000000e+00> : vector<8xf32>
    %166 = vector.multi_reduction <add>, %163, %cst_88 [1] : vector<8x64xf32> to vector<8xf32>
    %167 = vector.shape_cast %166 : vector<8xf32> to vector<8x1xf32>
    %cst_89 = arith.constant 6.400000e+01 : f32
    %168 = vector.broadcast %cst_89 : f32 to vector<8x1xf32>
    %169 = arith.divf %167, %168 : vector<8x1xf32>
    %170 = vector.broadcast %169 : vector<8x1xf32> to vector<8x64xf32>
    %171 = arith.subf %163, %170 : vector<8x64xf32>
    %172 = arith.mulf %171, %171 : vector<8x64xf32>
    %cst_90 = arith.constant dense<0.000000e+00> : vector<8xf32>
    %173 = vector.multi_reduction <add>, %172, %cst_90 [1] : vector<8x64xf32> to vector<8xf32>
    %174 = vector.shape_cast %173 : vector<8xf32> to vector<8x1xf32>
    %cst_91 = arith.constant 6.400000e+01 : f32
    %175 = vector.broadcast %cst_91 : f32 to vector<8x1xf32>
    %176 = arith.divf %174, %175 : vector<8x1xf32>
    %cst_92 = arith.constant 9.99999974E-6 : f32
    %177 = vector.broadcast %cst_92 : f32 to vector<8x1xf32>
    %178 = arith.addf %176, %177 : vector<8x1xf32>
    %179 = math.rsqrt %178 : vector<8x1xf32>
    %180 = vector.broadcast %179 : vector<8x1xf32> to vector<8x64xf32>
    %181 = arith.mulf %171, %180 : vector<8x64xf32>
    %182 = vector.broadcast %164 : vector<1x64xf32> to vector<8x64xf32>
    %183 = arith.mulf %181, %182 : vector<8x64xf32>
    %184 = vector.broadcast %165 : vector<1x64xf32> to vector<8x64xf32>
    %185 = arith.addf %183, %184 : vector<8x64xf32>
    %186 = arith.truncf %185 : vector<8x64xf32> to vector<8x64xbf16>
    %c1_93 = arith.constant 1 : index
    %c0_94 = arith.constant 0 : index
    %c0_95 = arith.constant 0 : index
    %187 = vector.load %arg13[%c1_93, %c0_94, %c0_95] : memref<2x64x128xbf16, #tpu.memory_space<vmem>>, vector<1x64x128xbf16>
    %188 = vector.shape_cast %187 : vector<1x64x128xbf16> to vector<64x128xbf16>
    %cst_96 = arith.constant dense<0.000000e+00> : vector<8x128xf32>
    %189 = tpu.matmul %186, %188, %cst_96 {dimension_numbers = #tpu.dot_dimension_numbers<[1], [0], [0], [1], [0, 0, 1, 1], [], []>} : vector<8x64xbf16>, vector<64x128xbf16>, vector<8x128xf32> -> vector<8x128xf32>
    %c1_97 = arith.constant 1 : index
    %c0_98 = arith.constant 0 : index
    %c0_99 = arith.constant 0 : index
    %190 = vector.load %arg14[%c1_97, %c0_98, %c0_99] : memref<2x1x128xf32, #tpu.memory_space<vmem>>, vector<1x1x128xf32>
    %191 = vector.shape_cast %190 : vector<1x1x128xf32> to vector<1x128xf32>
    %192 = vector.broadcast %191 : vector<1x128xf32> to vector<8x128xf32>
    %193 = arith.addf %189, %192 : vector<8x128xf32>
    %cst_100 = arith.constant 0.000000e+00 : f32
    %194 = vector.broadcast %cst_100 : f32 to vector<8x128xf32>
    %195 = arith.maximumf %193, %194 : vector<8x128xf32>
    %196 = arith.truncf %195 : vector<8x128xf32> to vector<8x128xbf16>
    %c1_101 = arith.constant 1 : index
    %c0_102 = arith.constant 0 : index
    %c0_103 = arith.constant 0 : index
    %197 = vector.load %arg15[%c1_101, %c0_102, %c0_103] : memref<2x128x64xbf16, #tpu.memory_space<vmem>>, vector<1x128x64xbf16>
    %198 = vector.shape_cast %197 : vector<1x128x64xbf16> to vector<128x64xbf16>
    %cst_104 = arith.constant dense<0.000000e+00> : vector<8x64xf32>
    %199 = tpu.matmul %196, %198, %cst_104 {dimension_numbers = #tpu.dot_dimension_numbers<[1], [0], [0], [1], [0, 0, 1, 1], [], []>} : vector<8x128xbf16>, vector<128x64xbf16>, vector<8x64xf32> -> vector<8x64xf32>
    %c1_105 = arith.constant 1 : index
    %c0_106 = arith.constant 0 : index
    %c0_107 = arith.constant 0 : index
    %200 = vector.load %arg16[%c1_105, %c0_106, %c0_107] : memref<2x1x64xf32, #tpu.memory_space<vmem>>, vector<1x1x64xf32>
    %201 = vector.shape_cast %200 : vector<1x1x64xf32> to vector<1x64xf32>
    %202 = vector.broadcast %201 : vector<1x64xf32> to vector<8x64xf32>
    %203 = arith.addf %199, %202 : vector<8x64xf32>
    %204 = arith.addf %185, %203 : vector<8x64xf32>
    %205 = vector.extract_strided_slice %120 {offsets = [1, 0], sizes = [1, 64], strides = [1, 1]} : vector<2x64xf32> to vector<1x64xf32>
    %206 = vector.extract_strided_slice %122 {offsets = [1, 0], sizes = [1, 64], strides = [1, 1]} : vector<2x64xf32> to vector<1x64xf32>
    %cst_108 = arith.constant dense<0.000000e+00> : vector<8xf32>
    %207 = vector.multi_reduction <add>, %204, %cst_108 [1] : vector<8x64xf32> to vector<8xf32>
    %208 = vector.shape_cast %207 : vector<8xf32> to vector<8x1xf32>
    %cst_109 = arith.constant 6.400000e+01 : f32
    %209 = vector.broadcast %cst_109 : f32 to vector<8x1xf32>
    %210 = arith.divf %208, %209 : vector<8x1xf32>
    %211 = vector.broadcast %210 : vector<8x1xf32> to vector<8x64xf32>
    %212 = arith.subf %204, %211 : vector<8x64xf32>
    %213 = arith.mulf %212, %212 : vector<8x64xf32>
    %cst_110 = arith.constant dense<0.000000e+00> : vector<8xf32>
    %214 = vector.multi_reduction <add>, %213, %cst_110 [1] : vector<8x64xf32> to vector<8xf32>
    %215 = vector.shape_cast %214 : vector<8xf32> to vector<8x1xf32>
    %cst_111 = arith.constant 6.400000e+01 : f32
    %216 = vector.broadcast %cst_111 : f32 to vector<8x1xf32>
    %217 = arith.divf %215, %216 : vector<8x1xf32>
    %cst_112 = arith.constant 9.99999974E-6 : f32
    %218 = vector.broadcast %cst_112 : f32 to vector<8x1xf32>
    %219 = arith.addf %217, %218 : vector<8x1xf32>
    %220 = math.rsqrt %219 : vector<8x1xf32>
    %221 = vector.broadcast %220 : vector<8x1xf32> to vector<8x64xf32>
    %222 = arith.mulf %212, %221 : vector<8x64xf32>
    %223 = vector.broadcast %205 : vector<1x64xf32> to vector<8x64xf32>
    %224 = arith.mulf %222, %223 : vector<8x64xf32>
    %225 = vector.broadcast %206 : vector<1x64xf32> to vector<8x64xf32>
    %226 = arith.addf %224, %225 : vector<8x64xf32>
    %c0_113 = arith.constant 0 : index
    %c0_114 = arith.constant 0 : index
    %227 = vector.load %arg19[%c0_113, %c0_114] : memref<1x64xf32, #tpu.memory_space<vmem>>, vector<1x64xf32>
    %c0_115 = arith.constant 0 : index
    %c0_116 = arith.constant 0 : index
    %228 = vector.load %arg20[%c0_115, %c0_116] : memref<1x64xf32, #tpu.memory_space<vmem>>, vector<1x64xf32>
    %cst_117 = arith.constant dense<0.000000e+00> : vector<8xf32>
    %229 = vector.multi_reduction <add>, %226, %cst_117 [1] : vector<8x64xf32> to vector<8xf32>
    %230 = vector.shape_cast %229 : vector<8xf32> to vector<8x1xf32>
    %cst_118 = arith.constant 6.400000e+01 : f32
    %231 = vector.broadcast %cst_118 : f32 to vector<8x1xf32>
    %232 = arith.divf %230, %231 : vector<8x1xf32>
    %233 = vector.broadcast %232 : vector<8x1xf32> to vector<8x64xf32>
    %234 = arith.subf %226, %233 : vector<8x64xf32>
    %235 = arith.mulf %234, %234 : vector<8x64xf32>
    %cst_119 = arith.constant dense<0.000000e+00> : vector<8xf32>
    %236 = vector.multi_reduction <add>, %235, %cst_119 [1] : vector<8x64xf32> to vector<8xf32>
    %237 = vector.shape_cast %236 : vector<8xf32> to vector<8x1xf32>
    %cst_120 = arith.constant 6.400000e+01 : f32
    %238 = vector.broadcast %cst_120 : f32 to vector<8x1xf32>
    %239 = arith.divf %237, %238 : vector<8x1xf32>
    %cst_121 = arith.constant 9.99999974E-6 : f32
    %240 = vector.broadcast %cst_121 : f32 to vector<8x1xf32>
    %241 = arith.addf %239, %240 : vector<8x1xf32>
    %242 = math.rsqrt %241 : vector<8x1xf32>
    %243 = vector.broadcast %242 : vector<8x1xf32> to vector<8x64xf32>
    %244 = arith.mulf %234, %243 : vector<8x64xf32>
    %245 = vector.broadcast %227 : vector<1x64xf32> to vector<8x64xf32>
    %246 = arith.mulf %244, %245 : vector<8x64xf32>
    %247 = vector.broadcast %228 : vector<1x64xf32> to vector<8x64xf32>
    %248 = arith.addf %246, %247 : vector<8x64xf32>
    %249 = arith.truncf %248 : vector<8x64xf32> to vector<8x64xbf16>
    %250 = vector.shape_cast %249 : vector<8x64xbf16> to vector<1x8x64xbf16>
    %251 = vector.shape_cast %250 : vector<1x8x64xbf16> to vector<1x8x64xbf16>
    %252 = vector.broadcast %251 : vector<1x8x64xbf16> to vector<4x8x64xbf16>
    %c0_122 = arith.constant 0 : index
    %c0_123 = arith.constant 0 : index
    %c0_124 = arith.constant 0 : index
    %253 = vector.load %arg4[%c0_122, %c0_123, %c0_124] : memref<1x8x8xf32, #tpu.memory_space<vmem>>, vector<1x8x8xf32>
    %c0_125 = arith.constant 0 : index
    %c0_126 = arith.constant 0 : index
    %254 = vector.load %arg2[%c0_125, %c0_126] : memref<8x1xi32, #tpu.memory_space<vmem>>, vector<8x1xi32>
    %255 = tpu.iota {dimensions = array<i32: 1>} : vector<8x32xi32>
    %256 = vector.broadcast %254 : vector<8x1xi32> to vector<8x32xi32>
    %257 = arith.cmpi eq, %255, %256 : vector<8x32xi32>
    %258 = arith.extui %257 : vector<8x32xi1> to vector<8x32xi32>
    %259 = arith.sitofp %258 : vector<8x32xi32> to vector<8x32xf32>
    %c0_127 = arith.constant 0 : index
    %c0_128 = arith.constant 0 : index
    %260 = vector.load %arg8[%c0_127, %c0_128] : memref<32x64xf32, #tpu.memory_space<vmem>>, vector<32x64xf32>
    %cst_129 = arith.constant dense<0.000000e+00> : vector<8x64xf32>
    %261 = tpu.matmul %259, %260, %cst_129 {dimension_numbers = #tpu.dot_dimension_numbers<[1], [0], [0], [1], [0, 0, 1, 1], [], []>} : vector<8x32xf32>, vector<32x64xf32>, vector<8x64xf32> -> vector<8x64xf32>
    %c0_130 = arith.constant 0 : index
    %c0_131 = arith.constant 0 : index
    %262 = vector.load %arg6[%c0_130, %c0_131] : memref<8x64xf32, #tpu.memory_space<vmem>>, vector<8x64xf32>
    %263 = arith.addf %261, %262 : vector<8x64xf32>
    %c0_132 = arith.constant 0 : index
    %c0_133 = arith.constant 0 : index
    %c0_134 = arith.constant 0 : index
    %264 = vector.load %arg35[%c0_132, %c0_133, %c0_134] : memref<2x3x64xf32, #tpu.memory_space<vmem>>, vector<1x3x64xf32>
    %265 = vector.shape_cast %264 : vector<1x3x64xf32> to vector<3x64xf32>
    %c0_135 = arith.constant 0 : index
    %c0_136 = arith.constant 0 : index
    %c0_137 = arith.constant 0 : index
    %266 = vector.load %arg36[%c0_135, %c0_136, %c0_137] : memref<2x3x64xf32, #tpu.memory_space<vmem>>, vector<1x3x64xf32>
    %267 = vector.shape_cast %266 : vector<1x3x64xf32> to vector<3x64xf32>
    %268 = arith.truncf %263 : vector<8x64xf32> to vector<8x64xbf16>
    %269 = vector.shape_cast %268 : vector<8x64xbf16> to vector<1x8x64xbf16>
    %270 = vector.shape_cast %269 : vector<1x8x64xbf16> to vector<1x8x64xbf16>
    %271 = vector.broadcast %270 : vector<1x8x64xbf16> to vector<4x8x64xbf16>
    %c0_138 = arith.constant 0 : index
    %c0_139 = arith.constant 0 : index
    %c0_140 = arith.constant 0 : index
    %c0_141 = arith.constant 0 : index
    %272 = vector.load %arg21[%c0_138, %c0_139, %c0_140, %c0_141] : memref<2x4x64x48xbf16, #tpu.memory_space<vmem>>, vector<1x4x64x48xbf16>
    %273 = vector.shape_cast %272 : vector<1x4x64x48xbf16> to vector<4x64x48xbf16>
    %c0_142 = arith.constant 0 : index
    %c0_143 = arith.constant 0 : index
    %c0_144 = arith.constant 0 : index
    %c0_145 = arith.constant 0 : index
    %274 = vector.load %arg22[%c0_142, %c0_143, %c0_144, %c0_145] : memref<2x4x1x48xf32, #tpu.memory_space<vmem>>, vector<1x4x1x48xf32>
    %275 = vector.shape_cast %274 : vector<1x4x1x48xf32> to vector<4x1x48xf32>
    %cst_146 = arith.constant dense<0.000000e+00> : vector<4x8x48xf32>
    %276 = tpu.matmul %271, %273, %cst_146 {dimension_numbers = #tpu.dot_dimension_numbers<[2], [1], [1], [2], [0, 0, 0, 1, 1, 2], [0], [0]>} : vector<4x8x64xbf16>, vector<4x64x48xbf16>, vector<4x8x48xf32> -> vector<4x8x48xf32>
    %277 = vector.broadcast %275 : vector<4x1x48xf32> to vector<4x8x48xf32>
    %278 = arith.addf %276, %277 : vector<4x8x48xf32>
    %279 = vector.extract_strided_slice %278 {offsets = [0, 0, 0], sizes = [4, 8, 16], strides = [1, 1, 1]} : vector<4x8x48xf32> to vector<4x8x16xf32>
    %280 = vector.extract_strided_slice %278 {offsets = [0, 0, 16], sizes = [4, 8, 16], strides = [1, 1, 1]} : vector<4x8x48xf32> to vector<4x8x16xf32>
    %281 = vector.extract_strided_slice %278 {offsets = [0, 0, 32], sizes = [4, 8, 16], strides = [1, 1, 1]} : vector<4x8x48xf32> to vector<4x8x16xf32>
    %c0_147 = arith.constant 0 : index
    %c0_148 = arith.constant 0 : index
    %c0_149 = arith.constant 0 : index
    %c0_150 = arith.constant 0 : index
    %282 = vector.load %arg23[%c0_147, %c0_148, %c0_149, %c0_150] : memref<2x4x16x64xbf16, #tpu.memory_space<vmem>>, vector<1x4x16x64xbf16>
    %283 = vector.shape_cast %282 : vector<1x4x16x64xbf16> to vector<4x16x64xbf16>
    %c0_151 = arith.constant 0 : index
    %c0_152 = arith.constant 0 : index
    %c0_153 = arith.constant 0 : index
    %284 = vector.load %arg24[%c0_151, %c0_152, %c0_153] : memref<2x1x64xf32, #tpu.memory_space<vmem>>, vector<1x1x64xf32>
    %285 = vector.shape_cast %284 : vector<1x1x64xf32> to vector<1x64xf32>
    %286 = arith.truncf %279 : vector<4x8x16xf32> to vector<4x8x16xbf16>
    %287 = arith.truncf %280 : vector<4x8x16xf32> to vector<4x8x16xbf16>
    %cst_154 = arith.constant dense<0.000000e+00> : vector<4x8x8xf32>
    %288 = tpu.matmul %286, %287, %cst_154 {dimension_numbers = #tpu.dot_dimension_numbers<[2], [2], [1], [1], [0, 0, 0, 1, 1, 1], [0], [0]>} : vector<4x8x16xbf16>, vector<4x8x16xbf16>, vector<4x8x8xf32> -> vector<4x8x8xf32>
    %289 = vector.broadcast %253 : vector<1x8x8xf32> to vector<4x8x8xf32>
    %290 = arith.addf %288, %289 : vector<4x8x8xf32>
    %cst_155 = arith.constant dense<0xFF800000> : vector<4x8xf32>
    %291 = vector.multi_reduction <maximumf>, %290, %cst_155 [2] : vector<4x8x8xf32> to vector<4x8xf32>
    %292 = vector.shape_cast %291 : vector<4x8xf32> to vector<4x8x1xf32>
    %293 = vector.broadcast %292 : vector<4x8x1xf32> to vector<4x8x8xf32>
    %294 = arith.subf %290, %293 : vector<4x8x8xf32>
    %295 = math.exp %294 : vector<4x8x8xf32>
    %cst_156 = arith.constant dense<0.000000e+00> : vector<4x8xf32>
    %296 = vector.multi_reduction <add>, %295, %cst_156 [2] : vector<4x8x8xf32> to vector<4x8xf32>
    %297 = vector.shape_cast %296 : vector<4x8xf32> to vector<4x8x1xf32>
    %298 = vector.broadcast %297 : vector<4x8x1xf32> to vector<4x8x8xf32>
    %299 = arith.divf %295, %298 : vector<4x8x8xf32>
    %300 = arith.truncf %299 : vector<4x8x8xf32> to vector<4x8x8xbf16>
    %301 = arith.truncf %281 : vector<4x8x16xf32> to vector<4x8x16xbf16>
    %cst_157 = arith.constant dense<0.000000e+00> : vector<4x8x16xf32>
    %302 = tpu.matmul %300, %301, %cst_157 {dimension_numbers = #tpu.dot_dimension_numbers<[2], [1], [1], [2], [0, 0, 0, 1, 1, 2], [0], [0]>} : vector<4x8x8xbf16>, vector<4x8x16xbf16>, vector<4x8x16xf32> -> vector<4x8x16xf32>
    %303 = arith.truncf %302 : vector<4x8x16xf32> to vector<4x8x16xbf16>
    %cst_158 = arith.constant dense<0.000000e+00> : vector<4x8x64xf32>
    %304 = tpu.matmul %303, %283, %cst_158 {dimension_numbers = #tpu.dot_dimension_numbers<[2], [1], [1], [2], [0, 0, 0, 1, 1, 2], [0], [0]>} : vector<4x8x16xbf16>, vector<4x16x64xbf16>, vector<4x8x64xf32> -> vector<4x8x64xf32>
    %cst_159 = arith.constant dense<0.000000e+00> : vector<8x64xf32>
    %305 = vector.multi_reduction <add>, %304, %cst_159 [0] : vector<4x8x64xf32> to vector<8x64xf32>
    %306 = vector.broadcast %285 : vector<1x64xf32> to vector<8x64xf32>
    %307 = arith.addf %305, %306 : vector<8x64xf32>
    %308 = arith.addf %263, %307 : vector<8x64xf32>
    %309 = vector.extract_strided_slice %265 {offsets = [0, 0], sizes = [1, 64], strides = [1, 1]} : vector<3x64xf32> to vector<1x64xf32>
    %310 = vector.extract_strided_slice %267 {offsets = [0, 0], sizes = [1, 64], strides = [1, 1]} : vector<3x64xf32> to vector<1x64xf32>
    %cst_160 = arith.constant dense<0.000000e+00> : vector<8xf32>
    %311 = vector.multi_reduction <add>, %308, %cst_160 [1] : vector<8x64xf32> to vector<8xf32>
    %312 = vector.shape_cast %311 : vector<8xf32> to vector<8x1xf32>
    %cst_161 = arith.constant 6.400000e+01 : f32
    %313 = vector.broadcast %cst_161 : f32 to vector<8x1xf32>
    %314 = arith.divf %312, %313 : vector<8x1xf32>
    %315 = vector.broadcast %314 : vector<8x1xf32> to vector<8x64xf32>
    %316 = arith.subf %308, %315 : vector<8x64xf32>
    %317 = arith.mulf %316, %316 : vector<8x64xf32>
    %cst_162 = arith.constant dense<0.000000e+00> : vector<8xf32>
    %318 = vector.multi_reduction <add>, %317, %cst_162 [1] : vector<8x64xf32> to vector<8xf32>
    %319 = vector.shape_cast %318 : vector<8xf32> to vector<8x1xf32>
    %cst_163 = arith.constant 6.400000e+01 : f32
    %320 = vector.broadcast %cst_163 : f32 to vector<8x1xf32>
    %321 = arith.divf %319, %320 : vector<8x1xf32>
    %cst_164 = arith.constant 9.99999974E-6 : f32
    %322 = vector.broadcast %cst_164 : f32 to vector<8x1xf32>
    %323 = arith.addf %321, %322 : vector<8x1xf32>
    %324 = math.rsqrt %323 : vector<8x1xf32>
    %325 = vector.broadcast %324 : vector<8x1xf32> to vector<8x64xf32>
    %326 = arith.mulf %316, %325 : vector<8x64xf32>
    %327 = vector.broadcast %309 : vector<1x64xf32> to vector<8x64xf32>
    %328 = arith.mulf %326, %327 : vector<8x64xf32>
    %329 = vector.broadcast %310 : vector<1x64xf32> to vector<8x64xf32>
    %330 = arith.addf %328, %329 : vector<8x64xf32>
    %331 = arith.truncf %330 : vector<8x64xf32> to vector<8x64xbf16>
    %332 = vector.shape_cast %331 : vector<8x64xbf16> to vector<1x8x64xbf16>
    %333 = vector.shape_cast %332 : vector<1x8x64xbf16> to vector<1x8x64xbf16>
    %334 = vector.broadcast %333 : vector<1x8x64xbf16> to vector<4x8x64xbf16>
    %c0_165 = arith.constant 0 : index
    %c0_166 = arith.constant 0 : index
    %c0_167 = arith.constant 0 : index
    %c0_168 = arith.constant 0 : index
    %335 = vector.load %arg25[%c0_165, %c0_166, %c0_167, %c0_168] : memref<2x4x64x16xbf16, #tpu.memory_space<vmem>>, vector<1x4x64x16xbf16>
    %336 = vector.shape_cast %335 : vector<1x4x64x16xbf16> to vector<4x64x16xbf16>
    %c0_169 = arith.constant 0 : index
    %c0_170 = arith.constant 0 : index
    %c0_171 = arith.constant 0 : index
    %c0_172 = arith.constant 0 : index
    %337 = vector.load %arg26[%c0_169, %c0_170, %c0_171, %c0_172] : memref<2x4x1x16xf32, #tpu.memory_space<vmem>>, vector<1x4x1x16xf32>
    %338 = vector.shape_cast %337 : vector<1x4x1x16xf32> to vector<4x1x16xf32>
    %cst_173 = arith.constant dense<0.000000e+00> : vector<4x8x16xf32>
    %339 = tpu.matmul %334, %336, %cst_173 {dimension_numbers = #tpu.dot_dimension_numbers<[2], [1], [1], [2], [0, 0, 0, 1, 1, 2], [0], [0]>} : vector<4x8x64xbf16>, vector<4x64x16xbf16>, vector<4x8x16xf32> -> vector<4x8x16xf32>
    %340 = vector.broadcast %338 : vector<4x1x16xf32> to vector<4x8x16xf32>
    %341 = arith.addf %339, %340 : vector<4x8x16xf32>
    %c0_174 = arith.constant 0 : index
    %c0_175 = arith.constant 0 : index
    %c0_176 = arith.constant 0 : index
    %c0_177 = arith.constant 0 : index
    %342 = vector.load %arg27[%c0_174, %c0_175, %c0_176, %c0_177] : memref<2x4x64x32xbf16, #tpu.memory_space<vmem>>, vector<1x4x64x32xbf16>
    %343 = vector.shape_cast %342 : vector<1x4x64x32xbf16> to vector<4x64x32xbf16>
    %c0_178 = arith.constant 0 : index
    %c0_179 = arith.constant 0 : index
    %c0_180 = arith.constant 0 : index
    %c0_181 = arith.constant 0 : index
    %344 = vector.load %arg28[%c0_178, %c0_179, %c0_180, %c0_181] : memref<2x4x1x32xf32, #tpu.memory_space<vmem>>, vector<1x4x1x32xf32>
    %345 = vector.shape_cast %344 : vector<1x4x1x32xf32> to vector<4x1x32xf32>
    %cst_182 = arith.constant dense<0.000000e+00> : vector<4x8x32xf32>
    %346 = tpu.matmul %252, %343, %cst_182 {dimension_numbers = #tpu.dot_dimension_numbers<[2], [1], [1], [2], [0, 0, 0, 1, 1, 2], [0], [0]>} : vector<4x8x64xbf16>, vector<4x64x32xbf16>, vector<4x8x32xf32> -> vector<4x8x32xf32>
    %347 = vector.broadcast %345 : vector<4x1x32xf32> to vector<4x8x32xf32>
    %348 = arith.addf %346, %347 : vector<4x8x32xf32>
    %349 = vector.extract_strided_slice %348 {offsets = [0, 0, 0], sizes = [4, 8, 16], strides = [1, 1, 1]} : vector<4x8x32xf32> to vector<4x8x16xf32>
    %350 = vector.extract_strided_slice %348 {offsets = [0, 0, 16], sizes = [4, 8, 16], strides = [1, 1, 1]} : vector<4x8x32xf32> to vector<4x8x16xf32>
    %c0_183 = arith.constant 0 : index
    %c0_184 = arith.constant 0 : index
    %c0_185 = arith.constant 0 : index
    %c0_186 = arith.constant 0 : index
    %351 = vector.load %arg29[%c0_183, %c0_184, %c0_185, %c0_186] : memref<2x4x16x64xbf16, #tpu.memory_space<vmem>>, vector<1x4x16x64xbf16>
    %352 = vector.shape_cast %351 : vector<1x4x16x64xbf16> to vector<4x16x64xbf16>
    %c0_187 = arith.constant 0 : index
    %c0_188 = arith.constant 0 : index
    %c0_189 = arith.constant 0 : index
    %353 = vector.load %arg30[%c0_187, %c0_188, %c0_189] : memref<2x1x64xf32, #tpu.memory_space<vmem>>, vector<1x1x64xf32>
    %354 = vector.shape_cast %353 : vector<1x1x64xf32> to vector<1x64xf32>
    %355 = arith.truncf %341 : vector<4x8x16xf32> to vector<4x8x16xbf16>
    %356 = arith.truncf %349 : vector<4x8x16xf32> to vector<4x8x16xbf16>
    %cst_190 = arith.constant dense<0.000000e+00> : vector<4x8x8xf32>
    %357 = tpu.matmul %355, %356, %cst_190 {dimension_numbers = #tpu.dot_dimension_numbers<[2], [2], [1], [1], [0, 0, 0, 1, 1, 1], [0], [0]>} : vector<4x8x16xbf16>, vector<4x8x16xbf16>, vector<4x8x8xf32> -> vector<4x8x8xf32>
    %358 = vector.broadcast %0 : vector<1x1x8xf32> to vector<4x8x8xf32>
    %359 = arith.addf %357, %358 : vector<4x8x8xf32>
    %cst_191 = arith.constant dense<0xFF800000> : vector<4x8xf32>
    %360 = vector.multi_reduction <maximumf>, %359, %cst_191 [2] : vector<4x8x8xf32> to vector<4x8xf32>
    %361 = vector.shape_cast %360 : vector<4x8xf32> to vector<4x8x1xf32>
    %362 = vector.broadcast %361 : vector<4x8x1xf32> to vector<4x8x8xf32>
    %363 = arith.subf %359, %362 : vector<4x8x8xf32>
    %364 = math.exp %363 : vector<4x8x8xf32>
    %cst_192 = arith.constant dense<0.000000e+00> : vector<4x8xf32>
    %365 = vector.multi_reduction <add>, %364, %cst_192 [2] : vector<4x8x8xf32> to vector<4x8xf32>
    %366 = vector.shape_cast %365 : vector<4x8xf32> to vector<4x8x1xf32>
    %367 = vector.broadcast %366 : vector<4x8x1xf32> to vector<4x8x8xf32>
    %368 = arith.divf %364, %367 : vector<4x8x8xf32>
    %369 = arith.truncf %368 : vector<4x8x8xf32> to vector<4x8x8xbf16>
    %370 = arith.truncf %350 : vector<4x8x16xf32> to vector<4x8x16xbf16>
    %cst_193 = arith.constant dense<0.000000e+00> : vector<4x8x16xf32>
    %371 = tpu.matmul %369, %370, %cst_193 {dimension_numbers = #tpu.dot_dimension_numbers<[2], [1], [1], [2], [0, 0, 0, 1, 1, 2], [0], [0]>} : vector<4x8x8xbf16>, vector<4x8x16xbf16>, vector<4x8x16xf32> -> vector<4x8x16xf32>
    %372 = arith.truncf %371 : vector<4x8x16xf32> to vector<4x8x16xbf16>
    %cst_194 = arith.constant dense<0.000000e+00> : vector<4x8x64xf32>
    %373 = tpu.matmul %372, %352, %cst_194 {dimension_numbers = #tpu.dot_dimension_numbers<[2], [1], [1], [2], [0, 0, 0, 1, 1, 2], [0], [0]>} : vector<4x8x16xbf16>, vector<4x16x64xbf16>, vector<4x8x64xf32> -> vector<4x8x64xf32>
    %cst_195 = arith.constant dense<0.000000e+00> : vector<8x64xf32>
    %374 = vector.multi_reduction <add>, %373, %cst_195 [0] : vector<4x8x64xf32> to vector<8x64xf32>
    %375 = vector.broadcast %354 : vector<1x64xf32> to vector<8x64xf32>
    %376 = arith.addf %374, %375 : vector<8x64xf32>
    %377 = arith.addf %330, %376 : vector<8x64xf32>
    %378 = vector.extract_strided_slice %265 {offsets = [1, 0], sizes = [1, 64], strides = [1, 1]} : vector<3x64xf32> to vector<1x64xf32>
    %379 = vector.extract_strided_slice %267 {offsets = [1, 0], sizes = [1, 64], strides = [1, 1]} : vector<3x64xf32> to vector<1x64xf32>
    %cst_196 = arith.constant dense<0.000000e+00> : vector<8xf32>
    %380 = vector.multi_reduction <add>, %377, %cst_196 [1] : vector<8x64xf32> to vector<8xf32>
    %381 = vector.shape_cast %380 : vector<8xf32> to vector<8x1xf32>
    %cst_197 = arith.constant 6.400000e+01 : f32
    %382 = vector.broadcast %cst_197 : f32 to vector<8x1xf32>
    %383 = arith.divf %381, %382 : vector<8x1xf32>
    %384 = vector.broadcast %383 : vector<8x1xf32> to vector<8x64xf32>
    %385 = arith.subf %377, %384 : vector<8x64xf32>
    %386 = arith.mulf %385, %385 : vector<8x64xf32>
    %cst_198 = arith.constant dense<0.000000e+00> : vector<8xf32>
    %387 = vector.multi_reduction <add>, %386, %cst_198 [1] : vector<8x64xf32> to vector<8xf32>
    %388 = vector.shape_cast %387 : vector<8xf32> to vector<8x1xf32>
    %cst_199 = arith.constant 6.400000e+01 : f32
    %389 = vector.broadcast %cst_199 : f32 to vector<8x1xf32>
    %390 = arith.divf %388, %389 : vector<8x1xf32>
    %cst_200 = arith.constant 9.99999974E-6 : f32
    %391 = vector.broadcast %cst_200 : f32 to vector<8x1xf32>
    %392 = arith.addf %390, %391 : vector<8x1xf32>
    %393 = math.rsqrt %392 : vector<8x1xf32>
    %394 = vector.broadcast %393 : vector<8x1xf32> to vector<8x64xf32>
    %395 = arith.mulf %385, %394 : vector<8x64xf32>
    %396 = vector.broadcast %378 : vector<1x64xf32> to vector<8x64xf32>
    %397 = arith.mulf %395, %396 : vector<8x64xf32>
    %398 = vector.broadcast %379 : vector<1x64xf32> to vector<8x64xf32>
    %399 = arith.addf %397, %398 : vector<8x64xf32>
    %400 = arith.truncf %399 : vector<8x64xf32> to vector<8x64xbf16>
    %c0_201 = arith.constant 0 : index
    %c0_202 = arith.constant 0 : index
    %c0_203 = arith.constant 0 : index
    %401 = vector.load %arg31[%c0_201, %c0_202, %c0_203] : memref<2x64x128xbf16, #tpu.memory_space<vmem>>, vector<1x64x128xbf16>
    %402 = vector.shape_cast %401 : vector<1x64x128xbf16> to vector<64x128xbf16>
    %cst_204 = arith.constant dense<0.000000e+00> : vector<8x128xf32>
    %403 = tpu.matmul %400, %402, %cst_204 {dimension_numbers = #tpu.dot_dimension_numbers<[1], [0], [0], [1], [0, 0, 1, 1], [], []>} : vector<8x64xbf16>, vector<64x128xbf16>, vector<8x128xf32> -> vector<8x128xf32>
    %c0_205 = arith.constant 0 : index
    %c0_206 = arith.constant 0 : index
    %c0_207 = arith.constant 0 : index
    %404 = vector.load %arg32[%c0_205, %c0_206, %c0_207] : memref<2x1x128xf32, #tpu.memory_space<vmem>>, vector<1x1x128xf32>
    %405 = vector.shape_cast %404 : vector<1x1x128xf32> to vector<1x128xf32>
    %406 = vector.broadcast %405 : vector<1x128xf32> to vector<8x128xf32>
    %407 = arith.addf %403, %406 : vector<8x128xf32>
    %cst_208 = arith.constant 0.000000e+00 : f32
    %408 = vector.broadcast %cst_208 : f32 to vector<8x128xf32>
    %409 = arith.maximumf %407, %408 : vector<8x128xf32>
    %410 = arith.truncf %409 : vector<8x128xf32> to vector<8x128xbf16>
    %c0_209 = arith.constant 0 : index
    %c0_210 = arith.constant 0 : index
    %c0_211 = arith.constant 0 : index
    %411 = vector.load %arg33[%c0_209, %c0_210, %c0_211] : memref<2x128x64xbf16, #tpu.memory_space<vmem>>, vector<1x128x64xbf16>
    %412 = vector.shape_cast %411 : vector<1x128x64xbf16> to vector<128x64xbf16>
    %cst_212 = arith.constant dense<0.000000e+00> : vector<8x64xf32>
    %413 = tpu.matmul %410, %412, %cst_212 {dimension_numbers = #tpu.dot_dimension_numbers<[1], [0], [0], [1], [0, 0, 1, 1], [], []>} : vector<8x128xbf16>, vector<128x64xbf16>, vector<8x64xf32> -> vector<8x64xf32>
    %c0_213 = arith.constant 0 : index
    %c0_214 = arith.constant 0 : index
    %c0_215 = arith.constant 0 : index
    %414 = vector.load %arg34[%c0_213, %c0_214, %c0_215] : memref<2x1x64xf32, #tpu.memory_space<vmem>>, vector<1x1x64xf32>
    %415 = vector.shape_cast %414 : vector<1x1x64xf32> to vector<1x64xf32>
    %416 = vector.broadcast %415 : vector<1x64xf32> to vector<8x64xf32>
    %417 = arith.addf %413, %416 : vector<8x64xf32>
    %418 = arith.addf %399, %417 : vector<8x64xf32>
    %419 = vector.extract_strided_slice %265 {offsets = [2, 0], sizes = [1, 64], strides = [1, 1]} : vector<3x64xf32> to vector<1x64xf32>
    %420 = vector.extract_strided_slice %267 {offsets = [2, 0], sizes = [1, 64], strides = [1, 1]} : vector<3x64xf32> to vector<1x64xf32>
    %cst_216 = arith.constant dense<0.000000e+00> : vector<8xf32>
    %421 = vector.multi_reduction <add>, %418, %cst_216 [1] : vector<8x64xf32> to vector<8xf32>
    %422 = vector.shape_cast %421 : vector<8xf32> to vector<8x1xf32>
    %cst_217 = arith.constant 6.400000e+01 : f32
    %423 = vector.broadcast %cst_217 : f32 to vector<8x1xf32>
    %424 = arith.divf %422, %423 : vector<8x1xf32>
    %425 = vector.broadcast %424 : vector<8x1xf32> to vector<8x64xf32>
    %426 = arith.subf %418, %425 : vector<8x64xf32>
    %427 = arith.mulf %426, %426 : vector<8x64xf32>
    %cst_218 = arith.constant dense<0.000000e+00> : vector<8xf32>
    %428 = vector.multi_reduction <add>, %427, %cst_218 [1] : vector<8x64xf32> to vector<8xf32>
    %429 = vector.shape_cast %428 : vector<8xf32> to vector<8x1xf32>
    %cst_219 = arith.constant 6.400000e+01 : f32
    %430 = vector.broadcast %cst_219 : f32 to vector<8x1xf32>
    %431 = arith.divf %429, %430 : vector<8x1xf32>
    %cst_220 = arith.constant 9.99999974E-6 : f32
    %432 = vector.broadcast %cst_220 : f32 to vector<8x1xf32>
    %433 = arith.addf %431, %432 : vector<8x1xf32>
    %434 = math.rsqrt %433 : vector<8x1xf32>
    %435 = vector.broadcast %434 : vector<8x1xf32> to vector<8x64xf32>
    %436 = arith.mulf %426, %435 : vector<8x64xf32>
    %437 = vector.broadcast %419 : vector<1x64xf32> to vector<8x64xf32>
    %438 = arith.mulf %436, %437 : vector<8x64xf32>
    %439 = vector.broadcast %420 : vector<1x64xf32> to vector<8x64xf32>
    %440 = arith.addf %438, %439 : vector<8x64xf32>
    %c1_221 = arith.constant 1 : index
    %c0_222 = arith.constant 0 : index
    %c0_223 = arith.constant 0 : index
    %441 = vector.load %arg35[%c1_221, %c0_222, %c0_223] : memref<2x3x64xf32, #tpu.memory_space<vmem>>, vector<1x3x64xf32>
    %442 = vector.shape_cast %441 : vector<1x3x64xf32> to vector<3x64xf32>
    %c1_224 = arith.constant 1 : index
    %c0_225 = arith.constant 0 : index
    %c0_226 = arith.constant 0 : index
    %443 = vector.load %arg36[%c1_224, %c0_225, %c0_226] : memref<2x3x64xf32, #tpu.memory_space<vmem>>, vector<1x3x64xf32>
    %444 = vector.shape_cast %443 : vector<1x3x64xf32> to vector<3x64xf32>
    %445 = arith.truncf %440 : vector<8x64xf32> to vector<8x64xbf16>
    %446 = vector.shape_cast %445 : vector<8x64xbf16> to vector<1x8x64xbf16>
    %447 = vector.shape_cast %446 : vector<1x8x64xbf16> to vector<1x8x64xbf16>
    %448 = vector.broadcast %447 : vector<1x8x64xbf16> to vector<4x8x64xbf16>
    %c1_227 = arith.constant 1 : index
    %c0_228 = arith.constant 0 : index
    %c0_229 = arith.constant 0 : index
    %c0_230 = arith.constant 0 : index
    %449 = vector.load %arg21[%c1_227, %c0_228, %c0_229, %c0_230] : memref<2x4x64x48xbf16, #tpu.memory_space<vmem>>, vector<1x4x64x48xbf16>
    %450 = vector.shape_cast %449 : vector<1x4x64x48xbf16> to vector<4x64x48xbf16>
    %c1_231 = arith.constant 1 : index
    %c0_232 = arith.constant 0 : index
    %c0_233 = arith.constant 0 : index
    %c0_234 = arith.constant 0 : index
    %451 = vector.load %arg22[%c1_231, %c0_232, %c0_233, %c0_234] : memref<2x4x1x48xf32, #tpu.memory_space<vmem>>, vector<1x4x1x48xf32>
    %452 = vector.shape_cast %451 : vector<1x4x1x48xf32> to vector<4x1x48xf32>
    %cst_235 = arith.constant dense<0.000000e+00> : vector<4x8x48xf32>
    %453 = tpu.matmul %448, %450, %cst_235 {dimension_numbers = #tpu.dot_dimension_numbers<[2], [1], [1], [2], [0, 0, 0, 1, 1, 2], [0], [0]>} : vector<4x8x64xbf16>, vector<4x64x48xbf16>, vector<4x8x48xf32> -> vector<4x8x48xf32>
    %454 = vector.broadcast %452 : vector<4x1x48xf32> to vector<4x8x48xf32>
    %455 = arith.addf %453, %454 : vector<4x8x48xf32>
    %456 = vector.extract_strided_slice %455 {offsets = [0, 0, 0], sizes = [4, 8, 16], strides = [1, 1, 1]} : vector<4x8x48xf32> to vector<4x8x16xf32>
    %457 = vector.extract_strided_slice %455 {offsets = [0, 0, 16], sizes = [4, 8, 16], strides = [1, 1, 1]} : vector<4x8x48xf32> to vector<4x8x16xf32>
    %458 = vector.extract_strided_slice %455 {offsets = [0, 0, 32], sizes = [4, 8, 16], strides = [1, 1, 1]} : vector<4x8x48xf32> to vector<4x8x16xf32>
    %c1_236 = arith.constant 1 : index
    %c0_237 = arith.constant 0 : index
    %c0_238 = arith.constant 0 : index
    %c0_239 = arith.constant 0 : index
    %459 = vector.load %arg23[%c1_236, %c0_237, %c0_238, %c0_239] : memref<2x4x16x64xbf16, #tpu.memory_space<vmem>>, vector<1x4x16x64xbf16>
    %460 = vector.shape_cast %459 : vector<1x4x16x64xbf16> to vector<4x16x64xbf16>
    %c1_240 = arith.constant 1 : index
    %c0_241 = arith.constant 0 : index
    %c0_242 = arith.constant 0 : index
    %461 = vector.load %arg24[%c1_240, %c0_241, %c0_242] : memref<2x1x64xf32, #tpu.memory_space<vmem>>, vector<1x1x64xf32>
    %462 = vector.shape_cast %461 : vector<1x1x64xf32> to vector<1x64xf32>
    %463 = arith.truncf %456 : vector<4x8x16xf32> to vector<4x8x16xbf16>
    %464 = arith.truncf %457 : vector<4x8x16xf32> to vector<4x8x16xbf16>
    %cst_243 = arith.constant dense<0.000000e+00> : vector<4x8x8xf32>
    %465 = tpu.matmul %463, %464, %cst_243 {dimension_numbers = #tpu.dot_dimension_numbers<[2], [2], [1], [1], [0, 0, 0, 1, 1, 1], [0], [0]>} : vector<4x8x16xbf16>, vector<4x8x16xbf16>, vector<4x8x8xf32> -> vector<4x8x8xf32>
    %466 = vector.broadcast %253 : vector<1x8x8xf32> to vector<4x8x8xf32>
    %467 = arith.addf %465, %466 : vector<4x8x8xf32>
    %cst_244 = arith.constant dense<0xFF800000> : vector<4x8xf32>
    %468 = vector.multi_reduction <maximumf>, %467, %cst_244 [2] : vector<4x8x8xf32> to vector<4x8xf32>
    %469 = vector.shape_cast %468 : vector<4x8xf32> to vector<4x8x1xf32>
    %470 = vector.broadcast %469 : vector<4x8x1xf32> to vector<4x8x8xf32>
    %471 = arith.subf %467, %470 : vector<4x8x8xf32>
    %472 = math.exp %471 : vector<4x8x8xf32>
    %cst_245 = arith.constant dense<0.000000e+00> : vector<4x8xf32>
    %473 = vector.multi_reduction <add>, %472, %cst_245 [2] : vector<4x8x8xf32> to vector<4x8xf32>
    %474 = vector.shape_cast %473 : vector<4x8xf32> to vector<4x8x1xf32>
    %475 = vector.broadcast %474 : vector<4x8x1xf32> to vector<4x8x8xf32>
    %476 = arith.divf %472, %475 : vector<4x8x8xf32>
    %477 = arith.truncf %476 : vector<4x8x8xf32> to vector<4x8x8xbf16>
    %478 = arith.truncf %458 : vector<4x8x16xf32> to vector<4x8x16xbf16>
    %cst_246 = arith.constant dense<0.000000e+00> : vector<4x8x16xf32>
    %479 = tpu.matmul %477, %478, %cst_246 {dimension_numbers = #tpu.dot_dimension_numbers<[2], [1], [1], [2], [0, 0, 0, 1, 1, 2], [0], [0]>} : vector<4x8x8xbf16>, vector<4x8x16xbf16>, vector<4x8x16xf32> -> vector<4x8x16xf32>
    %480 = arith.truncf %479 : vector<4x8x16xf32> to vector<4x8x16xbf16>
    %cst_247 = arith.constant dense<0.000000e+00> : vector<4x8x64xf32>
    %481 = tpu.matmul %480, %460, %cst_247 {dimension_numbers = #tpu.dot_dimension_numbers<[2], [1], [1], [2], [0, 0, 0, 1, 1, 2], [0], [0]>} : vector<4x8x16xbf16>, vector<4x16x64xbf16>, vector<4x8x64xf32> -> vector<4x8x64xf32>
    %cst_248 = arith.constant dense<0.000000e+00> : vector<8x64xf32>
    %482 = vector.multi_reduction <add>, %481, %cst_248 [0] : vector<4x8x64xf32> to vector<8x64xf32>
    %483 = vector.broadcast %462 : vector<1x64xf32> to vector<8x64xf32>
    %484 = arith.addf %482, %483 : vector<8x64xf32>
    %485 = arith.addf %440, %484 : vector<8x64xf32>
    %486 = vector.extract_strided_slice %442 {offsets = [0, 0], sizes = [1, 64], strides = [1, 1]} : vector<3x64xf32> to vector<1x64xf32>
    %487 = vector.extract_strided_slice %444 {offsets = [0, 0], sizes = [1, 64], strides = [1, 1]} : vector<3x64xf32> to vector<1x64xf32>
    %cst_249 = arith.constant dense<0.000000e+00> : vector<8xf32>
    %488 = vector.multi_reduction <add>, %485, %cst_249 [1] : vector<8x64xf32> to vector<8xf32>
    %489 = vector.shape_cast %488 : vector<8xf32> to vector<8x1xf32>
    %cst_250 = arith.constant 6.400000e+01 : f32
    %490 = vector.broadcast %cst_250 : f32 to vector<8x1xf32>
    %491 = arith.divf %489, %490 : vector<8x1xf32>
    %492 = vector.broadcast %491 : vector<8x1xf32> to vector<8x64xf32>
    %493 = arith.subf %485, %492 : vector<8x64xf32>
    %494 = arith.mulf %493, %493 : vector<8x64xf32>
    %cst_251 = arith.constant dense<0.000000e+00> : vector<8xf32>
    %495 = vector.multi_reduction <add>, %494, %cst_251 [1] : vector<8x64xf32> to vector<8xf32>
    %496 = vector.shape_cast %495 : vector<8xf32> to vector<8x1xf32>
    %cst_252 = arith.constant 6.400000e+01 : f32
    %497 = vector.broadcast %cst_252 : f32 to vector<8x1xf32>
    %498 = arith.divf %496, %497 : vector<8x1xf32>
    %cst_253 = arith.constant 9.99999974E-6 : f32
    %499 = vector.broadcast %cst_253 : f32 to vector<8x1xf32>
    %500 = arith.addf %498, %499 : vector<8x1xf32>
    %501 = math.rsqrt %500 : vector<8x1xf32>
    %502 = vector.broadcast %501 : vector<8x1xf32> to vector<8x64xf32>
    %503 = arith.mulf %493, %502 : vector<8x64xf32>
    %504 = vector.broadcast %486 : vector<1x64xf32> to vector<8x64xf32>
    %505 = arith.mulf %503, %504 : vector<8x64xf32>
    %506 = vector.broadcast %487 : vector<1x64xf32> to vector<8x64xf32>
    %507 = arith.addf %505, %506 : vector<8x64xf32>
    %508 = arith.truncf %507 : vector<8x64xf32> to vector<8x64xbf16>
    %509 = vector.shape_cast %508 : vector<8x64xbf16> to vector<1x8x64xbf16>
    %510 = vector.shape_cast %509 : vector<1x8x64xbf16> to vector<1x8x64xbf16>
    %511 = vector.broadcast %510 : vector<1x8x64xbf16> to vector<4x8x64xbf16>
    %c1_254 = arith.constant 1 : index
    %c0_255 = arith.constant 0 : index
    %c0_256 = arith.constant 0 : index
    %c0_257 = arith.constant 0 : index
    %512 = vector.load %arg25[%c1_254, %c0_255, %c0_256, %c0_257] : memref<2x4x64x16xbf16, #tpu.memory_space<vmem>>, vector<1x4x64x16xbf16>
    %513 = vector.shape_cast %512 : vector<1x4x64x16xbf16> to vector<4x64x16xbf16>
    %c1_258 = arith.constant 1 : index
    %c0_259 = arith.constant 0 : index
    %c0_260 = arith.constant 0 : index
    %c0_261 = arith.constant 0 : index
    %514 = vector.load %arg26[%c1_258, %c0_259, %c0_260, %c0_261] : memref<2x4x1x16xf32, #tpu.memory_space<vmem>>, vector<1x4x1x16xf32>
    %515 = vector.shape_cast %514 : vector<1x4x1x16xf32> to vector<4x1x16xf32>
    %cst_262 = arith.constant dense<0.000000e+00> : vector<4x8x16xf32>
    %516 = tpu.matmul %511, %513, %cst_262 {dimension_numbers = #tpu.dot_dimension_numbers<[2], [1], [1], [2], [0, 0, 0, 1, 1, 2], [0], [0]>} : vector<4x8x64xbf16>, vector<4x64x16xbf16>, vector<4x8x16xf32> -> vector<4x8x16xf32>
    %517 = vector.broadcast %515 : vector<4x1x16xf32> to vector<4x8x16xf32>
    %518 = arith.addf %516, %517 : vector<4x8x16xf32>
    %c1_263 = arith.constant 1 : index
    %c0_264 = arith.constant 0 : index
    %c0_265 = arith.constant 0 : index
    %c0_266 = arith.constant 0 : index
    %519 = vector.load %arg27[%c1_263, %c0_264, %c0_265, %c0_266] : memref<2x4x64x32xbf16, #tpu.memory_space<vmem>>, vector<1x4x64x32xbf16>
    %520 = vector.shape_cast %519 : vector<1x4x64x32xbf16> to vector<4x64x32xbf16>
    %c1_267 = arith.constant 1 : index
    %c0_268 = arith.constant 0 : index
    %c0_269 = arith.constant 0 : index
    %c0_270 = arith.constant 0 : index
    %521 = vector.load %arg28[%c1_267, %c0_268, %c0_269, %c0_270] : memref<2x4x1x32xf32, #tpu.memory_space<vmem>>, vector<1x4x1x32xf32>
    %522 = vector.shape_cast %521 : vector<1x4x1x32xf32> to vector<4x1x32xf32>
    %cst_271 = arith.constant dense<0.000000e+00> : vector<4x8x32xf32>
    %523 = tpu.matmul %252, %520, %cst_271 {dimension_numbers = #tpu.dot_dimension_numbers<[2], [1], [1], [2], [0, 0, 0, 1, 1, 2], [0], [0]>} : vector<4x8x64xbf16>, vector<4x64x32xbf16>, vector<4x8x32xf32> -> vector<4x8x32xf32>
    %524 = vector.broadcast %522 : vector<4x1x32xf32> to vector<4x8x32xf32>
    %525 = arith.addf %523, %524 : vector<4x8x32xf32>
    %526 = vector.extract_strided_slice %525 {offsets = [0, 0, 0], sizes = [4, 8, 16], strides = [1, 1, 1]} : vector<4x8x32xf32> to vector<4x8x16xf32>
    %527 = vector.extract_strided_slice %525 {offsets = [0, 0, 16], sizes = [4, 8, 16], strides = [1, 1, 1]} : vector<4x8x32xf32> to vector<4x8x16xf32>
    %c1_272 = arith.constant 1 : index
    %c0_273 = arith.constant 0 : index
    %c0_274 = arith.constant 0 : index
    %c0_275 = arith.constant 0 : index
    %528 = vector.load %arg29[%c1_272, %c0_273, %c0_274, %c0_275] : memref<2x4x16x64xbf16, #tpu.memory_space<vmem>>, vector<1x4x16x64xbf16>
    %529 = vector.shape_cast %528 : vector<1x4x16x64xbf16> to vector<4x16x64xbf16>
    %c1_276 = arith.constant 1 : index
    %c0_277 = arith.constant 0 : index
    %c0_278 = arith.constant 0 : index
    %530 = vector.load %arg30[%c1_276, %c0_277, %c0_278] : memref<2x1x64xf32, #tpu.memory_space<vmem>>, vector<1x1x64xf32>
    %531 = vector.shape_cast %530 : vector<1x1x64xf32> to vector<1x64xf32>
    %532 = arith.truncf %518 : vector<4x8x16xf32> to vector<4x8x16xbf16>
    %533 = arith.truncf %526 : vector<4x8x16xf32> to vector<4x8x16xbf16>
    %cst_279 = arith.constant dense<0.000000e+00> : vector<4x8x8xf32>
    %534 = tpu.matmul %532, %533, %cst_279 {dimension_numbers = #tpu.dot_dimension_numbers<[2], [2], [1], [1], [0, 0, 0, 1, 1, 1], [0], [0]>} : vector<4x8x16xbf16>, vector<4x8x16xbf16>, vector<4x8x8xf32> -> vector<4x8x8xf32>
    %535 = vector.broadcast %0 : vector<1x1x8xf32> to vector<4x8x8xf32>
    %536 = arith.addf %534, %535 : vector<4x8x8xf32>
    %cst_280 = arith.constant dense<0xFF800000> : vector<4x8xf32>
    %537 = vector.multi_reduction <maximumf>, %536, %cst_280 [2] : vector<4x8x8xf32> to vector<4x8xf32>
    %538 = vector.shape_cast %537 : vector<4x8xf32> to vector<4x8x1xf32>
    %539 = vector.broadcast %538 : vector<4x8x1xf32> to vector<4x8x8xf32>
    %540 = arith.subf %536, %539 : vector<4x8x8xf32>
    %541 = math.exp %540 : vector<4x8x8xf32>
    %cst_281 = arith.constant dense<0.000000e+00> : vector<4x8xf32>
    %542 = vector.multi_reduction <add>, %541, %cst_281 [2] : vector<4x8x8xf32> to vector<4x8xf32>
    %543 = vector.shape_cast %542 : vector<4x8xf32> to vector<4x8x1xf32>
    %544 = vector.broadcast %543 : vector<4x8x1xf32> to vector<4x8x8xf32>
    %545 = arith.divf %541, %544 : vector<4x8x8xf32>
    %546 = arith.truncf %545 : vector<4x8x8xf32> to vector<4x8x8xbf16>
    %547 = arith.truncf %527 : vector<4x8x16xf32> to vector<4x8x16xbf16>
    %cst_282 = arith.constant dense<0.000000e+00> : vector<4x8x16xf32>
    %548 = tpu.matmul %546, %547, %cst_282 {dimension_numbers = #tpu.dot_dimension_numbers<[2], [1], [1], [2], [0, 0, 0, 1, 1, 2], [0], [0]>} : vector<4x8x8xbf16>, vector<4x8x16xbf16>, vector<4x8x16xf32> -> vector<4x8x16xf32>
    %549 = arith.truncf %548 : vector<4x8x16xf32> to vector<4x8x16xbf16>
    %cst_283 = arith.constant dense<0.000000e+00> : vector<4x8x64xf32>
    %550 = tpu.matmul %549, %529, %cst_283 {dimension_numbers = #tpu.dot_dimension_numbers<[2], [1], [1], [2], [0, 0, 0, 1, 1, 2], [0], [0]>} : vector<4x8x16xbf16>, vector<4x16x64xbf16>, vector<4x8x64xf32> -> vector<4x8x64xf32>
    %cst_284 = arith.constant dense<0.000000e+00> : vector<8x64xf32>
    %551 = vector.multi_reduction <add>, %550, %cst_284 [0] : vector<4x8x64xf32> to vector<8x64xf32>
    %552 = vector.broadcast %531 : vector<1x64xf32> to vector<8x64xf32>
    %553 = arith.addf %551, %552 : vector<8x64xf32>
    %554 = arith.addf %507, %553 : vector<8x64xf32>
    %555 = vector.extract_strided_slice %442 {offsets = [1, 0], sizes = [1, 64], strides = [1, 1]} : vector<3x64xf32> to vector<1x64xf32>
    %556 = vector.extract_strided_slice %444 {offsets = [1, 0], sizes = [1, 64], strides = [1, 1]} : vector<3x64xf32> to vector<1x64xf32>
    %cst_285 = arith.constant dense<0.000000e+00> : vector<8xf32>
    %557 = vector.multi_reduction <add>, %554, %cst_285 [1] : vector<8x64xf32> to vector<8xf32>
    %558 = vector.shape_cast %557 : vector<8xf32> to vector<8x1xf32>
    %cst_286 = arith.constant 6.400000e+01 : f32
    %559 = vector.broadcast %cst_286 : f32 to vector<8x1xf32>
    %560 = arith.divf %558, %559 : vector<8x1xf32>
    %561 = vector.broadcast %560 : vector<8x1xf32> to vector<8x64xf32>
    %562 = arith.subf %554, %561 : vector<8x64xf32>
    %563 = arith.mulf %562, %562 : vector<8x64xf32>
    %cst_287 = arith.constant dense<0.000000e+00> : vector<8xf32>
    %564 = vector.multi_reduction <add>, %563, %cst_287 [1] : vector<8x64xf32> to vector<8xf32>
    %565 = vector.shape_cast %564 : vector<8xf32> to vector<8x1xf32>
    %cst_288 = arith.constant 6.400000e+01 : f32
    %566 = vector.broadcast %cst_288 : f32 to vector<8x1xf32>
    %567 = arith.divf %565, %566 : vector<8x1xf32>
    %cst_289 = arith.constant 9.99999974E-6 : f32
    %568 = vector.broadcast %cst_289 : f32 to vector<8x1xf32>
    %569 = arith.addf %567, %568 : vector<8x1xf32>
    %570 = math.rsqrt %569 : vector<8x1xf32>
    %571 = vector.broadcast %570 : vector<8x1xf32> to vector<8x64xf32>
    %572 = arith.mulf %562, %571 : vector<8x64xf32>
    %573 = vector.broadcast %555 : vector<1x64xf32> to vector<8x64xf32>
    %574 = arith.mulf %572, %573 : vector<8x64xf32>
    %575 = vector.broadcast %556 : vector<1x64xf32> to vector<8x64xf32>
    %576 = arith.addf %574, %575 : vector<8x64xf32>
    %577 = arith.truncf %576 : vector<8x64xf32> to vector<8x64xbf16>
    %c1_290 = arith.constant 1 : index
    %c0_291 = arith.constant 0 : index
    %c0_292 = arith.constant 0 : index
    %578 = vector.load %arg31[%c1_290, %c0_291, %c0_292] : memref<2x64x128xbf16, #tpu.memory_space<vmem>>, vector<1x64x128xbf16>
    %579 = vector.shape_cast %578 : vector<1x64x128xbf16> to vector<64x128xbf16>
    %cst_293 = arith.constant dense<0.000000e+00> : vector<8x128xf32>
    %580 = tpu.matmul %577, %579, %cst_293 {dimension_numbers = #tpu.dot_dimension_numbers<[1], [0], [0], [1], [0, 0, 1, 1], [], []>} : vector<8x64xbf16>, vector<64x128xbf16>, vector<8x128xf32> -> vector<8x128xf32>
    %c1_294 = arith.constant 1 : index
    %c0_295 = arith.constant 0 : index
    %c0_296 = arith.constant 0 : index
    %581 = vector.load %arg32[%c1_294, %c0_295, %c0_296] : memref<2x1x128xf32, #tpu.memory_space<vmem>>, vector<1x1x128xf32>
    %582 = vector.shape_cast %581 : vector<1x1x128xf32> to vector<1x128xf32>
    %583 = vector.broadcast %582 : vector<1x128xf32> to vector<8x128xf32>
    %584 = arith.addf %580, %583 : vector<8x128xf32>
    %cst_297 = arith.constant 0.000000e+00 : f32
    %585 = vector.broadcast %cst_297 : f32 to vector<8x128xf32>
    %586 = arith.maximumf %584, %585 : vector<8x128xf32>
    %587 = arith.truncf %586 : vector<8x128xf32> to vector<8x128xbf16>
    %c1_298 = arith.constant 1 : index
    %c0_299 = arith.constant 0 : index
    %c0_300 = arith.constant 0 : index
    %588 = vector.load %arg33[%c1_298, %c0_299, %c0_300] : memref<2x128x64xbf16, #tpu.memory_space<vmem>>, vector<1x128x64xbf16>
    %589 = vector.shape_cast %588 : vector<1x128x64xbf16> to vector<128x64xbf16>
    %cst_301 = arith.constant dense<0.000000e+00> : vector<8x64xf32>
    %590 = tpu.matmul %587, %589, %cst_301 {dimension_numbers = #tpu.dot_dimension_numbers<[1], [0], [0], [1], [0, 0, 1, 1], [], []>} : vector<8x128xbf16>, vector<128x64xbf16>, vector<8x64xf32> -> vector<8x64xf32>
    %c1_302 = arith.constant 1 : index
    %c0_303 = arith.constant 0 : index
    %c0_304 = arith.constant 0 : index
    %591 = vector.load %arg34[%c1_302, %c0_303, %c0_304] : memref<2x1x64xf32, #tpu.memory_space<vmem>>, vector<1x1x64xf32>
    %592 = vector.shape_cast %591 : vector<1x1x64xf32> to vector<1x64xf32>
    %593 = vector.broadcast %592 : vector<1x64xf32> to vector<8x64xf32>
    %594 = arith.addf %590, %593 : vector<8x64xf32>
    %595 = arith.addf %576, %594 : vector<8x64xf32>
    %596 = vector.extract_strided_slice %442 {offsets = [2, 0], sizes = [1, 64], strides = [1, 1]} : vector<3x64xf32> to vector<1x64xf32>
    %597 = vector.extract_strided_slice %444 {offsets = [2, 0], sizes = [1, 64], strides = [1, 1]} : vector<3x64xf32> to vector<1x64xf32>
    %cst_305 = arith.constant dense<0.000000e+00> : vector<8xf32>
    %598 = vector.multi_reduction <add>, %595, %cst_305 [1] : vector<8x64xf32> to vector<8xf32>
    %599 = vector.shape_cast %598 : vector<8xf32> to vector<8x1xf32>
    %cst_306 = arith.constant 6.400000e+01 : f32
    %600 = vector.broadcast %cst_306 : f32 to vector<8x1xf32>
    %601 = arith.divf %599, %600 : vector<8x1xf32>
    %602 = vector.broadcast %601 : vector<8x1xf32> to vector<8x64xf32>
    %603 = arith.subf %595, %602 : vector<8x64xf32>
    %604 = arith.mulf %603, %603 : vector<8x64xf32>
    %cst_307 = arith.constant dense<0.000000e+00> : vector<8xf32>
    %605 = vector.multi_reduction <add>, %604, %cst_307 [1] : vector<8x64xf32> to vector<8xf32>
    %606 = vector.shape_cast %605 : vector<8xf32> to vector<8x1xf32>
    %cst_308 = arith.constant 6.400000e+01 : f32
    %607 = vector.broadcast %cst_308 : f32 to vector<8x1xf32>
    %608 = arith.divf %606, %607 : vector<8x1xf32>
    %cst_309 = arith.constant 9.99999974E-6 : f32
    %609 = vector.broadcast %cst_309 : f32 to vector<8x1xf32>
    %610 = arith.addf %608, %609 : vector<8x1xf32>
    %611 = math.rsqrt %610 : vector<8x1xf32>
    %612 = vector.broadcast %611 : vector<8x1xf32> to vector<8x64xf32>
    %613 = arith.mulf %603, %612 : vector<8x64xf32>
    %614 = vector.broadcast %596 : vector<1x64xf32> to vector<8x64xf32>
    %615 = arith.mulf %613, %614 : vector<8x64xf32>
    %616 = vector.broadcast %597 : vector<1x64xf32> to vector<8x64xf32>
    %617 = arith.addf %615, %616 : vector<8x64xf32>
    %c0_310 = arith.constant 0 : index
    %c0_311 = arith.constant 0 : index
    %618 = vector.load %arg37[%c0_310, %c0_311] : memref<1x64xf32, #tpu.memory_space<vmem>>, vector<1x64xf32>
    %c0_312 = arith.constant 0 : index
    %c0_313 = arith.constant 0 : index
    %619 = vector.load %arg38[%c0_312, %c0_313] : memref<1x64xf32, #tpu.memory_space<vmem>>, vector<1x64xf32>
    %cst_314 = arith.constant dense<0.000000e+00> : vector<8xf32>
    %620 = vector.multi_reduction <add>, %617, %cst_314 [1] : vector<8x64xf32> to vector<8xf32>
    %621 = vector.shape_cast %620 : vector<8xf32> to vector<8x1xf32>
    %cst_315 = arith.constant 6.400000e+01 : f32
    %622 = vector.broadcast %cst_315 : f32 to vector<8x1xf32>
    %623 = arith.divf %621, %622 : vector<8x1xf32>
    %624 = vector.broadcast %623 : vector<8x1xf32> to vector<8x64xf32>
    %625 = arith.subf %617, %624 : vector<8x64xf32>
    %626 = arith.mulf %625, %625 : vector<8x64xf32>
    %cst_316 = arith.constant dense<0.000000e+00> : vector<8xf32>
    %627 = vector.multi_reduction <add>, %626, %cst_316 [1] : vector<8x64xf32> to vector<8xf32>
    %628 = vector.shape_cast %627 : vector<8xf32> to vector<8x1xf32>
    %cst_317 = arith.constant 6.400000e+01 : f32
    %629 = vector.broadcast %cst_317 : f32 to vector<8x1xf32>
    %630 = arith.divf %628, %629 : vector<8x1xf32>
    %cst_318 = arith.constant 9.99999974E-6 : f32
    %631 = vector.broadcast %cst_318 : f32 to vector<8x1xf32>
    %632 = arith.addf %630, %631 : vector<8x1xf32>
    %633 = math.rsqrt %632 : vector<8x1xf32>
    %634 = vector.broadcast %633 : vector<8x1xf32> to vector<8x64xf32>
    %635 = arith.mulf %625, %634 : vector<8x64xf32>
    %636 = vector.broadcast %618 : vector<1x64xf32> to vector<8x64xf32>
    %637 = arith.mulf %635, %636 : vector<8x64xf32>
    %638 = vector.broadcast %619 : vector<1x64xf32> to vector<8x64xf32>
    %639 = arith.addf %637, %638 : vector<8x64xf32>
    %640 = arith.truncf %639 : vector<8x64xf32> to vector<8x64xbf16>
    %c0_319 = arith.constant 0 : index
    %c0_320 = arith.constant 0 : index
    %641 = vector.load %arg39[%c0_319, %c0_320] : memref<64x32xbf16, #tpu.memory_space<vmem>>, vector<64x32xbf16>
    %cst_321 = arith.constant dense<0.000000e+00> : vector<8x32xf32>
    %642 = tpu.matmul %640, %641, %cst_321 {dimension_numbers = #tpu.dot_dimension_numbers<[1], [0], [0], [1], [0, 0, 1, 1], [], []>} : vector<8x64xbf16>, vector<64x32xbf16>, vector<8x32xf32> -> vector<8x32xf32>
    %c0_322 = arith.constant 0 : index
    %c0_323 = arith.constant 0 : index
    %643 = vector.load %arg40[%c0_322, %c0_323] : memref<1x32xf32, #tpu.memory_space<vmem>>, vector<1x32xf32>
    %644 = vector.broadcast %643 : vector<1x32xf32> to vector<8x32xf32>
    %645 = arith.addf %642, %644 : vector<8x32xf32>
    %c0_324 = arith.constant 0 : index
    %c0_325 = arith.constant 0 : index
    %646 = vector.load %arg41[%c0_324, %c0_325] : memref<8x32xf32, #tpu.memory_space<vmem>>, vector<8x32xf32>
    tpu.vector_store %arg41[%c0_324, %c0_325], %645 {strides = array<i32>} : memref<8x32xf32, #tpu.memory_space<vmem>>, vector<8x32xf32>,
    return
  }
  func.func @transform_0(%arg0: i32) -> (i32, i32) {
    %c0_i32 = arith.constant 0 : i32
    %c0_i32_0 = arith.constant 0 : i32
    return %arg0, %c0_i32 : i32, i32
  }
  func.func @transform_1(%arg0: i32) -> (i32, i32) {
    %c0_i32 = arith.constant 0 : i32
    %c0_i32_0 = arith.constant 0 : i32
    return %arg0, %c0_i32 : i32, i32
  }
  func.func @transform_2(%arg0: i32) -> (i32, i32, i32) {
    %c0_i32 = arith.constant 0 : i32
    %c0_i32_0 = arith.constant 0 : i32
    %c0_i32_1 = arith.constant 0 : i32
    return %arg0, %c0_i32, %c0_i32_0 : i32, i32, i32
  }
  func.func @transform_3(%arg0: i32) -> (i32, i32, i32) {
    %c0_i32 = arith.constant 0 : i32
    %c0_i32_0 = arith.constant 0 : i32
    %c0_i32_1 = arith.constant 0 : i32
    return %arg0, %c0_i32, %c0_i32_0 : i32, i32, i32
  }
  func.func @transform_4(%arg0: i32) -> (i32, i32) {
    %c0_i32 = arith.constant 0 : i32
    %c0_i32_0 = arith.constant 0 : i32
    %c0_i32_1 = arith.constant 0 : i32
    return %c0_i32, %c0_i32_0 : i32, i32
  }
  func.func @transform_5(%arg0: i32) -> (i32, i32) {
    %c0_i32 = arith.constant 0 : i32
    %c0_i32_0 = arith.constant 0 : i32
    %c0_i32_1 = arith.constant 0 : i32
    return %c0_i32, %c0_i32_0 : i32, i32
  }
  func.func @transform_6(%arg0: i32) -> (i32, i32) {
    %c0_i32 = arith.constant 0 : i32
    %c0_i32_0 = arith.constant 0 : i32
    %c0_i32_1 = arith.constant 0 : i32
    return %c0_i32, %c0_i32_0 : i32, i32
  }
  func.func @transform_7(%arg0: i32) -> (i32, i32) {
    %c0_i32 = arith.constant 0 : i32
    %c0_i32_0 = arith.constant 0 : i32
    %c0_i32_1 = arith.constant 0 : i32
    return %c0_i32, %c0_i32_0 : i32, i32
  }
  func.func @transform_8(%arg0: i32) -> (i32, i32, i32, i32) {
    %c0_i32 = arith.constant 0 : i32
    %c0_i32_0 = arith.constant 0 : i32
    %c0_i32_1 = arith.constant 0 : i32
    %c0_i32_2 = arith.constant 0 : i32
    %c0_i32_3 = arith.constant 0 : i32
    return %c0_i32, %c0_i32_0, %c0_i32_1, %c0_i32_2 : i32, i32, i32, i32
  }
  func.func @transform_9(%arg0: i32) -> (i32, i32, i32, i32) {
    %c0_i32 = arith.constant 0 : i32
    %c0_i32_0 = arith.constant 0 : i32
    %c0_i32_1 = arith.constant 0 : i32
    %c0_i32_2 = arith.constant 0 : i32
    %c0_i32_3 = arith.constant 0 : i32
    return %c0_i32, %c0_i32_0, %c0_i32_1, %c0_i32_2 : i32, i32, i32, i32
  }
  func.func @transform_10(%arg0: i32) -> (i32, i32, i32, i32) {
    %c0_i32 = arith.constant 0 : i32
    %c0_i32_0 = arith.constant 0 : i32
    %c0_i32_1 = arith.constant 0 : i32
    %c0_i32_2 = arith.constant 0 : i32
    %c0_i32_3 = arith.constant 0 : i32
    return %c0_i32, %c0_i32_0, %c0_i32_1, %c0_i32_2 : i32, i32, i32, i32
  }
  func.func @transform_11(%arg0: i32) -> (i32, i32, i32) {
    %c0_i32 = arith.constant 0 : i32
    %c0_i32_0 = arith.constant 0 : i32
    %c0_i32_1 = arith.constant 0 : i32
    %c0_i32_2 = arith.constant 0 : i32
    return %c0_i32, %c0_i32_0, %c0_i32_1 : i32, i32, i32
  }
  func.func @transform_12(%arg0: i32) -> (i32, i32, i32) {
    %c0_i32 = arith.constant 0 : i32
    %c0_i32_0 = arith.constant 0 : i32
    %c0_i32_1 = arith.constant 0 : i32
    %c0_i32_2 = arith.constant 0 : i32
    return %c0_i32, %c0_i32_0, %c0_i32_1 : i32, i32, i32
  }
  func.func @transform_13(%arg0: i32) -> (i32, i32, i32) {
    %c0_i32 = arith.constant 0 : i32
    %c0_i32_0 = arith.constant 0 : i32
    %c0_i32_1 = arith.constant 0 : i32
    %c0_i32_2 = arith.constant 0 : i32
    return %c0_i32, %c0_i32_0, %c0_i32_1 : i32, i32, i32
  }
  func.func @transform_14(%arg0: i32) -> (i32, i32, i32) {
    %c0_i32 = arith.constant 0 : i32
    %c0_i32_0 = arith.constant 0 : i32
    %c0_i32_1 = arith.constant 0 : i32
    %c0_i32_2 = arith.constant 0 : i32
    return %c0_i32, %c0_i32_0, %c0_i32_1 : i32, i32, i32
  }
  func.func @transform_15(%arg0: i32) -> (i32, i32, i32) {
    %c0_i32 = arith.constant 0 : i32
    %c0_i32_0 = arith.constant 0 : i32
    %c0_i32_1 = arith.constant 0 : i32
    %c0_i32_2 = arith.constant 0 : i32
    return %c0_i32, %c0_i32_0, %c0_i32_1 : i32, i32, i32
  }
  func.func @transform_16(%arg0: i32) -> (i32, i32, i32) {
    %c0_i32 = arith.constant 0 : i32
    %c0_i32_0 = arith.constant 0 : i32
    %c0_i32_1 = arith.constant 0 : i32
    %c0_i32_2 = arith.constant 0 : i32
    return %c0_i32, %c0_i32_0, %c0_i32_1 : i32, i32, i32
  }
  func.func @transform_17(%arg0: i32) -> (i32, i32, i32) {
    %c0_i32 = arith.constant 0 : i32
    %c0_i32_0 = arith.constant 0 : i32
    %c0_i32_1 = arith.constant 0 : i32
    %c0_i32_2 = arith.constant 0 : i32
    return %c0_i32, %c0_i32_0, %c0_i32_1 : i32, i32, i32
  }
  func.func @transform_18(%arg0: i32) -> (i32, i32) {
    %c0_i32 = arith.constant 0 : i32
    %c0_i32_0 = arith.constant 0 : i32
    %c0_i32_1 = arith.constant 0 : i32
    return %c0_i32, %c0_i32_0 : i32, i32
  }
  func.func @transform_19(%arg0: i32) -> (i32, i32) {
    %c0_i32 = arith.constant 0 : i32
    %c0_i32_0 = arith.constant 0 : i32
    %c0_i32_1 = arith.constant 0 : i32
    return %c0_i32, %c0_i32_0 : i32, i32
  }
  func.func @transform_20(%arg0: i32) -> (i32, i32, i32, i32) {
    %c0_i32 = arith.constant 0 : i32
    %c0_i32_0 = arith.constant 0 : i32
    %c0_i32_1 = arith.constant 0 : i32
    %c0_i32_2 = arith.constant 0 : i32
    %c0_i32_3 = arith.constant 0 : i32
    return %c0_i32, %c0_i32_0, %c0_i32_1, %c0_i32_2 : i32, i32, i32, i32
  }
  func.func @transform_21(%arg0: i32) -> (i32, i32, i32, i32) {
    %c0_i32 = arith.constant 0 : i32
    %c0_i32_0 = arith.constant 0 : i32
    %c0_i32_1 = arith.constant 0 : i32
    %c0_i32_2 = arith.constant 0 : i32
    %c0_i32_3 = arith.constant 0 : i32
    return %c0_i32, %c0_i32_0, %c0_i32_1, %c0_i32_2 : i32, i32, i32, i32
  }
  func.func @transform_22(%arg0: i32) -> (i32, i32, i32, i32) {
    %c0_i32 = arith.constant 0 : i32
    %c0_i32_0 = arith.constant 0 : i32
    %c0_i32_1 = arith.constant 0 : i32
    %c0_i32_2 = arith.constant 0 : i32
    %c0_i32_3 = arith.constant 0 : i32
    return %c0_i32, %c0_i32_0, %c0_i32_1, %c0_i32_2 : i32, i32, i32, i32
  }
  func.func @transform_23(%arg0: i32) -> (i32, i32, i32) {
    %c0_i32 = arith.constant 0 : i32
    %c0_i32_0 = arith.constant 0 : i32
    %c0_i32_1 = arith.constant 0 : i32
    %c0_i32_2 = arith.constant 0 : i32
    return %c0_i32, %c0_i32_0, %c0_i32_1 : i32, i32, i32
  }
  func.func @transform_24(%arg0: i32) -> (i32, i32, i32, i32) {
    %c0_i32 = arith.constant 0 : i32
    %c0_i32_0 = arith.constant 0 : i32
    %c0_i32_1 = arith.constant 0 : i32
    %c0_i32_2 = arith.constant 0 : i32
    %c0_i32_3 = arith.constant 0 : i32
    return %c0_i32, %c0_i32_0, %c0_i32_1, %c0_i32_2 : i32, i32, i32, i32
  }
  func.func @transform_25(%arg0: i32) -> (i32, i32, i32, i32) {
    %c0_i32 = arith.constant 0 : i32
    %c0_i32_0 = arith.constant 0 : i32
    %c0_i32_1 = arith.constant 0 : i32
    %c0_i32_2 = arith.constant 0 : i32
    %c0_i32_3 = arith.constant 0 : i32
    return %c0_i32, %c0_i32_0, %c0_i32_1, %c0_i32_2 : i32, i32, i32, i32
  }
  func.func @transform_26(%arg0: i32) -> (i32, i32, i32, i32) {
    %c0_i32 = arith.constant 0 : i32
    %c0_i32_0 = arith.constant 0 : i32
    %c0_i32_1 = arith.constant 0 : i32
    %c0_i32_2 = arith.constant 0 : i32
    %c0_i32_3 = arith.constant 0 : i32
    return %c0_i32, %c0_i32_0, %c0_i32_1, %c0_i32_2 : i32, i32, i32, i32
  }
  func.func @transform_27(%arg0: i32) -> (i32, i32, i32, i32) {
    %c0_i32 = arith.constant 0 : i32
    %c0_i32_0 = arith.constant 0 : i32
    %c0_i32_1 = arith.constant 0 : i32
    %c0_i32_2 = arith.constant 0 : i32
    %c0_i32_3 = arith.constant 0 : i32
    return %c0_i32, %c0_i32_0, %c0_i32_1, %c0_i32_2 : i32, i32, i32, i32
  }
  func.func @transform_28(%arg0: i32) -> (i32, i32, i32, i32) {
    %c0_i32 = arith.constant 0 : i32
    %c0_i32_0 = arith.constant 0 : i32
    %c0_i32_1 = arith.constant 0 : i32
    %c0_i32_2 = arith.constant 0 : i32
    %c0_i32_3 = arith.constant 0 : i32
    return %c0_i32, %c0_i32_0, %c0_i32_1, %c0_i32_2 : i32, i32, i32, i32
  }
  func.func @transform_29(%arg0: i32) -> (i32, i32, i32) {
    %c0_i32 = arith.constant 0 : i32
    %c0_i32_0 = arith.constant 0 : i32
    %c0_i32_1 = arith.constant 0 : i32
    %c0_i32_2 = arith.constant 0 : i32
    return %c0_i32, %c0_i32_0, %c0_i32_1 : i32, i32, i32
  }
  func.func @transform_30(%arg0: i32) -> (i32, i32, i32) {
    %c0_i32 = arith.constant 0 : i32
    %c0_i32_0 = arith.constant 0 : i32
    %c0_i32_1 = arith.constant 0 : i32
    %c0_i32_2 = arith.constant 0 : i32
    return %c0_i32, %c0_i32_0, %c0_i32_1 : i32, i32, i32
  }
  func.func @transform_31(%arg0: i32) -> (i32, i32, i32) {
    %c0_i32 = arith.constant 0 : i32
    %c0_i32_0 = arith.constant 0 : i32
    %c0_i32_1 = arith.constant 0 : i32
    %c0_i32_2 = arith.constant 0 : i32
    return %c0_i32, %c0_i32_0, %c0_i32_1 : i32, i32, i32
  }
  func.func @transform_32(%arg0: i32) -> (i32, i32, i32) {
    %c0_i32 = arith.constant 0 : i32
    %c0_i32_0 = arith.constant 0 : i32
    %c0_i32_1 = arith.constant 0 : i32
    %c0_i32_2 = arith.constant 0 : i32
    return %c0_i32, %c0_i32_0, %c0_i32_1 : i32, i32, i32
  }
  func.func @transform_33(%arg0: i32) -> (i32, i32, i32) {
    %c0_i32 = arith.constant 0 : i32
    %c0_i32_0 = arith.constant 0 : i32
    %c0_i32_1 = arith.constant 0 : i32
    %c0_i32_2 = arith.constant 0 : i32
    return %c0_i32, %c0_i32_0, %c0_i32_1 : i32, i32, i32
  }
  func.func @transform_34(%arg0: i32) -> (i32, i32, i32) {
    %c0_i32 = arith.constant 0 : i32
    %c0_i32_0 = arith.constant 0 : i32
    %c0_i32_1 = arith.constant 0 : i32
    %c0_i32_2 = arith.constant 0 : i32
    return %c0_i32, %c0_i32_0, %c0_i32_1 : i32, i32, i32
  }
  func.func @transform_35(%arg0: i32) -> (i32, i32, i32) {
    %c0_i32 = arith.constant 0 : i32
    %c0_i32_0 = arith.constant 0 : i32
    %c0_i32_1 = arith.constant 0 : i32
    %c0_i32_2 = arith.constant 0 : i32
    return %c0_i32, %c0_i32_0, %c0_i32_1 : i32, i32, i32
  }
  func.func @transform_36(%arg0: i32) -> (i32, i32) {
    %c0_i32 = arith.constant 0 : i32
    %c0_i32_0 = arith.constant 0 : i32
    %c0_i32_1 = arith.constant 0 : i32
    return %c0_i32, %c0_i32_0 : i32, i32
  }
  func.func @transform_37(%arg0: i32) -> (i32, i32) {
    %c0_i32 = arith.constant 0 : i32
    %c0_i32_0 = arith.constant 0 : i32
    %c0_i32_1 = arith.constant 0 : i32
    return %c0_i32, %c0_i32_0 : i32, i32
  }
  func.func @transform_38(%arg0: i32) -> (i32, i32) {
    %c0_i32 = arith.constant 0 : i32
    %c0_i32_0 = arith.constant 0 : i32
    %c0_i32_1 = arith.constant 0 : i32
    return %c0_i32, %c0_i32_0 : i32, i32
  }
  func.func @transform_39(%arg0: i32) -> (i32, i32) {
    %c0_i32 = arith.constant 0 : i32
    %c0_i32_0 = arith.constant 0 : i32
    %c0_i32_1 = arith.constant 0 : i32
    return %c0_i32, %c0_i32_0 : i32, i32
  }
  func.func @transform_40(%arg0: i32) -> (i32, i32) {
    %c0_i32 = arith.constant 0 : i32
    %c0_i32_0 = arith.constant 0 : i32
    return %arg0, %c0_i32 : i32, i32
  }
}

</mosaic_0001>

<bundles_post_ra>
// kernel: transformer_forward.1
= control target key start
LH: loop header
LB: loop body
LE: loop exit
PB: predicated region body
PF: predicated region fallthrough
CT: control target
= control target key end

     0   :  { %s11748_s6 = smov 1   ;;  %s11749_s10 = smov 2   ;;  %s13430_s0 = inlined_call_operand.smem [shape: u32[41], index: -1, kind: input, shape index: {}] }
   0x1   :  { %s11802_s5 = sld [smem:[%s13430_s0]]   ;;  %s11750_s14 = smov 3  }
   0x2   :  { %s11807_s9 = sld [smem:[%s13430_s0 + %s11748_s6]]   ;;  %s11751_s18 = smov 4  }
   0x3   :  { %s11812_s13 = sld [smem:[%s13430_s0 + %s11749_s10]]   ;;  %s11752_s22 = smov 5  }
   0x4   :  { %s11817_s17 = sld [smem:[%s13430_s0 + %s11750_s14]]   ;;  %s11753_s26 = smov 6  }
   0x5   :  { %s11822_s21 = sld [smem:[%s13430_s0 + %s11751_s18]]   ;;  %s11754_s30 = smov 7  }
   0x6   :  { %s11827_s25 = sld [smem:[%s13430_s0 + %s11752_s22]]   ;;  %s11755_s4 = smov 8  }
   0x7   :  { %13469 = sst [smem:[#allocation5_spill]] %s11802_s5  ;;  %s11756_s10 = smov 9  }
   0x8   :  { %13470 = sst [smem:[#allocation6_spill]] %s11807_s9  ;;  %s11757_s15 = smov 10  }
   0x9   :  { %13471 = sst [smem:[#allocation7_spill]] %s11812_s13  ;;  %s11758_s20 = smov 11  }
   0xa   :  { %13472 = sst [smem:[#allocation8_spill]] %s11817_s17  ;;  %s11760_s1 = smov 13  }
   0xb   :  { %13473 = sst [smem:[#allocation9_spill]] %s11822_s21  ;;  %s11761_s7 = smov 14  }
   0xc   :  { %13474 = sst [smem:[#allocation10_spill]] %s11827_s25  ;;  %s11763_s22 = smov 16  }
   0xd   :  { %s11832_s29 = sld [smem:[%s13430_s0 + %s11753_s26]]   ;;  %s11759_s26 = smov 12  }
   0xe   :  { %s11837_s3 = sld [smem:[%s13430_s0 + %s11754_s30]]   ;;  %s11764_s28 = smov 17  }
   0xf   :  { %s11842_s8 = sld [smem:[%s13430_s0 + %s11755_s4]]  }
  0x10   :  { %s11847_s14 = sld [smem:[%s13430_s0 + %s11756_s10]]  }
  0x11   :  { %s11852_s19 = sld [smem:[%s13430_s0 + %s11757_s15]]   ;;  %s11762_s15 = smov 15  }
  0x12   :  { %s11857_s24 = sld [smem:[%s13430_s0 + %s11758_s20]]  }
  0x13   :  { %13475 = sst [smem:[#allocation11_spill]] %s11832_s29 }
  0x14   :  { %13476 = sst [smem:[#allocation12_spill]] %s11837_s3 }
  0x15   :  { %13477 = sst [smem:[#allocation13_spill]] %s11842_s8 }
  0x16   :  { %13478 = sst [smem:[#allocation14_spill]] %s11847_s14 }
  0x17   :  { %13479 = sst [smem:[#allocation15_spill]] %s11852_s19 }
  0x18   :  { %13480 = sst [smem:[#allocation16_spill]] %s11857_s24 }
  0x19   :  { %s11862_s30 = sld [smem:[%s13430_s0 + %s11759_s26]]  }
  0x1a   :  { %s11867_s6 = sld [smem:[%s13430_s0 + %s11760_s1]]  }
  0x1b   :  { %s11872_s12 = sld [smem:[%s13430_s0 + %s11761_s7]]   ;;  %s11765_s7 = smov 18  }
  0x1c   :  { %s11877_s20 = sld [smem:[%s13430_s0 + %s11762_s15]]   ;;  %s11766_s15 = smov 19  }
  0x1d   :  { %s11882_s27 = sld [smem:[%s13430_s0 + %s11763_s22]]   ;;  %s11767_s22 = smov 20  }
  0x1e   :  { %s11887_s4 = sld [smem:[%s13430_s0 + %s11764_s28]]   ;;  %s11768_s28 = smov 21  }
  0x1f   :  { %13481 = sst [smem:[#allocation17_spill]] %s11862_s30 }
  0x20   :  { %13482 = sst [smem:[#allocation18_spill]] %s11867_s6 }
  0x21   :  { %13483 = sst [smem:[#allocation19_spill]] %s11872_s12 }
  0x22   :  { %13484 = sst [smem:[#allocation20_spill]] %s11877_s20 }
  0x23   :  { %13485 = sst [smem:[#allocation21_spill]] %s11882_s27 }
  0x24   :  { %13486 = sst [smem:[#allocation22_spill]] %s11887_s4 }
  0x25   :  { %s11892_s17 = sld [smem:[%s13430_s0 + %s11765_s7]]   ;;  %s11769_s7 = smov 22  }
  0x26   :  { %s11897_s25 = sld [smem:[%s13430_s0 + %s11766_s15]]   ;;  %s11770_s15 = smov 23  }
  0x27   :  { %s11902_s3 = sld [smem:[%s13430_s0 + %s11767_s22]]   ;;  %s11771_s22 = smov 24  }
  0x28   :  { %s11907_s9 = sld [smem:[%s13430_s0 + %s11768_s28]]   ;;  %s11772_s28 = smov 25  }
  0x2b   :  { %13487 = sst [smem:[#allocation23_spill]] %s11892_s17 }
  0x2c   :  { %13488 = sst [smem:[#allocation24_spill]] %s11897_s25 }
  0x2d   :  { %13489 = sst [smem:[#allocation25_spill]] %s11902_s3 }
  0x2e   :  { %13490 = sst [smem:[#allocation26_spill]] %s11907_s9 }
  0x2f   :  { %s11912_s17 = sld [smem:[%s13430_s0 + %s11769_s7]]   ;;  %s11773_s7 = smov 26  }
  0x30   :  { %s11917_s25 = sld [smem:[%s13430_s0 + %s11770_s15]]   ;;  %s11774_s15 = smov 27  }
  0x31   :  { %s11922_s3 = sld [smem:[%s13430_s0 + %s11771_s22]]   ;;  %s11775_s22 = smov 28  }
  0x32   :  { %s11927_s9 = sld [smem:[%s13430_s0 + %s11772_s28]]   ;;  %s11776_s28 = smov 29  }
  0x35   :  { %13491 = sst [smem:[#allocation27_spill]] %s11912_s17 }
  0x36   :  { %13492 = sst [smem:[#allocation28_spill]] %s11917_s25 }
  0x37   :  { %13493 = sst [smem:[#allocation29_spill]] %s11922_s3 }
  0x38   :  { %13494 = sst [smem:[#allocation30_spill]] %s11927_s9 }
  0x39   :  { %s11932_s17 = sld [smem:[%s13430_s0 + %s11773_s7]]   ;;  %s11777_s7 = smov 30  }
  0x3a   :  { %s11937_s25 = sld [smem:[%s13430_s0 + %s11774_s15]]   ;;  %s11778_s15 = smov 31  }
  0x3b   :  { %s11942_s3 = sld [smem:[%s13430_s0 + %s11775_s22]]   ;;  %s11779_s22 = smov 32  }
  0x3c   :  { %s11947_s9 = sld [smem:[%s13430_s0 + %s11776_s28]]   ;;  %s11780_s28 = smov 33  }
  0x3f   :  { %13495 = sst [smem:[#allocation31_spill]] %s11932_s17 }
  0x40   :  { %13496 = sst [smem:[#allocation32_spill]] %s11937_s25 }
  0x41   :  { %13497 = sst [smem:[#allocation33_spill]] %s11942_s3 }
  0x42   :  { %13498 = sst [smem:[#allocation34_spill]] %s11947_s9 }
  0x43   :  { %s11952_s17 = sld [smem:[%s13430_s0 + %s11777_s7]]   ;;  %s11781_s7 = smov 34  }
  0x44   :  { %s11957_s25 = sld [smem:[%s13430_s0 + %s11778_s15]]   ;;  %s11782_s15 = smov 35  }
  0x45   :  { %s11962_s3 = sld [smem:[%s13430_s0 + %s11779_s22]]   ;;  %s11783_s22 = smov 36  }
  0x46   :  { %s11967_s9 = sld [smem:[%s13430_s0 + %s11780_s28]]   ;;  %s11784_s28 = smov 37  }
  0x49   :  { %13499 = sst [smem:[#allocation35_spill]] %s11952_s17 }
  0x4a   :  { %13500 = sst [smem:[#allocation36_spill]] %s11957_s25 }
  0x4b   :  { %13501 = sst [smem:[#allocation37_spill]] %s11962_s3 }
  0x4c   :  { %13502 = sst [smem:[#allocation38_spill]] %s11967_s9 }
  0x4d   :  { %s11972_s17 = sld [smem:[%s13430_s0 + %s11781_s7]]   ;;  %s11785_s7 = smov 38  }
  0x4e   :  { %s11977_s25 = sld [smem:[%s13430_s0 + %s11782_s15]]   ;;  %s11786_s15 = smov 39  }
  0x4f   :  { %s11982_s3 = sld [smem:[%s13430_s0 + %s11783_s22]]   ;;  %s11787_s22 = smov 40  }
  0x50   :  { %s11987_s9 = sld [smem:[%s13430_s0 + %s11784_s28]]  }
  0x53   :  { %13503 = sst [smem:[#allocation39_spill]] %s11972_s17 }
  0x54   :  { %13504 = sst [smem:[#allocation40_spill]] %s11977_s25 }
  0x55   :  { %13505 = sst [smem:[#allocation41_spill]] %s11982_s3 }
  0x56   :  { %13506 = sst [smem:[#allocation42_spill]] %s11987_s9 }
  0x57   :  { %s11992_s17 = sld [smem:[%s13430_s0 + %s11785_s7]]  }
  0x58   :  { %s11997_s25 = sld [smem:[%s13430_s0 + %s11786_s15]]  }
  0x59   :  { %s12002_s3 = sld [smem:[%s13430_s0 + %s11787_s22]]  }
  0x5a   :  { %86 = vsyncpa [#allocation3], 0 }
  0x5b   :  { %88 = vsyncpa [#allocation3 + $0x1], 0  ;;  %s12004_s28 = smov 0   ;;  %s12006_s1 = smov 0  }
  0x5c   :  { %s12008_s2 = smov 0   ;;  %s12010_s7 = smov 0  }
  0x5d LB: > { %s13507_s30 = sld [smem:[#allocation17_spill]]  ;;  %s12025_s0 = sadd.s32 4294967295, %s11746_s7   ;;  %s11742_s2 = sphi %s12008_s2, %s13558_s2   ;;  %s11738_s1 = sphi %s12006_s1, %s13557_s1   ;;  %s11734_s28 = sphi %s12004_s28, %s13556_s28   ;;  %s11746_s7 = sphi %s12010_s7, %s13553_s7  }
  0x5e   : > { %s13508_s29 = sld [smem:[#allocation11_spill]]  ;;  %s9313_s10 = sadd.s32 4294967294, %s11746_s7  }
  0x5f   : > { %s13509_s27 = sld [smem:[#allocation21_spill]]  ;;  %s12029_s11 = sadd.s32 1, %s11746_s7  }
  0x60   : > { %s13510_s24 = sld [smem:[#allocation16_spill]]  ;;  %s961_s15 = sadd.s32 1, %s11742_s2 }
  0x61   : > { %s13511_s20 = sld [smem:[#allocation20_spill]]  ;;  %s958_s16 = ssub.s32 %s11746_s7, %s12029_s11 }
  0x62   : > { %s13512_s19 = sld [smem:[#allocation15_spill]]  ;;  %p971_p0 = scmp.ne.s32.totalorder %s11742_s2, %s11738_s1 }
  0x63   : > { %s13513_s14 = sld [smem:[#allocation14_spill]]  ;;  %p959_p1 = scmp.eq.s32.totalorder %s958_s16, 0 }
  0x64   : > { %s13514_s12 = sld [smem:[#allocation19_spill]]  ;;  %p972_p2 = scmp.eq.s32.totalorder %s12025_s0, 1 }
  0x65   : > { %s13515_s8 = sld [smem:[#allocation13_spill]]  ;;  %p977_p3 = scmp.ne.s32.totalorder %s11738_s1, %s11734_s28 }
  0x66   : > { %s13516_s6 = sld [smem:[#allocation18_spill]]  ;;  %p978_p4 = scmp.eq.s32.totalorder %s9313_s10, 1 }
  0x67   : > { %s13517_s4 = sld [smem:[#allocation22_spill]]  ;;  %p12042_p5 = por %p972_p2, %p971_p0 }
  0x68   : > { %13518 = sst [smem:[#allocation43_spill]] %s11742_s2  ;;  %p12046_p6 = por %p978_p4, %p977_p3 }
  0x69   : > { %13519 = sst [smem:[#allocation44_spill]] %s12029_s11  ;;  %p9316_p7 = scmp.ge.s32.totalorder %s11746_s7, 1 }
  0x6a   : > { %s12040_s18 = scalar_select %p959_p1, %s11742_s2, %s961_s15  }
  0x6b   : > { %p1131_p8 = scmp.lt.s32.totalorder %s11746_s7, 3 }
  0x6c   : > { %13520 = sst [smem:[#allocation45_spill]] %s12040_s18 }
  0x6d   : > { %p1132_p9 = pnand %p9316_p7, %p1131_p8 }
  0x6e   : > { %p1239_p10 = scmp.lt.s32.totalorder (!%p1132_p9), %s12025_s0, 1  ;;  %s13523_s5 = sld [smem:[#allocation5_spill]] (!%p1132_p9) }
  0x6f   : > { %1135 = sbr.rel (%p1132_p9) target bundleno = 12528 (0x30f0), region = 180  ;;  %s13524_s21 = sld [smem:[#allocation9_spill]] (!%p1132_p9) }
  0x70   : > { %s13450_s16 = smov (!%p1132_p9), 112   ;;  %s13525_s13 = sld [smem:[#allocation7_spill]] (!%p1132_p9) }
  0x71   : > { %s13548_s18 = sld [smem:[#allocation36_spill]] (!%p1132_p9) }
  0x72   : > { %s13549_s2 = sld [smem:[#allocation38_spill]] (!%p1132_p9) }
  0x73   : > { %s13552_s9 = sld [smem:[#allocation42_spill]] (!%p1132_p9) }
  0x74   : > { %v1268_v0 = vld [vmem:[%s13508_s29 + $0x18] sm:$0xff]  ;;  %v1267_v1 = vld [vmem:[%s13508_s29 + $0x10] sm:$0xff]  ;;  %v11788_v2 = vmov 0   ;;  %v11789_v3 = vmov 0.0   ;;  %s12057_s26 = scalar_select %p1239_p10, %s12025_s0, 1  ;;  %v1266_v4 = vld [vmem:[%s13508_s29 + $0x8] sm:$0xff]  ;;  %v1257_v9 = vlaneseq }
  0x75   : > { %11358 = vset.pattern.permute.xlu0 %v11788_v2  ;;  %10296 = vmatprep.subr.mxu0 %v11789_v3  ;;  %vm11790_vm0 = vmmov 0   ;;  %v1265_v5 = vld [vmem:[%s13508_s29] sm:$0xff]  ;;  %v11359_v6 = vld [vmem:[%s13515_s8 + $0x18] sm:$0xff]   ;;  %v11361_v8 = vld [vmem:[%s13515_s8 + $0x10] sm:$0xff]   ;;  %vm1270_vm1 = vcmask 261120   ;;  %vm1431_vm3 = vcmask 523264  }
  0x76   : > { %10297 = vmatpush3.msra.mxu0 %v1268_v0  ;;  %10307 = vmatprep.subr.bf16.mxu1 %v11789_v3  ;;  %s12063_s10 = sshll.u32 %s12057_s26, 3  ;;  %v11363_v10 = vld [vmem:[%s13515_s8 + $0x8] sm:$0xff]   ;;  %v12081_v11 = vand.u32 127, %v1257_v9  ;;  %v11360_v12 = vld [vmem:[%s13515_s8 + $0x38] sm:$0xff]   ;;  %v11362_v15 = vld [vmem:[%s13515_s8 + $0x30] sm:$0xff]   ;;  %vm1689_vm4 = vcmask 130048  }
  0x77   : > { %10298 = vmatprep.subr.mxu0 %v11789_v3  ;;  %10304 = vmatprep.mubr.msk.f32.mxu0 %vm11790_vm0, %v11789_v3  ;;  %s1242_s15 = scalar_lea.vmem %s13523_s5, %s12063_s10  ;;  %v11364_v16 = vld [vmem:[%s13515_s8 + $0x28] sm:$0xff]   ;;  %v11365_v17 = vld [vmem:[%s13515_s8] sm:$0xff]   ;;  %v11367_v23 = vld [vmem:[%s13515_s8 + $0x58] sm:$0xff]   ;;  %vm1883_vm5 = vcmask 64512   ;;  %vm1937_vm6 = vcmask 1043456   ;;  %s13531_s5 = smov 112  }
  0x78   : > { %10299 = vmatpush3.msra.mxu0 %v1267_v1  ;;  %10315 = vmatprep.mubr.msk.bf16.mxu1 %vm11790_vm0, %v11789_v3  ;;  %v1256_v7 = vld [vmem:[%s1242_s15] sm:$0xff]  ;;  %v11368_v24 = vld [vmem:[%s13515_s8 + $0x78] sm:$0xff]   ;;  %v11369_v26 = vld [vmem:[%s13515_s8 + $0x50] sm:$0xff]   ;;  %s12178_s15 = scalar_lea.vmem %s13525_s13, %s12057_s26  ;;  %s13448_s26 = smov 96  }
  0x79   : > { %10300 = vmatprep.subr.mxu0 %v11789_v3  ;;  %1260 = vperm.xlu0 %11358, %v1256_v7   ;;  %v11366_v18 = vld [vmem:[%s13515_s8 + $0x20] sm:$0xff]   ;;  %v11370_v27 = vld [vmem:[%s13515_s8 + $0x70] sm:$0xff]   ;;  %v11371_v28 = vld [vmem:[%s13515_s8 + $0x48] sm:$0xff]   ;;  %s13536_s13 = sld [smem:[#allocation29_spill]]  ;;  %s13550_s11 = smov %s13549_s2 }
  0x7a   : > { %10301 = vmatpush3.msra.mxu0 %v1266_v4  ;;  %10308 = vmatpush3.bf16.msra.mxu1 %v11359_v6  ;;  %v1269_v19 = vld [vmem:[%s13524_s21] sm:$0xff]  ;;  %v11372_v29 = vld [vmem:[%s13515_s8 + $0x68] sm:$0xff]   ;;  %s13541_s21 = sld [smem:[#allocation24_spill]] }
  0x7b   : > { %10302 = vmatprep.subr.mxu0 %v11789_v3  ;;  %10309 = vmatprep.subr.bf16.mxu1 %v11789_v3  ;;  %v11373_v30 = vld [vmem:[%s13515_s8 + $0x40] sm:$0xff]   ;;  %s13546_s29 = sld [smem:[#allocation35_spill]] }
  0x7c   : > { %10303 = vmatpush3.msra.mxu0 %v1265_v5  ;;  %v11374_v31 = vld [vmem:[%s13515_s8 + $0x60] sm:$0xff]  }
  0x7d   : > { %10319 = vmatprep.subr.bf16.mxu0 %v11789_v3  ;;  %v9323_v32 = vld [vmem:[%s13513_s14] ss:$0 sm:$0xff]  ;;  %v9324_v33 = vld [vmem:[%s13513_s14 + $0x1] ss:$0 sm:$0xff]  ;;  %v9325_v46 = vld [vmem:[%s13513_s14 + $0x2] ss:$0 sm:$0xff] }
  0x7e   : > { %10310 = vmatpush3.bf16.msra.mxu1 %v11361_v8  ;;  %v9326_v47 = vld [vmem:[%s13513_s14 + $0x3] ss:$0 sm:$0xff]  ;;  %v12181_v5 = vld [vmem:[%s12178_s15] ss:$0 sm:$0xff] }
  0x7f   : > { %10311 = vmatprep.subr.bf16.mxu1 %v11789_v3 }
  0x82   : > { %10312 = vmatpush3.bf16.msra.mxu1 %v11363_v10 }
  0x83   : > { %10313 = vmatprep.subr.bf16.mxu1 %v11789_v3 }
  0x86   : > { %10314 = vmatpush3.bf16.msra.mxu1 %v11365_v17 }
  0x87   : > { %10331 = vmatprep.subr.bf16.mxu1 %v11789_v3 }
  0xf4   : > { %v1261_v13 = vpop.permute.xlu0 %1260 }
  0xf5   : > { %vm1262_vm2 = vcmp.eq.s32.totalorder %v12081_v11, %v1261_v13 }
  0xf6   : > { %v9321_v14 = vsel %vm1262_vm2, 1.0, %v11789_v3 }
  0xf7   : > { %10305 = vmatmul.mubr.msk.f32.vlgmr.msra.gmra.mxu0 %vm1270_vm1, %v9321_v14 }
  0xf8   : > { %10320 = vmatpush3.bf16.msra.mxu0 %v11360_v12  ;;  %10327 = vmatprep.mubr.msk.bf16.mxu0 %vm11790_vm0, %v11789_v3 }
  0xf9   : > { %10321 = vmatprep.subr.bf16.mxu0 %v11789_v3 }
  0xfc   : > { %10322 = vmatpush3.bf16.msra.mxu0 %v11362_v15 }
  0xfd   : > { %10323 = vmatprep.subr.bf16.mxu0 %v11789_v3 }
 0x100   : > { %10324 = vmatpush3.bf16.msra.mxu0 %v11364_v16 }
 0x101   : > { %10325 = vmatprep.subr.bf16.mxu0 %v11789_v3 }
 0x104   : > { %10326 = vmatpush3.bf16.msra.mxu0 %v11366_v18 }
 0x105   : > { %10343 = vmatprep.subr.bf16.mxu0 %v11789_v3 }
 0x1b7   : > { %v1340_v20 = vpop.f32.mrf.mxu0 }
 0x1b8   : > { %v12100_v21 = vadd.f32 %v1340_v20, %v1269_v19 }
 0x1b9   : > { %v10306_v22 = vpop.f32.mrf.mxu0 }
 0x1ba   : > { %v1346_v25 = vpack.c.bf16 %v12100_v21, %v12100_v21 }
 0x1bc   : > { %10316 = vmatmul.mubr.msk.bf16.vlgmr.msra.gmra.mxu1 %vm1431_vm3, %v1346_v25  ;;  %10328 = vmatmul.mubr.msk.bf16.vlgmr.msra.gmra.mxu0 %vm1431_vm3, %v1346_v25 }
 0x1bd   : > { %10332 = vmatpush3.bf16.msra.mxu1 %v11367_v23  ;;  %10344 = vmatpush3.bf16.msra.mxu0 %v11368_v24 }
 0x1be   : > { %10333 = vmatprep.subr.bf16.mxu1 %v11789_v3  ;;  %10345 = vmatprep.subr.bf16.mxu0 %v11789_v3 }
 0x1bf   : > { %10339 = vmatprep.mubr.msk.bf16.mxu1 %vm11790_vm0, %v11789_v3  ;;  %10351 = vmatprep.mubr.msk.bf16.mxu0 %vm11790_vm0, %v11789_v3 }
 0x1c1   : > { %10334 = vmatpush3.bf16.msra.mxu1 %v11369_v26  ;;  %10346 = vmatpush3.bf16.msra.mxu0 %v11370_v27 }
 0x1c2   : > { %10335 = vmatprep.subr.bf16.mxu1 %v11789_v3  ;;  %10347 = vmatprep.subr.bf16.mxu0 %v11789_v3 }
 0x1c5   : > { %10336 = vmatpush3.bf16.msra.mxu1 %v11371_v28  ;;  %10348 = vmatpush3.bf16.msra.mxu0 %v11372_v29 }
 0x1c6   : > { %10337 = vmatprep.subr.bf16.mxu1 %v11789_v3  ;;  %10349 = vmatprep.subr.bf16.mxu0 %v11789_v3 }
 0x1c9   : > { %10338 = vmatpush3.bf16.msra.mxu1 %v11373_v30  ;;  %10350 = vmatpush3.bf16.msra.mxu0 %v11374_v31 }
 0x1ca   : > { %10355 = vmatprep.subr.bf16.mxu1 %v11789_v3  ;;  %10361 = vmatprep.subr.bf16.mxu0 %v11789_v3 }
 0x1cc   : > { %10340 = vmatmul.mubr.msk.bf16.vlgmr.msra.gmra.mxu1 %vm1431_vm3, %v1346_v25  ;;  %10352 = vmatmul.mubr.msk.bf16.vlgmr.msra.gmra.mxu0 %vm1431_vm3, %v1346_v25 }
 0x1cd   : > { %10357 = vmatprep.mubr.msk.bf16.mxu1 %vm11790_vm0, %v11789_v3  ;;  %10363 = vmatprep.mubr.msk.bf16.mxu0 %vm11790_vm0, %v11789_v3 }
 0x27c   : > { %v1469_v34 = vpop.f32.mrf.mxu1  ;;  %v1533_v35 = vpop.f32.mrf.mxu0 }
 0x27d   : > { %v1470_v36 = vadd.f32 %v9323_v32, %v1469_v34  ;;  %v1534_v37 = vadd.f32 %v9324_v33, %v1533_v35 }
 0x27e   : > { %v10317_v38 = vpop.f32.mrf.mxu1  ;;  %v10329_v39 = vpop.f32.mrf.mxu0 }
 0x27f   : > { %v12134_v40 = vpack.c.bf16 %v1470_v36, %v1470_v36  ;;  %v12136_v41 = vpack.c.bf16 %v1534_v37, %v1534_v37 }
 0x280   : > { %v1472_v42 = vpop.f32.mrf.mxu1  ;;  %v1536_v43 = vpop.f32.mrf.mxu0 }
 0x281   : > { %1687 = vrot.lane.b32.xlu0 %v12134_v40, %s13450_s16  ;;  %1737 = vrot.lane.b32.xlu1 %v12136_v41, %s13450_s16 }
 0x282   : > { %v10318_v44 = vpop.f32.mrf.mxu1  ;;  %v10330_v45 = vpop.f32.mrf.mxu0 }
 0x28c   : > { %v1597_v48 = vpop.f32.mrf.mxu1  ;;  %v1661_v49 = vpop.f32.mrf.mxu0 }
 0x28d   : > { %v1598_v50 = vadd.f32 %v9325_v46, %v1597_v48  ;;  %v1662_v51 = vadd.f32 %v9326_v47, %v1661_v49 }
 0x28e   : > { %v10341_v52 = vpop.f32.mrf.mxu1  ;;  %v10353_v53 = vpop.f32.mrf.mxu0 }
 0x28f   : > { %v12144_v54 = vpack.c.bf16 %v1598_v50, %v1598_v50  ;;  %v12146_v55 = vpack.c.bf16 %v1662_v51, %v1662_v51 }
 0x290   : > { %v1600_v56 = vpop.f32.mrf.mxu1  ;;  %v1664_v57 = vpop.f32.mrf.mxu0 }
 0x291   : > { %1786 = vrot.lane.b32.xlu1 %v12144_v54, %s13450_s16  ;;  %1835 = vrot.lane.b32.xlu0 %v12146_v55, %s13450_s16 }
 0x292   : > { %v10342_v58 = vpop.f32.mrf.mxu1  ;;  %v10354_v59 = vpop.f32.mrf.mxu0 }
 0x2f3   : > { %v1688_v60 = vpop.permute.xlu0 %1687  ;;  %v1738_v61 = vpop.permute.xlu1 %1737 }
 0x2f4   : > { %v1694_v62 = vsel %vm1689_vm4, %v1688_v60, 0  ;;  %v1743_v63 = vsel %vm1689_vm4, %v1738_v61, 0 }
 0x2f5   : > { %10356 = vmatpush3.bf16.xpose.msra.mxu1 %v1694_v62  ;;  %10362 = vmatpush3.bf16.xpose.msra.mxu0 %v1743_v63 }
 0x2f6   : > { %10367 = vmatprep.subr.bf16.mxu1 %v11789_v3  ;;  %10373 = vmatprep.subr.bf16.mxu0 %v11789_v3 }
 0x2fc   : > { %10358 = vmatmul.mubr.msk.bf16.vlgmr.msra.gmra.mxu1 %vm1689_vm4, %v12134_v40  ;;  %10364 = vmatmul.mubr.msk.bf16.vlgmr.msra.gmra.mxu0 %vm1689_vm4, %v12136_v41 }
 0x2fd   : > { %10369 = vmatprep.mubr.msk.bf16.mxu1 %vm11790_vm0, %v11789_v3  ;;  %10375 = vmatprep.mubr.msk.bf16.mxu0 %vm11790_vm0, %v11789_v3 }
 0x303   : > { %v1787_v0 = vpop.permute.xlu1 %1786  ;;  %v1836_v1 = vpop.permute.xlu0 %1835 }
 0x304   : > { %v1792_v2 = vsel %vm1689_vm4, %v1787_v0, 0  ;;  %v1841_v4 = vsel %vm1689_vm4, %v1836_v1, 0 }
 0x305   : > { %10368 = vmatpush3.bf16.xpose.msra.mxu1 %v1792_v2  ;;  %10374 = vmatpush3.bf16.xpose.msra.mxu0 %v1841_v4 }
 0x306   : > { %10385 = vmatprep.subr.bf16.mxu0 %v11789_v3  ;;  %10379 = vmatprep.subr.bf16.mxu1 %v11789_v3 }
 0x30c   : > { %10370 = vmatmul.mubr.msk.bf16.vlgmr.msra.gmra.mxu1 %vm1689_vm4, %v12144_v54  ;;  %10376 = vmatmul.mubr.msk.bf16.vlgmr.msra.gmra.mxu0 %vm1689_vm4, %v12146_v55 }
 0x30d   : > { %10381 = vmatprep.mubr.msk.bf16.mxu1 %vm11790_vm0, %v11789_v3  ;;  %10387 = vmatprep.mubr.msk.bf16.mxu0 %vm11790_vm0, %v11789_v3 }
 0x3bc   : > { %v1730_v6 = vpop.f32.mrf.mxu1  ;;  %v1779_v7 = vpop.f32.mrf.mxu0 }
 0x3bd   : > { %v1731_v8 = vadd.f32 %v12181_v5, %v1730_v6  ;;  %v1780_v10 = vadd.f32 %v12181_v5, %v1779_v7 }
 0x3be   : > { %v10359_v12 = vpop.f32.mrf.mxu1  ;;  %v10365_v13 = vpop.f32.mrf.mxu0 }
 0x3bf   : > { %v1884_v14 = vsel %vm1883_vm5, %v1731_v8, -inf  ;;  %v1887_v15 = vsel %vm1883_vm5, %v1780_v10, -inf }
 0x3c0   : > { %v1733_v16 = vpop.f32.mrf.mxu1  ;;  %1885 = vmax.xlane.f32.xlu1 %v1884_v14  ;;  %1888 = vmax.xlane.f32.xlu0 %v1887_v15  ;;  %v1782_v17 = vpop.f32.mrf.mxu0 }
 0x3c1   : > { %v11375_v17 = vld [vmem:[%s13512_s19] sm:$0xff]  }
 0x3c2   : > { %v10360_v18 = vpop.f32.mrf.mxu1  ;;  %v10366_v19 = vpop.f32.mrf.mxu0 }
 0x3c3   : > { %v11376_v18 = vld [vmem:[%s13512_s19 + $0x8] sm:$0xff]  }
 0x3cc   : > { %v1828_v20 = vpop.f32.mrf.mxu1  ;;  %v1877_v22 = vpop.f32.mrf.mxu0 }
 0x3cd   : > { %v1829_v23 = vadd.f32 %v12181_v5, %v1828_v20  ;;  %v1878_v24 = vadd.f32 %v12181_v5, %v1877_v22  ;;  %v11378_v20 = vld [vmem:[%s13512_s19 + $0x10] sm:$0xff]  }
 0x3ce   : > { %v10371_v25 = vpop.f32.mrf.mxu1  ;;  %v10377_v26 = vpop.f32.mrf.mxu0 }
 0x3cf   : > { %v1890_v27 = vsel %vm1883_vm5, %v1829_v23, -inf  ;;  %v1893_v28 = vsel %vm1883_vm5, %v1878_v24, -inf }
 0x3d0   : > { %v1831_v29 = vpop.f32.mrf.mxu1  ;;  %1891 = vmax.xlane.f32.xlu0 %v1890_v27  ;;  %1894 = vmax.xlane.f32.xlu1 %v1893_v28  ;;  %v1880_v30 = vpop.f32.mrf.mxu0 }
 0x3d2   : > { %v10372_v31 = vpop.f32.mrf.mxu1  ;;  %v10378_v32 = vpop.f32.mrf.mxu0 }
 0x3e1   : > { %1981 = vrot.lane.b32.xlu1 %v12136_v41, %s13448_s26 }
 0x449   : > { %v1886_v33 = vpop.xlane.xlu1 %1885  ;;  %v1889_v34 = vpop.xlane.xlu0 %1888 }
 0x44a   : > { %v1896_v35 = vsub.f32 %v1731_v8, %v1886_v33  ;;  %v1897_v36 = vsub.f32 %v1780_v10, %v1889_v34 }
 0x44c   : > { %v1900_v37 = vmul.f32 1.442695, %v1896_v35  ;;  %v1902_v38 = vmul.f32 1.442695, %v1897_v36 }
 0x44e   : > { %11563 = vpow2.f32 %v1900_v37 }
 0x44f   : > { %11565 = vpow2.f32 %v1902_v38 }
 0x459   : > { %v1895_v39 = vpop.xlane.xlu1 %1894  ;;  %v1892_v51 = vpop.xlane.xlu0 %1891 }
 0x45a   : > { %v1899_v42 = vsub.f32 %v1878_v24, %v1895_v39  ;;  %v1898_v52 = vsub.f32 %v1829_v23, %v1892_v51  ;;  %v11377_v24 = vld [vmem:[%s13512_s19 + $0x18] sm:$0xff]  }
 0x45b   : > { %v11564_v43 = vpop.eup %11563 }
 0x45c   : > { %v11566_v44 = vpop.eup %11565  ;;  %v1906_v45 = vmul.f32 1.442695, %v1899_v42  ;;  %v1908_v46 = vsel %vm1883_vm5, %v11564_v43, 0.0  ;;  %v1904_v53 = vmul.f32 1.442695, %v1898_v52 }
 0x45d   : > { %v1982_v47 = vpop.permute.xlu1 %1981  ;;  %1909 = vadd.xlane.f32.xlu0 %v1908_v46  ;;  %v1911_v41 = vsel %vm1883_vm5, %v11566_v44, 0.0 }
 0x45e   : > { %v1987_v48 = vsel %vm1937_vm6, %v1982_v47, 0  ;;  %1912 = vadd.xlane.f32.xlu1 %v1911_v41  ;;  %11567 = vpow2.f32 %v1906_v45 }
 0x45f   : > { %10386 = vmatpush3.bf16.msra.mxu0 %v1987_v48  ;;  %11569 = vpow2.f32 %v1904_v53 }
 0x460   : > { %10397 = vmatprep.subr.bf16.mxu0 %v11789_v3 }
 0x46b   : > { %v11568_v49 = vpop.eup %11567 }
 0x46c   : > { %v1917_v50 = vsel %vm1883_vm5, %v11568_v49, 0.0  ;;  %v11570_v56 = vpop.eup %11569 }
 0x46d   : > { %1918 = vadd.xlane.f32.xlu1 %v1917_v50  ;;  %v1914_v57 = vsel %vm1883_vm5, %v11570_v56, 0.0 }
 0x473   : > { %1932 = vrot.lane.b32.xlu0 %v12134_v40, %s13448_s26 }
 0x47e   : > { %2029 = vrot.lane.b32.xlu1 %v12144_v54, %s13448_s26 }
 0x492   : > { %1915 = vadd.xlane.f32.xlu0 %v1914_v57 }
 0x4a8   : > { %2077 = vrot.lane.b32.xlu0 %v12146_v55, %s13448_s26 }
 0x4e6   : > { %v1910_v58 = vpop.xlane.xlu0 %1909 }
 0x4e7   : > { %11571 = vrcp.f32 %v1910_v58  ;;  %v1913_v59 = vpop.xlane.xlu1 %1912 }
 0x4e8   : > { %11573 = vrcp.f32 %v1913_v59 }
 0x4ea   : > { %v1933_v60 = vpop.permute.xlu0 %1932 }
 0x4eb   : > { %v1939_v40 = vsel %vm1937_vm6, %v1933_v60, 0 }
 0x4ec   : > { %10380 = vmatpush3.bf16.msra.mxu1 %v1939_v40 }
 0x4ed   : > { %10391 = vmatprep.subr.bf16.mxu1 %v11789_v3 }
 0x4f4   : > { %v11572_v61 = vpop.eup %11571 }
 0x4f5   : > { %v11574_v54 = vpop.eup %11573  ;;  %v1921_v62 = vmul.f32 %v11572_v61, %v11564_v43 }
 0x4f6   : > { %v1923_v63 = vmul.f32 %v11574_v54, %v11566_v44  ;;  %v1919_v0 = vpop.xlane.xlu1 %1918 }
 0x4f7   : > { %v1928_v1 = vpack.c.bf16 %v1921_v62, %v1921_v62  ;;  %11575 = vrcp.f32 %v1919_v0 }
 0x4f8   : > { %v1929_v2 = vpack.c.bf16 %v1923_v63, %v1923_v63  ;;  %v9364_v63 = vld [vmem:[%s13510_s24] ss:$0 sm:$0xff] }
 0x4f9   : > { %10382 = vmatmul.mubr.msk.bf16.vlgmr.msra.gmra.mxu1 %vm1883_vm5, %v1928_v1 }
 0x4fa   : > { %10388 = vmatmul.mubr.msk.bf16.vlgmr.msra.gmra.mxu0 %vm1883_vm5, %v1929_v2  ;;  %10393 = vmatprep.mubr.msk.bf16.mxu1 %vm11790_vm0, %v11789_v3  ;;  %v2030_v55 = vpop.permute.xlu1 %2029 }
 0x4fb   : > { %10399 = vmatprep.mubr.msk.bf16.mxu0 %vm11790_vm0, %v11789_v3  ;;  %v2035_v4 = vsel %vm1937_vm6, %v2030_v55, 0 }
 0x4fc   : > { %10392 = vmatpush3.bf16.msra.mxu1 %v2035_v4 }
 0x4fd   : > { %10403 = vmatprep.subr.bf16.mxu1 %v11789_v3 }
 0x504   : > { %v11576_v6 = vpop.eup %11575 }
 0x505   : > { %v1927_v8 = vmul.f32 %v11576_v6, %v11568_v49 }
 0x507   : > { %v1931_v13 = vpack.c.bf16 %v1927_v8, %v1927_v8 }
 0x51b   : > { %v1916_v7 = vpop.xlane.xlu0 %1915 }
 0x51c   : > { %11577 = vrcp.f32 %v1916_v7 }
 0x51f   : > { %v2078_v10 = vpop.permute.xlu0 %2077 }
 0x520   : > { %v2083_v12 = vsel %vm1937_vm6, %v2078_v10, 0 }
 0x521   : > { %10398 = vmatpush3.bf16.msra.mxu0 %v2083_v12 }
 0x522   : > { %10409 = vmatprep.subr.bf16.mxu0 %v11789_v3 }
 0x524   : > { %10400 = vmatmul.mubr.msk.bf16.vlgmr.msra.gmra.mxu0 %vm1883_vm5, %v1931_v13 }
 0x525   : > { %10411 = vmatprep.mubr.msk.bf16.mxu0 %vm11790_vm0, %v11789_v3  ;;  %10410 = vmatpush3.bf16.msra.mxu0 %v11376_v18  ;;  %v11384_v18 = vld [vmem:[%s13514_s12 + $0x30] sm:$0xff]  }
 0x526   : > { %10421 = vmatprep.subr.bf16.mxu0 %v11789_v3 }
 0x529   : > { %v11578_v14 = vpop.eup %11577 }
 0x52a   : > { %v1925_v15 = vmul.f32 %v11578_v14, %v11570_v56  ;;  %v11379_v14 = vld [vmem:[%s13507_s30 + $0x18] sm:$0xff]  }
 0x52c   : > { %v1930_v16 = vpack.c.bf16 %v1925_v15, %v1925_v15  ;;  %v11380_v15 = vld [vmem:[%s13507_s30 + $0x10] sm:$0xff]  }
 0x52e   : > { %10394 = vmatmul.mubr.msk.bf16.vlgmr.msra.gmra.mxu1 %vm1883_vm5, %v1930_v16  ;;  %v11382_v16 = vld [vmem:[%s13507_s30] sm:$0xff]  }
 0x52f   : > { %10405 = vmatprep.mubr.msk.bf16.mxu1 %vm11790_vm0, %v11789_v3  ;;  %10404 = vmatpush3.bf16.msra.mxu1 %v11375_v17  ;;  %v11383_v17 = vld [vmem:[%s13514_s12 + $0x38] sm:$0xff]  }
 0x530   : > { %10415 = vmatprep.subr.bf16.mxu1 %v11789_v3 }
 0x5b9   : > { %v1975_v19 = vpop.f32.mrf.mxu1 }
 0x5ba   : > { %v2125_v22 = vpack.c.bf16 %v1975_v19, %v1975_v19  ;;  %v2023_v23 = vpop.f32.mrf.mxu0  ;;  %v11385_v19 = vld [vmem:[%s13514_s12 + $0x28] sm:$0xff]  }
 0x5bb   : > { %v2126_v25 = vpack.c.bf16 %v2023_v23, %v2023_v23  ;;  %v10383_v26 = vpop.f32.mrf.mxu1  ;;  %v11388_v23 = vld [vmem:[%s13514_s12 + $0x10] sm:$0xff]  }
 0x5bc   : > { %v10389_v27 = vpop.f32.mrf.mxu0  ;;  %10406 = vmatmul.mubr.msk.bf16.vlgmr.msra.gmra.mxu1 %vm1689_vm4, %v2125_v22  ;;  %v11387_v22 = vld [vmem:[%s13514_s12 + $0x18] sm:$0xff]  }
 0x5bd   : > { %10412 = vmatmul.mubr.msk.bf16.vlgmr.msra.gmra.mxu0 %vm1689_vm4, %v2126_v25  ;;  %v1978_v28 = vpop.f32.mrf.mxu1  ;;  %10416 = vmatpush3.bf16.msra.mxu1 %v11378_v20  ;;  %v11386_v20 = vld [vmem:[%s13514_s12 + $0x20] sm:$0xff]   ;;  %v12272_v27 = vshrl.u32 %v1257_v9, 7 }
 0x5be   : > { %v2026_v29 = vpop.f32.mrf.mxu0  ;;  %10422 = vmatpush3.bf16.msra.mxu0 %v11377_v24  ;;  %10423 = vmatprep.mubr.msk.bf16.mxu0 %vm11790_vm0, %v11789_v3 }
 0x5bf   : > { %v10384_v30 = vpop.f32.mrf.mxu1  ;;  %10417 = vmatprep.mubr.msk.bf16.mxu1 %vm11790_vm0, %v11789_v3  ;;  %10427 = vmatprep.subr.bf16.mxu1 %v11789_v3  ;;  %v12275_v28 = vsub.s32 0, %v12272_v27  ;;  %v12278_v29 = vld [vmem:[%s13509_s27] sm:$0x3] }
 0x5c0   : > { %v10390_v31 = vpop.f32.mrf.mxu0  ;;  %10439 = vmatprep.subr.bf16.mxu0 %v11789_v3  ;;  %v12281_v30 = vld [vmem:[%s13517_s4] sm:$0x3] }
 0x5c1   : > { %v2357_v31 = vrot.slane %v12278_v29, %v12275_v28 }
 0x5e4   : > { %v2119_v32 = vpop.f32.mrf.mxu0 }
 0x5e5   : > { %v2128_v33 = vpack.c.bf16 %v2119_v32, %v2119_v32 }
 0x5e6   : > { %v10401_v34 = vpop.f32.mrf.mxu0 }
 0x5e7   : > { %10424 = vmatmul.mubr.msk.bf16.vlgmr.msra.gmra.mxu0 %vm1689_vm4, %v2128_v33  ;;  %v2362_v34 = vrot.slane %v12281_v30, %v12275_v28 }
 0x5e8   : > { %v2122_v35 = vpop.f32.mrf.mxu0  ;;  %10455 = vmatprep.mubr.msk.bf16.mxu0 %vm11790_vm0, %v11789_v3  ;;  %10440 = vmatpush3.bf16.msra.mxu0 %v11383_v17  ;;  %v11399_v17 = vld [vmem:[%s13515_s8 + $0xb8] sm:$0xff]  }
 0x5e9   : > { %10441 = vmatprep.subr.bf16.mxu0 %v11789_v3 }
 0x5ea   : > { %v10402_v36 = vpop.f32.mrf.mxu0 }
 0x5ec   : > { %10442 = vmatpush3.bf16.msra.mxu0 %v11384_v18 }
 0x5ed   : > { %10443 = vmatprep.subr.bf16.mxu0 %v11789_v3 }
 0x5ee   : > { %v2071_v37 = vpop.f32.mrf.mxu1 }
 0x5ef   : > { %v2127_v38 = vpack.c.bf16 %v2071_v37, %v2071_v37  ;;  %v11389_v37 = vld [vmem:[%s13514_s12 + $0x8] sm:$0xff]  }
 0x5f0   : > { %v10395_v39 = vpop.f32.mrf.mxu1  ;;  %10444 = vmatpush3.bf16.msra.mxu0 %v11385_v19  ;;  %v11400_v19 = vld [vmem:[%s13515_s8 + $0xb0] sm:$0xff]  }
 0x5f1   : > { %10418 = vmatmul.mubr.msk.bf16.vlgmr.msra.gmra.mxu1 %vm1689_vm4, %v2127_v38  ;;  %10445 = vmatprep.subr.bf16.mxu0 %v11789_v3  ;;  %v11390_v38 = vld [vmem:[%s13514_s12] sm:$0xff]  }
 0x5f2   : > { %v2074_v42 = vpop.f32.mrf.mxu1  ;;  %10435 = vmatprep.mubr.msk.bf16.mxu1 %vm11790_vm0, %v11789_v3  ;;  %10428 = vmatpush3.bf16.msra.mxu1 %v11379_v14  ;;  %v9365_v39 = vld [vmem:[%s13516_s6] ss:$0 sm:$0xff] }
 0x5f3   : > { %10429 = vmatprep.subr.bf16.mxu1 %v11789_v3 }
 0x5f4   : > { %v10396_v43 = vpop.f32.mrf.mxu1  ;;  %10446 = vmatpush3.bf16.msra.mxu0 %v11386_v20  ;;  %v11401_v20 = vld [vmem:[%s13515_s8 + $0xa8] sm:$0xff]  }
 0x5f5   : > { %10447 = vmatprep.subr.bf16.mxu0 %v11789_v3 }
 0x5f6   : > { %10430 = vmatpush3.bf16.msra.mxu1 %v11380_v15 }
 0x5f7   : > { %10431 = vmatprep.subr.bf16.mxu1 %v11789_v3 }
 0x5f8   : > { %10448 = vmatpush3.bf16.msra.mxu0 %v11387_v22  ;;  %v11402_v22 = vld [vmem:[%s13515_s8 + $0xa0] sm:$0xff]  }
 0x5f9   : > { %10449 = vmatprep.subr.bf16.mxu0 %v11789_v3 }
 0x5fc   : > { %10450 = vmatpush3.bf16.msra.mxu0 %v11388_v23  ;;  %v11403_v23 = vld [vmem:[%s13515_s8 + $0xf8] sm:$0xff]  }
 0x5fd   : > { %10451 = vmatprep.subr.bf16.mxu0 %v11789_v3 }
 0x600   : > { %10452 = vmatpush3.bf16.msra.mxu0 %v11389_v37 }
 0x601   : > { %10453 = vmatprep.subr.bf16.mxu0 %v11789_v3 }
 0x604   : > { %10454 = vmatpush3.bf16.msra.mxu0 %v11390_v38 }
 0x605   : > { %10483 = vmatprep.subr.bf16.mxu0 %v11789_v3 }
 0x67c   : > { %v2172_v44 = vpop.f32.mrf.mxu1 }
 0x67d   : > { %v2221_v45 = vpop.f32.mrf.mxu0  ;;  %v2325_v57 = vsel %vm1431_vm3, %v2172_v44, 0.0 }
 0x67e   : > { %v10407_v46 = vpop.f32.mrf.mxu1  ;;  %v2326_v58 = vsel %vm1431_vm3, %v2221_v45, 0.0 }
 0x67f   : > { %v10413_v47 = vpop.f32.mrf.mxu0  ;;  %v2327_v59 = vadd.f32 %v2326_v58, %v2325_v57 }
 0x680   : > { %v2175_v41 = vpop.f32.mrf.mxu1 }
 0x681   : > { %v2224_v48 = vpop.f32.mrf.mxu0 }
 0x682   : > { %v10408_v49 = vpop.f32.mrf.mxu1  ;;  %v9371_v48 = vld [vmem:[%s13511_s20] ss:$0 sm:$0xff] }
 0x683   : > { %v10414_v50 = vpop.f32.mrf.mxu0 }
 0x6a7   : > { %v2319_v51 = vpop.f32.mrf.mxu0 }
 0x6a8   : > { %v2330_v62 = vsel %vm1431_vm3, %v2319_v51, 0.0 }
 0x6a9   : > { %v10425_v52 = vpop.f32.mrf.mxu0 }
 0x6ab   : > { %v2322_v53 = vpop.f32.mrf.mxu0 }
 0x6ad   : > { %v10426_v56 = vpop.f32.mrf.mxu0 }
 0x6b1   : > { %v2270_v60 = vpop.f32.mrf.mxu1 }
 0x6b2   : > { %v2328_v40 = vsel %vm1431_vm3, %v2270_v60, 0.0 }
 0x6b3   : > { %v2329_v61 = vadd.f32 %v2328_v40, %v2327_v59  ;;  %v10419_v54 = vpop.f32.mrf.mxu1 }
 0x6b4   : > { %v11391_v54 = vld [vmem:[%s13515_s8 + $0x98] sm:$0xff]  }
 0x6b5   : > { %v2331_v0 = vadd.f32 %v2330_v62, %v2329_v61  ;;  %v2273_v1 = vpop.f32.mrf.mxu1  ;;  %v11392_v62 = vld [vmem:[%s13515_s8 + $0xd8] sm:$0xff]  }
 0x6b6   : > { %v11395_v1 = vld [vmem:[%s13515_s8 + $0x88] sm:$0xff]  }
 0x6b7   : > { %v10420_v2 = vpop.f32.mrf.mxu1  ;;  %v2338_v55 = vadd.f32 %v9364_v63, %v2331_v0  ;;  %v11393_v63 = vld [vmem:[%s13515_s8 + $0x90] sm:$0xff]  }
 0x6b8   : > { %v11394_v0 = vld [vmem:[%s13515_s8 + $0xd0] sm:$0xff]   ;;  %v11396_v2 = vld [vmem:[%s13515_s8 + $0xc8] sm:$0xff]  }
 0x6b9   : > { %v2339_v4 = vadd.f32 %v2338_v55, %v12100_v21  ;;  %v11381_v21 = vld [vmem:[%s13507_s30 + $0x8] sm:$0xff]   ;;  %v11397_v55 = vld [vmem:[%s13515_s8 + $0x80] sm:$0xff]  }
 0x6ba   : > { %10432 = vmatpush3.bf16.msra.mxu1 %v11381_v21 }
 0x6bb   : > { %v2340_v6 = vsel %vm1431_vm3, %v2339_v4, 0.0  ;;  %10433 = vmatprep.subr.bf16.mxu1 %v11789_v3 }
 0x6bc   : > { %2341 = vadd.xlane.f32.xlu1 %v2340_v6 }
 0x6be   : > { %10434 = vmatpush3.bf16.msra.mxu1 %v11382_v16 }
 0x6bf   : > { %10459 = vmatprep.subr.bf16.mxu1 %v11789_v3 }
 0x745   : > { %v2342_v7 = vpop.xlane.xlu1 %2341 }
 0x746   : > { %v2344_v8 = vmul.f32 0.015625, %v2342_v7 }
 0x748   : > { %v2345_v10 = vsub.f32 %v2339_v4, %v2344_v8  ;;  %v11398_v4 = vld [vmem:[%s13515_s8 + $0xc0] sm:$0xff]  }
 0x74a   : > { %v2346_v12 = vmul.f32 %v2345_v10, %v2345_v10 }
 0x74c   : > { %v2347_v13 = vsel %vm1431_vm3, %v2346_v12, 0.0 }
 0x74d   : > { %2348 = vadd.xlane.f32.xlu0 %v2347_v13 }
 0x7d6   : > { %v2349_v24 = vpop.xlane.xlu0 %2348 }
 0x7d7   : > { %v2350_v25 = vmul.f32 0.015625, %v2349_v24  ;;  %v11404_v24 = vld [vmem:[%s13515_s8 + $0xf0] sm:$0xff]  }
 0x7d9   : > { %v2351_v26 = vadd.f32 1e-05, %v2350_v25  ;;  %v11405_v25 = vld [vmem:[%s13515_s8 + $0xe8] sm:$0xff]  }
 0x7db   : > { %11579 = vrsqrt.f32 %v2351_v26  ;;  %v11406_v26 = vld [vmem:[%s13515_s8 + $0xe0] sm:$0xff]  }
 0x7e8   : > { %v11580_v32 = vpop.eup %11579 }
 0x7e9   : > { %v2353_v33 = vmul.f32 %v11580_v32, %v2345_v10  ;;  %v12317_v10 = vsub.s32 1, %v12272_v27 }
 0x7eb   : > { %v2358_v35 = vmul.f32 %v2357_v31, %v2353_v33  ;;  %v2577_v12 = vrot.slane %v12278_v29, %v12317_v10  ;;  %v2582_v15 = vrot.slane %v12281_v30, %v12317_v10  ;;  %v9418_v29 = vld [vmem:[%s13513_s14 + $0x4] ss:$0 sm:$0xff] }
 0x7ed   : > { %v2363_v9 = vadd.f32 %v2362_v34, %v2358_v35 }
 0x7ef   : > { %v2364_v36 = vpack.c.bf16 %v2363_v9, %v2363_v9 }
 0x7f1   : > { %10436 = vmatmul.mubr.msk.bf16.vlgmr.msra.gmra.mxu1 %vm1431_vm3, %v2364_v36 }
 0x7f2   : > { %10467 = vmatprep.mubr.msk.bf16.mxu1 %vm11790_vm0, %v11789_v3  ;;  %10460 = vmatpush3.bf16.msra.mxu1 %v11391_v54 }
 0x7f3   : > { %10461 = vmatprep.subr.bf16.mxu1 %v11789_v3 }
 0x7f6   : > { %10462 = vmatpush3.bf16.msra.mxu1 %v11393_v63 }
 0x7f7   : > { %10463 = vmatprep.subr.bf16.mxu1 %v11789_v3 }
 0x7fa   : > { %10464 = vmatpush3.bf16.msra.mxu1 %v11395_v1 }
 0x7fb   : > { %10465 = vmatprep.subr.bf16.mxu1 %v11789_v3 }
 0x7fe   : > { %10466 = vmatpush3.bf16.msra.mxu1 %v11397_v55 }
 0x7ff   : > { %10471 = vmatprep.subr.bf16.mxu1 %v11789_v3 }
 0x8b1   : > { %v2441_v42 = vpop.f32.mrf.mxu1 }
 0x8b2   : > { %v2442_v43 = vadd.f32 %v9365_v39, %v2441_v42  ;;  %v9419_v39 = vld [vmem:[%s13513_s14 + $0x5] ss:$0 sm:$0xff]  ;;  %v9420_v42 = vld [vmem:[%s13513_s14 + $0x6] ss:$0 sm:$0xff] }
 0x8b3   : > { %v10437_v44 = vpop.f32.mrf.mxu1 }
 0x8b4   : > { %v2447_v45 = vmax.f32 %v2442_v43, 0.0 }
 0x8b5   : > { %v2444_v46 = vpop.f32.mrf.mxu1 }
 0x8b6   : > { %v2448_v47 = vpack.c.bf16 %v2447_v45, %v2447_v45 }
 0x8b7   : > { %v10438_v41 = vpop.f32.mrf.mxu1 }
 0x8b8   : > { %10456 = vmatmul.mubr.bf16.vlgmr.msra.gmra.mxu0 %v2448_v47 }
 0x8b9   : > { %10491 = vmatprep.mubr.msk.bf16.mxu0 %vm11790_vm0, %v11789_v3  ;;  %10484 = vmatpush3.bf16.msra.mxu0 %v11392_v62 }
 0x8ba   : > { %10485 = vmatprep.subr.bf16.mxu0 %v11789_v3 }
 0x8bd   : > { %10486 = vmatpush3.bf16.msra.mxu0 %v11394_v0 }
 0x8be   : > { %10487 = vmatprep.subr.bf16.mxu0 %v11789_v3 }
 0x8c1   : > { %10488 = vmatpush3.bf16.msra.mxu0 %v11396_v2 }
 0x8c2   : > { %10489 = vmatprep.subr.bf16.mxu0 %v11789_v3 }
 0x8c5   : > { %10490 = vmatpush3.bf16.msra.mxu0 %v11398_v4 }
 0x8c6   : > { %10507 = vmatprep.subr.bf16.mxu0 %v11789_v3 }
 0x978   : > { %v2554_v49 = vpop.f32.mrf.mxu0 }
 0x979   : > { %v2555_v50 = vadd.f32 %v9371_v48, %v2554_v49 }
 0x97a   : > { %v10457_v51 = vpop.f32.mrf.mxu0 }
 0x97b   : > { %v2560_v52 = vadd.f32 %v2555_v50, %v2363_v9  ;;  %v9421_v50 = vld [vmem:[%s13513_s14 + $0x7] ss:$0 sm:$0xff]  ;;  %s13537_s14 = sld [smem:[#allocation39_spill]] }
 0x97c   : > { %v2557_v53 = vpop.f32.mrf.mxu0 }
 0x97d   : > { %v2561_v56 = vsel %vm1431_vm3, %v2560_v52, 0.0 }
 0x97e   : > { %2562 = vadd.xlane.f32.xlu0 %v2561_v56  ;;  %v10458_v57 = vpop.f32.mrf.mxu0 }
 0xa07   : > { %v2563_v58 = vpop.xlane.xlu0 %2562 }
 0xa08   : > { %v2564_v59 = vmul.f32 0.015625, %v2563_v58 }
 0xa0a   : > { %v2565_v60 = vsub.f32 %v2560_v52, %v2564_v59 }
 0xa0c   : > { %v2566_v40 = vmul.f32 %v2565_v60, %v2565_v60 }
 0xa0e   : > { %v2567_v61 = vsel %vm1431_vm3, %v2566_v40, 0.0 }
 0xa0f   : > { %2568 = vadd.xlane.f32.xlu1 %v2567_v61 }
 0xa98   : > { %v2569_v6 = vpop.xlane.xlu1 %2568 }
 0xa99   : > { %v2570_v7 = vmul.f32 0.015625, %v2569_v6 }
 0xa9b   : > { %v2571_v8 = vadd.f32 1e-05, %v2570_v7 }
 0xa9d   : > { %11581 = vrsqrt.f32 %v2571_v8 }
 0xaaa   : > { %v11582_v13 = vpop.eup %11581 }
 0xaab   : > { %v2573_v14 = vmul.f32 %v11582_v13, %v2565_v60 }
 0xaad   : > { %v2578_v21 = vmul.f32 %v2577_v12, %v2573_v14 }
 0xaaf   : > { %v12323_v16 = vadd.f32 %v2582_v15, %v2578_v21 }
 0xab1   : > { %v2588_v18 = vpack.c.bf16 %v12323_v16, %v12323_v16 }
 0xab3   : > { %10468 = vmatmul.mubr.msk.bf16.vlgmr.msra.gmra.mxu1 %vm1431_vm3, %v2588_v18  ;;  %10492 = vmatmul.mubr.msk.bf16.vlgmr.msra.gmra.mxu0 %vm1431_vm3, %v2588_v18 }
 0xab4   : > { %10472 = vmatpush3.bf16.msra.mxu1 %v11399_v17  ;;  %10479 = vmatprep.mubr.msk.bf16.mxu1 %vm11790_vm0, %v11789_v3 }
 0xab5   : > { %10473 = vmatprep.subr.bf16.mxu1 %v11789_v3  ;;  %10509 = vmatprep.mubr.msk.bf16.mxu0 %vm11790_vm0, %v11789_v3 }
 0xab8   : > { %10474 = vmatpush3.bf16.msra.mxu1 %v11400_v19 }
 0xab9   : > { %10475 = vmatprep.subr.bf16.mxu1 %v11789_v3 }
 0xabc   : > { %10476 = vmatpush3.bf16.msra.mxu1 %v11401_v20 }
 0xabd   : > { %10477 = vmatprep.subr.bf16.mxu1 %v11789_v3 }
 0xac0   : > { %10478 = vmatpush3.bf16.msra.mxu1 %v11402_v22 }
 0xac1   : > { %10495 = vmatprep.subr.bf16.mxu1 %v11789_v3 }
 0xac3   : > { %10480 = vmatmul.mubr.msk.bf16.vlgmr.msra.gmra.mxu1 %vm1431_vm3, %v2588_v18 }
 0xac4   : > { %10496 = vmatpush3.bf16.msra.mxu1 %v11403_v23  ;;  %10503 = vmatprep.mubr.msk.bf16.mxu1 %vm11790_vm0, %v11789_v3 }
 0xac5   : > { %10497 = vmatprep.subr.bf16.mxu1 %v11789_v3 }
 0xac8   : > { %10498 = vmatpush3.bf16.msra.mxu1 %v11404_v24 }
 0xac9   : > { %10499 = vmatprep.subr.bf16.mxu1 %v11789_v3 }
 0xacc   : > { %10500 = vmatpush3.bf16.msra.mxu1 %v11405_v25 }
 0xacd   : > { %10501 = vmatprep.subr.bf16.mxu1 %v11789_v3 }
 0xad0   : > { %10502 = vmatpush3.bf16.msra.mxu1 %v11406_v26 }
 0xad1   : > { %10519 = vmatprep.subr.bf16.mxu1 %v11789_v3 }
 0xad3   : > { %10504 = vmatmul.mubr.msk.bf16.vlgmr.msra.gmra.mxu1 %vm1431_vm3, %v2588_v18 }
 0xad4   : > { %10521 = vmatprep.mubr.msk.bf16.mxu1 %vm11790_vm0, %v11789_v3 }
 0xb73   : > { %v2712_v30 = vpop.f32.mrf.mxu1  ;;  %v2840_v31 = vpop.f32.mrf.mxu0 }
 0xb74   : > { %v2713_v32 = vadd.f32 %v9418_v29, %v2712_v30  ;;  %v2841_v46 = vadd.f32 %v9420_v42, %v2840_v31 }
 0xb75   : > { %v10469_v33 = vpop.f32.mrf.mxu1  ;;  %v10493_v34 = vpop.f32.mrf.mxu0 }
 0xb76   : > { %v12356_v35 = vpack.c.bf16 %v2713_v32, %v2713_v32  ;;  %v12366_v49 = vpack.c.bf16 %v2841_v46, %v2841_v46 }
 0xb77   : > { %v2715_v9 = vpop.f32.mrf.mxu1  ;;  %v2843_v36 = vpop.f32.mrf.mxu0 }
 0xb78   : > { %2926 = vrot.lane.b32.xlu0 %v12356_v35, %s13450_s16 }
 0xb79   : > { %v10470_v37 = vpop.f32.mrf.mxu1  ;;  %v10494_v38 = vpop.f32.mrf.mxu0 }
 0xb83   : > { %v2776_v43 = vpop.f32.mrf.mxu1 }
 0xb84   : > { %v2777_v44 = vadd.f32 %v9419_v39, %v2776_v43 }
 0xb85   : > { %v10481_v45 = vpop.f32.mrf.mxu1 }
 0xb86   : > { %v12362_v47 = vpack.c.bf16 %v2777_v44, %v2777_v44 }
 0xb87   : > { %v2779_v41 = vpop.f32.mrf.mxu1 }
 0xb88   : > { %2975 = vrot.lane.b32.xlu1 %v12362_v47, %s13450_s16 }
 0xb89   : > { %v10482_v48 = vpop.f32.mrf.mxu1 }
 0xb8c   : > { %3024 = vrot.lane.b32.xlu1 %v12366_v49, %s13450_s16 }
 0xb93   : > { %v2904_v51 = vpop.f32.mrf.mxu1 }
 0xb94   : > { %v2905_v52 = vadd.f32 %v9421_v50, %v2904_v51 }
 0xb95   : > { %v10505_v53 = vpop.f32.mrf.mxu1 }
 0xb96   : > { %v12371_v56 = vpack.c.bf16 %v2905_v52, %v2905_v52 }
 0xb97   : > { %v2907_v57 = vpop.f32.mrf.mxu1 }
 0xb98   : > { %3073 = vrot.lane.b32.xlu0 %v12371_v56, %s13450_s16 }
 0xb99   : > { %v10506_v58 = vpop.f32.mrf.mxu1 }
 0xbea   : > { %v2927_v59 = vpop.permute.xlu0 %2926 }
 0xbeb   : > { %v2932_v60 = vsel %vm1689_vm4, %v2927_v59, 0 }
 0xbec   : > { %10508 = vmatpush3.bf16.xpose.msra.mxu0 %v2932_v60 }
 0xbed   : > { %10513 = vmatprep.subr.bf16.mxu0 %v11789_v3 }
 0xbf3   : > { %10510 = vmatmul.mubr.msk.bf16.vlgmr.msra.gmra.mxu0 %vm1689_vm4, %v12356_v35 }
 0xbf4   : > { %10515 = vmatprep.mubr.msk.bf16.mxu0 %vm11790_vm0, %v11789_v3 }
 0xbfa   : > { %v2976_v40 = vpop.permute.xlu1 %2975 }
 0xbfb   : > { %v2981_v61 = vsel %vm1689_vm4, %v2976_v40, 0 }
 0xbfc   : > { %10514 = vmatpush3.bf16.xpose.msra.mxu0 %v2981_v61 }
 0xbfd   : > { %10525 = vmatprep.subr.bf16.mxu0 %v11789_v3 }
 0xbfe   : > { %v3025_v54 = vpop.permute.xlu1 %3024 }
 0xbff   : > { %v3030_v62 = vsel %vm1689_vm4, %v3025_v54, 0 }
 0xc00   : > { %10520 = vmatpush3.bf16.xpose.msra.mxu1 %v3030_v62 }
 0xc01   : > { %10531 = vmatprep.subr.bf16.mxu1 %v11789_v3 }
 0xc03   : > { %10516 = vmatmul.mubr.msk.bf16.vlgmr.msra.gmra.mxu0 %vm1689_vm4, %v12362_v47 }
 0xc04   : > { %10527 = vmatprep.mubr.msk.bf16.mxu0 %vm11790_vm0, %v11789_v3 }
 0xc07   : > { %10522 = vmatmul.mubr.msk.bf16.vlgmr.msra.gmra.mxu1 %vm1689_vm4, %v12366_v49 }
 0xc08   : > { %10533 = vmatprep.mubr.msk.bf16.mxu1 %vm11790_vm0, %v11789_v3 }
 0xc0a   : > { %v3074_v63 = vpop.permute.xlu0 %3073 }
 0xc0b   : > { %v3079_v0 = vsel %vm1689_vm4, %v3074_v63, 0 }
 0xc0c   : > { %10526 = vmatpush3.bf16.xpose.msra.mxu0 %v3079_v0 }
 0xc0d   : > { %10537 = vmatprep.subr.bf16.mxu0 %v11789_v3 }
 0xc13   : > { %10528 = vmatmul.mubr.msk.bf16.vlgmr.msra.gmra.mxu0 %vm1689_vm4, %v12371_v56 }
 0xc14   : > { %10539 = vmatprep.mubr.msk.bf16.mxu0 %vm11790_vm0, %v11789_v3 }
 0xcb3   : > { %v2968_v1 = vpop.f32.mrf.mxu0 }
 0xcb4   : > { %v2969_v2 = vadd.f32 %v12181_v5, %v2968_v1 }
 0xcb5   : > { %v10511_v55 = vpop.f32.mrf.mxu0 }
 0xcb6   : > { %v3121_v4 = vsel %vm1883_vm5, %v2969_v2, -inf }
 0xcb7   : > { %3122 = vmax.xlane.f32.xlu1 %v3121_v4  ;;  %v2971_v6 = vpop.f32.mrf.mxu0 }
 0xcb9   : > { %v10512_v7 = vpop.f32.mrf.mxu0 }
 0xcc3   : > { %v3017_v8 = vpop.f32.mrf.mxu0 }
 0xcc4   : > { %v3018_v12 = vadd.f32 %v12181_v5, %v3017_v8 }
 0xcc5   : > { %v10517_v13 = vpop.f32.mrf.mxu0 }
 0xcc6   : > { %v3124_v14 = vsel %vm1883_vm5, %v3018_v12, -inf }
 0xcc7   : > { %v3066_v15 = vpop.f32.mrf.mxu1  ;;  %3125 = vmax.xlane.f32.xlu0 %v3124_v14  ;;  %v3020_v21 = vpop.f32.mrf.mxu0 }
 0xcc8   : > { %v3067_v17 = vadd.f32 %v12181_v5, %v3066_v15  ;;  %v11407_v15 = vld [vmem:[%s13512_s19 + $0x20] sm:$0xff]   ;;  %v11408_v21 = vld [vmem:[%s13512_s19 + $0x28] sm:$0xff]  }
 0xcc9   : > { %v10518_v18 = vpop.f32.mrf.mxu0  ;;  %v10523_v19 = vpop.f32.mrf.mxu1 }
 0xcca   : > { %v3127_v20 = vsel %vm1883_vm5, %v3067_v17, -inf  ;;  %v11410_v18 = vld [vmem:[%s13512_s19 + $0x30] sm:$0xff]  }
 0xccb   : > { %v3069_v22 = vpop.f32.mrf.mxu1  ;;  %3128 = vmax.xlane.f32.xlu0 %v3127_v20 }
 0xccd   : > { %v10524_v23 = vpop.f32.mrf.mxu1 }
 0xcd3   : > { %v3115_v24 = vpop.f32.mrf.mxu0 }
 0xcd4   : > { %v3116_v25 = vadd.f32 %v12181_v5, %v3115_v24 }
 0xcd5   : > { %v10529_v26 = vpop.f32.mrf.mxu0 }
 0xcd6   : > { %v3130_v29 = vsel %vm1883_vm5, %v3116_v25, -inf }
 0xcd7   : > { %3131 = vmax.xlane.f32.xlu1 %v3130_v29  ;;  %v3118_v30 = vpop.f32.mrf.mxu0 }
 0xcd9   : > { %v10530_v31 = vpop.f32.mrf.mxu0 }
 0xce8   : > { %3217 = vrot.lane.b32.xlu1 %v12362_v47, %s13448_s26 }
 0xd40   : > { %v3123_v32 = vpop.xlane.xlu1 %3122 }
 0xd41   : > { %v3133_v33 = vsub.f32 %v2969_v2, %v3123_v32 }
 0xd43   : > { %v3137_v34 = vmul.f32 1.442695, %v3133_v33 }
 0xd45   : > { %11583 = vpow2.f32 %v3137_v34 }
 0xd50   : > { %v3126_v9 = vpop.xlane.xlu0 %3125 }
 0xd51   : > { %v3134_v36 = vsub.f32 %v3018_v12, %v3126_v9 }
 0xd52   : > { %v11584_v37 = vpop.eup %11583 }
 0xd53   : > { %v3139_v38 = vmul.f32 1.442695, %v3134_v36  ;;  %v3145_v39 = vsel %vm1883_vm5, %v11584_v37, 0.0 }
 0xd54   : > { %3146 = vadd.xlane.f32.xlu0 %v3145_v39  ;;  %v3129_v41 = vpop.xlane.xlu0 %3128 }
 0xd55   : > { %11585 = vpow2.f32 %v3139_v38  ;;  %v3135_v48 = vsub.f32 %v3067_v17, %v3129_v41 }
 0xd57   : > { %v3141_v52 = vmul.f32 1.442695, %v3135_v48 }
 0xd60   : > { %v3132_v5 = vpop.xlane.xlu1 %3131 }
 0xd61   : > { %v3136_v42 = vsub.f32 %v3116_v25, %v3132_v5  ;;  %v11409_v25 = vld [vmem:[%s13512_s19 + $0x38] sm:$0xff]   ;;  %s13539_s19 = sld [smem:[#allocation31_spill]] }
 0xd62   : > { %v11586_v43 = vpop.eup %11585 }
 0xd63   : > { %v3143_v44 = vmul.f32 1.442695, %v3136_v42  ;;  %v3148_v45 = vsel %vm1883_vm5, %v11586_v43, 0.0 }
 0xd64   : > { %3149 = vadd.xlane.f32.xlu1 %v3148_v45  ;;  %v3218_v46 = vpop.permute.xlu1 %3217 }
 0xd65   : > { %11587 = vpow2.f32 %v3143_v44  ;;  %v3223_v47 = vsel %vm1937_vm6, %v3218_v46, 0 }
 0xd66   : > { %10538 = vmatpush3.bf16.msra.mxu0 %v3223_v47  ;;  %11589 = vpow2.f32 %v3141_v52 }
 0xd67   : > { %10549 = vmatprep.subr.bf16.mxu0 %v11789_v3 }
 0xd6a   : > { %3169 = vrot.lane.b32.xlu0 %v12356_v35, %s13448_s26 }
 0xd72   : > { %v11588_v50 = vpop.eup %11587 }
 0xd73   : > { %v3154_v51 = vsel %vm1883_vm5, %v11588_v50, 0.0  ;;  %v11590_v53 = vpop.eup %11589 }
 0xd74   : > { %3155 = vadd.xlane.f32.xlu1 %v3154_v51  ;;  %v3151_v57 = vsel %vm1883_vm5, %v11590_v53, 0.0 }
 0xd85   : > { %3265 = vrot.lane.b32.xlu1 %v12366_v49, %s13448_s26 }
 0xd89   : > { %3152 = vadd.xlane.f32.xlu0 %v3151_v57 }
 0xd9f   : > { %3313 = vrot.lane.b32.xlu0 %v12371_v56, %s13448_s26  ;;  %s13526_s26 = sld [smem:[#allocation6_spill]] }
 0xda5   : > { %s1246_s16 = scalar_lea.vmem %s13526_s26, %s12063_s10  ;;  %s13528_s26 = sld [smem:[#allocation25_spill]] }
 0xddd   : > { %v3147_v58 = vpop.xlane.xlu0 %3146 }
 0xdde   : > { %11591 = vrcp.f32 %v3147_v58 }
 0xde1   : > { %v3170_v35 = vpop.permute.xlu0 %3169 }
 0xde2   : > { %v3175_v59 = vsel %vm1937_vm6, %v3170_v35, 0 }
 0xde3   : > { %10532 = vmatpush3.bf16.msra.mxu1 %v3175_v59 }
 0xde4   : > { %10543 = vmatprep.subr.bf16.mxu1 %v11789_v3 }
 0xdeb   : > { %v11592_v60 = vpop.eup %11591 }
 0xdec   : > { %v3158_v40 = vmul.f32 %v11592_v60, %v11584_v37 }
 0xded   : > { %v3150_v61 = vpop.xlane.xlu1 %3149 }
 0xdee   : > { %11593 = vrcp.f32 %v3150_v61  ;;  %v3165_v54 = vpack.c.bf16 %v3158_v40, %v3158_v40 }
 0xdf0   : > { %10534 = vmatmul.mubr.msk.bf16.vlgmr.msra.gmra.mxu1 %vm1883_vm5, %v3165_v54 }
 0xdf1   : > { %10545 = vmatprep.mubr.msk.bf16.mxu1 %vm11790_vm0, %v11789_v3 }
 0xdfb   : > { %v11594_v49 = vpop.eup %11593 }
 0xdfc   : > { %v3160_v56 = vmul.f32 %v11594_v49, %v11586_v43 }
 0xdfd   : > { %v3156_v62 = vpop.xlane.xlu1 %3155 }
 0xdfe   : > { %v3166_v63 = vpack.c.bf16 %v3160_v56, %v3160_v56  ;;  %11595 = vrcp.f32 %v3156_v62  ;;  %v9467_v56 = vld [vmem:[%s13510_s24 + $0x1] ss:$0 sm:$0xff]  ;;  %s13544_s24 = sld [smem:[#allocation33_spill]] }
 0xe00   : > { %10540 = vmatmul.mubr.msk.bf16.vlgmr.msra.gmra.mxu0 %vm1883_vm5, %v3166_v63 }
 0xe01   : > { %v3266_v0 = vpop.permute.xlu1 %3265  ;;  %10551 = vmatprep.mubr.msk.bf16.mxu0 %vm11790_vm0, %v11789_v3 }
 0xe02   : > { %v3271_v1 = vsel %vm1937_vm6, %v3266_v0, 0 }
 0xe03   : > { %10544 = vmatpush3.bf16.msra.mxu1 %v3271_v1 }
 0xe04   : > { %10555 = vmatprep.subr.bf16.mxu1 %v11789_v3 }
 0xe0b   : > { %v11596_v2 = vpop.eup %11595 }
 0xe0c   : > { %v3164_v4 = vmul.f32 %v11596_v2, %v11588_v50 }
 0xe0e   : > { %v3168_v8 = vpack.c.bf16 %v3164_v4, %v3164_v4 }
 0xe12   : > { %v3153_v55 = vpop.xlane.xlu0 %3152 }
 0xe13   : > { %11597 = vrcp.f32 %v3153_v55 }
 0xe16   : > { %v3314_v6 = vpop.permute.xlu0 %3313 }
 0xe17   : > { %v3319_v7 = vsel %vm1937_vm6, %v3314_v6, 0 }
 0xe18   : > { %10550 = vmatpush3.bf16.msra.mxu0 %v3319_v7 }
 0xe19   : > { %10561 = vmatprep.subr.bf16.mxu0 %v11789_v3 }
 0xe1b   : > { %10552 = vmatmul.mubr.msk.bf16.vlgmr.msra.gmra.mxu0 %vm1883_vm5, %v3168_v8 }
 0xe1c   : > { %10563 = vmatprep.mubr.msk.bf16.mxu0 %vm11790_vm0, %v11789_v3  ;;  %10562 = vmatpush3.bf16.msra.mxu0 %v11408_v21  ;;  %v11414_v21 = vld [vmem:[%s13507_s30 + $0x20] sm:$0xff]  }
 0xe1d   : > { %10573 = vmatprep.subr.bf16.mxu0 %v11789_v3 }
 0xe20   : > { %v11598_v12 = vpop.eup %11597 }
 0xe21   : > { %v3162_v13 = vmul.f32 %v11598_v12, %v11590_v53 }
 0xe23   : > { %v3167_v14 = vpack.c.bf16 %v3162_v13, %v3162_v13  ;;  %v3854_v13 = vld [vmem:[%s1246_s16] sm:$0xff]  ;;  %s13527_s16 = sld [smem:[#allocation12_spill]] }
 0xe25   : > { %10546 = vmatmul.mubr.msk.bf16.vlgmr.msra.gmra.mxu1 %vm1883_vm5, %v3167_v14  ;;  %v11411_v14 = vld [vmem:[%s13507_s30 + $0x38] sm:$0xff]  }
 0xe26   : > { %10557 = vmatprep.mubr.msk.bf16.mxu1 %vm11790_vm0, %v11789_v3  ;;  %10556 = vmatpush3.bf16.msra.mxu1 %v11407_v15  ;;  %v11413_v15 = vld [vmem:[%s13507_s30 + $0x28] sm:$0xff]  }
 0xe27   : > { %10567 = vmatprep.subr.bf16.mxu1 %v11789_v3 }
 0xeb0   : > { %v3211_v17 = vpop.f32.mrf.mxu1 }
 0xeb1   : > { %v3361_v19 = vpack.c.bf16 %v3211_v17, %v3211_v17  ;;  %v11415_v17 = vld [vmem:[%s13514_s12 + $0x78] sm:$0xff]  }
 0xeb2   : > { %v10535_v20 = vpop.f32.mrf.mxu1 }
 0xeb3   : > { %10558 = vmatmul.mubr.msk.bf16.vlgmr.msra.gmra.mxu1 %vm1689_vm4, %v3361_v19  ;;  %v11417_v19 = vld [vmem:[%s13514_s12 + $0x68] sm:$0xff]   ;;  %v11418_v20 = vld [vmem:[%s13514_s12 + $0x60] sm:$0xff]  }
 0xeb4   : > { %v3214_v22 = vpop.f32.mrf.mxu1  ;;  %10568 = vmatpush3.bf16.msra.mxu1 %v11410_v18  ;;  %10569 = vmatprep.mubr.msk.bf16.mxu1 %vm11790_vm0, %v11789_v3  ;;  %v11416_v18 = vld [vmem:[%s13514_s12 + $0x70] sm:$0xff]  }
 0xeb5   : > { %10579 = vmatprep.subr.bf16.mxu1 %v11789_v3  ;;  %v11419_v22 = vld [vmem:[%s13514_s12 + $0x58] sm:$0xff]  }
 0xeb6   : > { %v10536_v23 = vpop.f32.mrf.mxu1 }
 0xeb7   : > { %v11420_v23 = vld [vmem:[%s13514_s12 + $0x50] sm:$0xff]  }
 0xec0   : > { %v3259_v24 = vpop.f32.mrf.mxu0 }
 0xec1   : > { %v3362_v26 = vpack.c.bf16 %v3259_v24, %v3259_v24  ;;  %v11422_v24 = vld [vmem:[%s13514_s12 + $0x48] sm:$0xff]  }
 0xec2   : > { %v10541_v29 = vpop.f32.mrf.mxu0 }
 0xec3   : > { %10564 = vmatmul.mubr.msk.bf16.vlgmr.msra.gmra.mxu0 %vm1689_vm4, %v3362_v26 }
 0xec4   : > { %v3262_v30 = vpop.f32.mrf.mxu0  ;;  %10574 = vmatpush3.bf16.msra.mxu0 %v11409_v25  ;;  %10575 = vmatprep.mubr.msk.bf16.mxu0 %vm11790_vm0, %v11789_v3 }
 0xec5   : > { %10591 = vmatprep.subr.bf16.mxu0 %v11789_v3  ;;  %v12492_v30 = vld [vmem:[%s13509_s27 + $0x2] sm:$0x3]  ;;  %s13545_s27 = sld [smem:[#allocation34_spill]] }
 0xec6   : > { %v10542_v31 = vpop.f32.mrf.mxu0 }
 0xec7   : > { %v12495_v31 = vld [vmem:[%s13517_s4 + $0x2] sm:$0x3]  ;;  %s13529_s4 = sld [smem:[#allocation10_spill]] }
 0xedb   : > { %v3355_v32 = vpop.f32.mrf.mxu0 }
 0xedc   : > { %v3364_v33 = vpack.c.bf16 %v3355_v32, %v3355_v32  ;;  %v3592_v32 = vrot.slane %v12492_v30, %v12275_v28 }
 0xedd   : > { %v10553_v34 = vpop.f32.mrf.mxu0 }
 0xede   : > { %10576 = vmatmul.mubr.msk.bf16.vlgmr.msra.gmra.mxu0 %vm1689_vm4, %v3364_v33 }
 0xedf   : > { %v3358_v9 = vpop.f32.mrf.mxu0  ;;  %10607 = vmatprep.mubr.msk.bf16.mxu0 %vm11790_vm0, %v11789_v3  ;;  %10592 = vmatpush3.bf16.msra.mxu0 %v11415_v17 }
 0xee0   : > { %10593 = vmatprep.subr.bf16.mxu0 %v11789_v3  ;;  %v3597_v9 = vrot.slane %v12495_v31, %v12275_v28 }
 0xee1   : > { %v10554_v36 = vpop.f32.mrf.mxu0 }
 0xee3   : > { %10594 = vmatpush3.bf16.msra.mxu0 %v11416_v18 }
 0xee4   : > { %10595 = vmatprep.subr.bf16.mxu0 %v11789_v3 }
 0xee5   : > { %v3307_v37 = vpop.f32.mrf.mxu1 }
 0xee6   : > { %v3363_v38 = vpack.c.bf16 %v3307_v37, %v3307_v37 }
 0xee7   : > { %v10547_v39 = vpop.f32.mrf.mxu1  ;;  %10596 = vmatpush3.bf16.msra.mxu0 %v11417_v19 }
 0xee8   : > { %10570 = vmatmul.mubr.msk.bf16.vlgmr.msra.gmra.mxu1 %vm1689_vm4, %v3363_v38  ;;  %10597 = vmatprep.subr.bf16.mxu0 %v11789_v3  ;;  %v3864_v39 = vld [vmem:[%s13527_s16 + $0x18] sm:$0xff] }
 0xee9   : > { %v3310_v5 = vpop.f32.mrf.mxu1  ;;  %10587 = vmatprep.mubr.msk.bf16.mxu1 %vm11790_vm0, %v11789_v3  ;;  %10580 = vmatpush3.bf16.msra.mxu1 %v11411_v14 }
 0xeea   : > { %10581 = vmatprep.subr.bf16.mxu1 %v11789_v3  ;;  %v3863_v5 = vld [vmem:[%s13527_s16 + $0x10] sm:$0xff] }
 0xeeb   : > { %v10548_v42 = vpop.f32.mrf.mxu1  ;;  %10598 = vmatpush3.bf16.msra.mxu0 %v11418_v20 }
 0xeec   : > { %10599 = vmatprep.subr.bf16.mxu0 %v11789_v3 }
 0xeef   : > { %10600 = vmatpush3.bf16.msra.mxu0 %v11419_v22 }
 0xef0   : > { %10601 = vmatprep.subr.bf16.mxu0 %v11789_v3 }
 0xef3   : > { %10602 = vmatpush3.bf16.msra.mxu0 %v11420_v23 }
 0xef4   : > { %10603 = vmatprep.subr.bf16.mxu0 %v11789_v3 }
 0xef7   : > { %10604 = vmatpush3.bf16.msra.mxu0 %v11422_v24 }
 0xef8   : > { %10605 = vmatprep.subr.bf16.mxu0 %v11789_v3 }
 0xf73   : > { %v3408_v43 = vpop.f32.mrf.mxu1 }
 0xf74   : > { %v3561_v35 = vsel %vm1431_vm3, %v3408_v43, 0.0  ;;  %v3862_v43 = vld [vmem:[%s13527_s16 + $0x8] sm:$0xff] }
 0xf75   : > { %v10559_v44 = vpop.f32.mrf.mxu1 }
 0xf76   : > { %v3861_v44 = vld [vmem:[%s13527_s16] sm:$0xff]  ;;  %s13538_s16 = sld [smem:[#allocation40_spill]] }
 0xf77   : > { %v3411_v45 = vpop.f32.mrf.mxu1 }
 0xf78   : > { %v11421_v45 = vld [vmem:[%s13528_s26 + $0x18] sm:$0xff]  }
 0xf79   : > { %v10560_v46 = vpop.f32.mrf.mxu1 }
 0xf83   : > { %v3457_v47 = vpop.f32.mrf.mxu0 }
 0xf84   : > { %v3562_v58 = vsel %vm1431_vm3, %v3457_v47, 0.0  ;;  %v11424_v47 = vld [vmem:[%s13514_s12 + $0x40] sm:$0xff]   ;;  %s13535_s12 = sld [smem:[#allocation28_spill]] }
 0xf85   : > { %v10565_v41 = vpop.f32.mrf.mxu0  ;;  %v3563_v59 = vadd.f32 %v3562_v58, %v3561_v35  ;;  %10606 = vmatpush3.bf16.msra.mxu0 %v11424_v47  ;;  %v11426_v35 = vld [vmem:[%s13528_s26 + $0x38] sm:$0xff]  }
 0xf86   : > { %v11425_v41 = vld [vmem:[%s13528_s26 + $0x8] sm:$0xff]   ;;  %10634 = vmatprep.subr.bf16.mxu0 %v11789_v3 }
 0xf87   : > { %v3460_v48 = vpop.f32.mrf.mxu0 }
 0xf88   : > { %v11427_v48 = vld [vmem:[%s13528_s26] sm:$0xff]  }
 0xf89   : > { %v10566_v50 = vpop.f32.mrf.mxu0 }
 0xf8a   : > { %v9477_v50 = vld [vmem:[%s13516_s6 + $0x1] ss:$0 sm:$0xff]  ;;  %s13532_s6 = sld [smem:[#allocation8_spill]] }
 0xf90   : > { %s12623_s8 = scalar_lea.vmem %s13532_s6, %s12063_s10  ;;  %s13533_s6 = smov 96  }
 0xf91   : > { %s13534_s10 = sld [smem:[#allocation27_spill]] }
 0xf9e   : > { %v3555_v51 = vpop.f32.mrf.mxu0 }
 0xf9f   : > { %v3566_v49 = vsel %vm1431_vm3, %v3555_v51, 0.0 }
 0xfa0   : > { %v10577_v52 = vpop.f32.mrf.mxu0 }
 0xfa2   : > { %v3558_v53 = vpop.f32.mrf.mxu0 }
 0xfa4   : > { %v10578_v57 = vpop.f32.mrf.mxu0 }
 0xfa8   : > { %v3506_v60 = vpop.f32.mrf.mxu1 }
 0xfa9   : > { %v3564_v40 = vsel %vm1431_vm3, %v3506_v60, 0.0 }
 0xfaa   : > { %v3565_v61 = vadd.f32 %v3564_v40, %v3563_v59  ;;  %v10571_v54 = vpop.f32.mrf.mxu1  ;;  %v3865_v40 = vld [vmem:[%s13529_s4] sm:$0xff]  ;;  %s13530_s4 = sld [smem:[#allocation26_spill]] }
 0xfab   : > { %v11428_v54 = vld [vmem:[%s13528_s26 + $0x30] sm:$0xff]  }
 0xfac   : > { %v3567_v62 = vadd.f32 %v3566_v49, %v3565_v61  ;;  %v3509_v63 = vpop.f32.mrf.mxu1 }
 0xfae   : > { %v10572_v0 = vpop.f32.mrf.mxu1  ;;  %v3574_v1 = vadd.f32 %v9467_v56, %v3567_v62  ;;  %v11429_v62 = vld [vmem:[%s13528_s26 + $0x58] sm:$0xff]  }
 0xfaf   : > { %v11430_v0 = vld [vmem:[%s13528_s26 + $0x28] sm:$0xff]  }
 0xfb0   : > { %v3575_v2 = vadd.f32 %v3574_v1, %v12323_v16  ;;  %v11412_v16 = vld [vmem:[%s13507_s30 + $0x30] sm:$0xff]   ;;  %v9514_v24 = vld [vmem:[%s13530_s4 + $0x1] ss:$0 sm:$0xff]  ;;  %s13547_s30 = sld [smem:[#allocation37_spill]] }
 0xfb1   : > { %10582 = vmatpush3.bf16.msra.mxu1 %v11412_v16  ;;  %v11431_v1 = vld [vmem:[%s13528_s26 + $0x50] sm:$0xff]  }
 0xfb2   : > { %v3576_v55 = vsel %vm1431_vm3, %v3575_v2, 0.0  ;;  %10583 = vmatprep.subr.bf16.mxu1 %v11789_v3 }
 0xfb3   : > { %3577 = vadd.xlane.f32.xlu1 %v3576_v55  ;;  %v11433_v55 = vld [vmem:[%s13528_s26 + $0x48] sm:$0xff]  }
 0xfb5   : > { %10584 = vmatpush3.bf16.msra.mxu1 %v11413_v15  ;;  %v9513_v15 = vld [vmem:[%s13530_s4] ss:$0 sm:$0xff] }
 0xfb6   : > { %10585 = vmatprep.subr.bf16.mxu1 %v11789_v3 }
 0xfb9   : > { %10586 = vmatpush3.bf16.msra.mxu1 %v11414_v21 }
 0xfba   : > { %10611 = vmatprep.subr.mxu1 %v11789_v3 }
0x103c   : > { %v3578_v4 = vpop.xlane.xlu1 %3577 }
0x103d   : > { %v3579_v6 = vmul.f32 0.015625, %v3578_v4  ;;  %v11434_v4 = vld [vmem:[%s13528_s26 + $0x78] sm:$0xff]  }
0x103f   : > { %v3580_v7 = vsub.f32 %v3575_v2, %v3579_v6  ;;  %v11432_v2 = vld [vmem:[%s13528_s26 + $0x20] sm:$0xff]  }
0x1040   : > { %v11435_v6 = vld [vmem:[%s13528_s26 + $0x40] sm:$0xff]  }
0x1041   : > { %v3581_v8 = vmul.f32 %v3580_v7, %v3580_v7 }
0x1043   : > { %v3582_v12 = vsel %vm1431_vm3, %v3581_v8, 0.0  ;;  %v11437_v8 = vld [vmem:[%s13528_s26 + $0x68] sm:$0xff]  }
0x1044   : > { %3583 = vadd.xlane.f32.xlu0 %v3582_v12  ;;  %v11438_v12 = vld [vmem:[%s13528_s26 + $0x60] sm:$0xff]  }
0x105a   : > { %3856 = vperm.xlu0 %11358, %v3854_v13  }
0x10cd   : > { %v3584_v25 = vpop.xlane.xlu0 %3583 }
0x10ce   : > { %v3585_v26 = vmul.f32 0.015625, %v3584_v25 }
0x10d0   : > { %v3586_v29 = vadd.f32 1e-05, %v3585_v26 }
0x10d2   : > { %11599 = vrsqrt.f32 %v3586_v29 }
0x10d5   : > { %v3857_v42 = vpop.permute.xlu0 %3856 }
0x10d6   : > { %vm3858_vm7 = vcmp.eq.s32.totalorder %v12081_v11, %v3857_v42  ;;  %v11423_v11 = vld [vmem:[%s13528_s26 + $0x10] sm:$0xff]  }
0x10d7   : > { %v9511_v46 = vsel %vm3858_vm7, 1.0, %v11789_v3 }
0x10df   : > { %v11600_v33 = vpop.eup %11599 }
0x10e0   : > { %v3588_v34 = vmul.f32 %v11600_v33, %v3580_v7  ;;  %v11436_v7 = vld [vmem:[%s13528_s26 + $0x70] sm:$0xff]  }
0x10e2   : > { %v3593_v36 = vmul.f32 %v3592_v32, %v3588_v34  ;;  %v9515_v34 = vld [vmem:[%s13530_s4 + $0x2] ss:$0 sm:$0xff] }
0x10e4   : > { %v12501_v37 = vadd.f32 %v3597_v9, %v3593_v36 }
0x10e6   : > { %v3599_v38 = vpack.c.bf16 %v12501_v37, %v12501_v37 }
0x10e8   : > { %10588 = vmatmul.mubr.msk.bf16.vlgmr.msra.gmra.mxu1 %vm1431_vm3, %v3599_v38 }
0x10e9   : > { %10612 = vmatpush3.msra.mxu1 %v3864_v39  ;;  %10619 = vmatprep.mubr.msk.f32.mxu1 %vm11790_vm0, %v11789_v3 }
0x10ea   : > { %10613 = vmatprep.subr.mxu1 %v11789_v3 }
0x10eb   : > { %10614 = vmatpush3.msra.mxu1 %v3863_v5 }
0x10ec   : > { %10615 = vmatprep.subr.mxu1 %v11789_v3 }
0x10ed   : > { %10616 = vmatpush3.msra.mxu1 %v3862_v43 }
0x10ee   : > { %10617 = vmatprep.subr.mxu1 %v11789_v3 }
0x10ef   : > { %10618 = vmatpush3.msra.mxu1 %v3861_v44  ;;  %v9516_v44 = vld [vmem:[%s13530_s4 + $0x3] ss:$0 sm:$0xff] }
0x10f0   : > { %10620 = vmatmul.mubr.msk.f32.vlgmr.msra.gmra.mxu1 %vm1270_vm1, %v9511_v46  ;;  %10622 = vmatprep.subr.bf16.mxu1 %v11789_v3 }
0x10f1   : > { %10623 = vmatpush3.bf16.msra.mxu1 %v11421_v45  ;;  %10630 = vmatprep.mubr.msk.bf16.mxu1 %vm11790_vm0, %v11789_v3 }
0x10f2   : > { %10624 = vmatprep.subr.bf16.mxu1 %v11789_v3 }
0x10f5   : > { %10625 = vmatpush3.bf16.msra.mxu1 %v11423_v11 }
0x10f6   : > { %10626 = vmatprep.subr.bf16.mxu1 %v11789_v3 }
0x10f9   : > { %10627 = vmatpush3.bf16.msra.mxu1 %v11425_v41 }
0x10fa   : > { %10628 = vmatprep.subr.bf16.mxu1 %v11789_v3 }
0x10fd   : > { %10629 = vmatpush3.bf16.msra.mxu1 %v11427_v48 }
0x10fe   : > { %10646 = vmatprep.subr.bf16.mxu1 %v11789_v3 }
0x11a8   : > { %v3678_v51 = vpop.f32.mrf.mxu1 }
0x11a9   : > { %v3679_v52 = vadd.f32 %v9477_v50, %v3678_v51 }
0x11aa   : > { %v10589_v53 = vpop.f32.mrf.mxu1 }
0x11ab   : > { %v3684_v57 = vmax.f32 %v3679_v52, 0.0 }
0x11ac   : > { %v3681_v58 = vpop.f32.mrf.mxu1 }
0x11ad   : > { %v3685_v59 = vpack.c.bf16 %v3684_v57, %v3684_v57 }
0x11ae   : > { %v10590_v60 = vpop.f32.mrf.mxu1 }
0x11af   : > { %10608 = vmatmul.mubr.bf16.vlgmr.msra.gmra.mxu0 %v3685_v59  ;;  %v3853_v60 = vld [vmem:[%s12623_s8] sm:$0xff] }
0x11b0   : > { %10635 = vmatpush3.bf16.msra.mxu0 %v11426_v35  ;;  %v3935_v61 = vpop.f32.mrf.mxu1  ;;  %10642 = vmatprep.mubr.msk.bf16.mxu0 %vm11790_vm0, %v11789_v3 }
0x11b1   : > { %v12537_v49 = vadd.f32 %v3935_v61, %v3865_v40  ;;  %10636 = vmatprep.subr.bf16.mxu0 %v11789_v3 }
0x11b2   : > { %v10621_v56 = vpop.f32.mrf.mxu1 }
0x11b3   : > { %v3941_v63 = vpack.c.bf16 %v12537_v49, %v12537_v49 }
0x11b4   : > { %10637 = vmatpush3.bf16.msra.mxu0 %v11428_v54 }
0x11b5   : > { %10631 = vmatmul.mubr.msk.bf16.vlgmr.msra.gmra.mxu1 %vm1431_vm3, %v3941_v63  ;;  %10638 = vmatprep.subr.bf16.mxu0 %v11789_v3 }
0x11b6   : > { %10647 = vmatpush3.bf16.msra.mxu1 %v11429_v62  ;;  %10654 = vmatprep.mubr.msk.bf16.mxu1 %vm11790_vm0, %v11789_v3 }
0x11b7   : > { %10648 = vmatprep.subr.bf16.mxu1 %v11789_v3 }
0x11b8   : > { %10639 = vmatpush3.bf16.msra.mxu0 %v11430_v0 }
0x11b9   : > { %10640 = vmatprep.subr.bf16.mxu0 %v11789_v3 }
0x11ba   : > { %10649 = vmatpush3.bf16.msra.mxu1 %v11431_v1 }
0x11bb   : > { %10650 = vmatprep.subr.bf16.mxu1 %v11789_v3 }
0x11bc   : > { %10641 = vmatpush3.bf16.msra.mxu0 %v11432_v2 }
0x11bd   : > { %10658 = vmatprep.subr.bf16.mxu0 %v11789_v3 }
0x11be   : > { %10651 = vmatpush3.bf16.msra.mxu1 %v11433_v55 }
0x11bf   : > { %10643 = vmatmul.mubr.msk.bf16.vlgmr.msra.gmra.mxu0 %vm1431_vm3, %v3941_v63  ;;  %10652 = vmatprep.subr.bf16.mxu1 %v11789_v3 }
0x11c0   : > { %10659 = vmatpush3.bf16.msra.mxu0 %v11434_v4  ;;  %10666 = vmatprep.mubr.msk.bf16.mxu0 %vm11790_vm0, %v11789_v3 }
0x11c1   : > { %10660 = vmatprep.subr.bf16.mxu0 %v11789_v3 }
0x11c2   : > { %10653 = vmatpush3.bf16.msra.mxu1 %v11435_v6 }
0x11c3   : > { %10670 = vmatprep.subr.bf16.mxu1 %v11789_v3 }
0x11c4   : > { %10661 = vmatpush3.bf16.msra.mxu0 %v11436_v7 }
0x11c5   : > { %10655 = vmatmul.mubr.msk.bf16.vlgmr.msra.gmra.mxu1 %vm1431_vm3, %v3941_v63  ;;  %10662 = vmatprep.subr.bf16.mxu0 %v11789_v3 }
0x11c6   : > { %10672 = vmatprep.mubr.msk.bf16.mxu1 %vm11790_vm0, %v11789_v3 }
0x11c8   : > { %10663 = vmatpush3.bf16.msra.mxu0 %v11437_v8 }
0x11c9   : > { %10664 = vmatprep.subr.bf16.mxu0 %v11789_v3 }
0x11cc   : > { %10665 = vmatpush3.bf16.msra.mxu0 %v11438_v12 }
0x11cd   : > { %10682 = vmatprep.subr.bf16.mxu0 %v11789_v3 }
0x11cf   : > { %10667 = vmatmul.mubr.msk.bf16.vlgmr.msra.gmra.mxu0 %vm1431_vm3, %v3941_v63 }
0x11d0   : > { %10684 = vmatprep.mubr.msk.bf16.mxu0 %vm11790_vm0, %v11789_v3 }
0x126f   : > { %v12575_v13 = vpop.f32.mrf.mxu0 }
0x1271   : > { %v10609_v14 = vpop.f32.mrf.mxu0 }
0x1273   : > { %v3796_v16 = vpop.f32.mrf.mxu0 }
0x1275   : > { %v10610_v21 = vpop.f32.mrf.mxu0  ;;  %v4063_v17 = vpop.f32.mrf.mxu1 }
0x1276   : > { %v4064_v18 = vadd.f32 %v9513_v15, %v4063_v17 }
0x1277   : > { %v10632_v19 = vpop.f32.mrf.mxu1 }
0x1278   : > { %v12578_v20 = vpack.c.bf16 %v4064_v18, %v4064_v18 }
0x1279   : > { %v4066_v22 = vpop.f32.mrf.mxu1 }
0x127a   : > { %4275 = vrot.lane.b32.xlu1 %v12578_v20, %s13531_s5 }
0x127b   : > { %v10633_v23 = vpop.f32.mrf.mxu1 }
0x127f   : > { %v4127_v25 = vpop.f32.mrf.mxu0 }
0x1280   : > { %v4128_v26 = vadd.f32 %v9514_v24, %v4127_v25 }
0x1281   : > { %v10644_v29 = vpop.f32.mrf.mxu0 }
0x1282   : > { %v12583_v32 = vpack.c.bf16 %v4128_v26, %v4128_v26 }
0x1283   : > { %v4130_v33 = vpop.f32.mrf.mxu0 }
0x1284   : > { %4324 = vrot.lane.b32.xlu1 %v12583_v32, %s13531_s5 }
0x1285   : > { %v10645_v9 = vpop.f32.mrf.mxu0  ;;  %v4191_v36 = vpop.f32.mrf.mxu1 }
0x1286   : > { %v4192_v38 = vadd.f32 %v9515_v34, %v4191_v36 }
0x1287   : > { %v10656_v39 = vpop.f32.mrf.mxu1 }
0x1288   : > { %v12588_v5 = vpack.c.bf16 %v4192_v38, %v4192_v38 }
0x1289   : > { %v4194_v42 = vpop.f32.mrf.mxu1 }
0x128a   : > { %4373 = vrot.lane.b32.xlu0 %v12588_v5, %s13531_s5 }
0x128b   : > { %v10657_v43 = vpop.f32.mrf.mxu1 }
0x128f   : > { %v4255_v45 = vpop.f32.mrf.mxu0 }
0x1290   : > { %v4256_v46 = vadd.f32 %v9516_v44, %v4255_v45 }
0x1291   : > { %v10668_v11 = vpop.f32.mrf.mxu0 }
0x1292   : > { %v12593_v47 = vpack.c.bf16 %v4256_v46, %v4256_v46 }
0x1293   : > { %v4258_v41 = vpop.f32.mrf.mxu0 }
0x1294   : > { %4422 = vrot.lane.b32.xlu1 %v12593_v47, %s13531_s5 }
0x1295   : > { %v10669_v48 = vpop.f32.mrf.mxu0 }
0x12ec   : > { %v4276_v50 = vpop.permute.xlu1 %4275 }
0x12ed   : > { %v4281_v51 = vsel %vm1689_vm4, %v4276_v50, 0 }
0x12ee   : > { %10671 = vmatpush3.bf16.xpose.msra.mxu1 %v4281_v51 }
0x12ef   : > { %10676 = vmatprep.subr.bf16.mxu1 %v11789_v3 }
0x12f5   : > { %10673 = vmatmul.mubr.msk.bf16.vlgmr.msra.gmra.mxu1 %vm1689_vm4, %v12578_v20 }
0x12f6   : > { %v4325_v52 = vpop.permute.xlu1 %4324  ;;  %10678 = vmatprep.mubr.msk.bf16.mxu1 %vm11790_vm0, %v11789_v3 }
0x12f7   : > { %v4330_v53 = vsel %vm1689_vm4, %v4325_v52, 0 }
0x12f8   : > { %10677 = vmatpush3.bf16.xpose.msra.mxu1 %v4330_v53  ;;  %v9500_v53 = vld [vmem:[%s13511_s20 + $0x1] ss:$0 sm:$0xff]  ;;  %s13540_s20 = sld [smem:[#allocation23_spill]] }
0x12f9   : > { %10688 = vmatprep.subr.bf16.mxu1 %v11789_v3 }
0x12fc   : > { %v4374_v57 = vpop.permute.xlu0 %4373 }
0x12fd   : > { %v4379_v58 = vsel %vm1689_vm4, %v4374_v57, 0  ;;  %v3794_v57 = vadd.f32 %v9500_v53, %v12575_v13 }
0x12fe   : > { %10683 = vmatpush3.bf16.xpose.msra.mxu0 %v4379_v58 }
0x12ff   : > { %10679 = vmatmul.mubr.msk.bf16.vlgmr.msra.gmra.mxu1 %vm1689_vm4, %v12583_v32  ;;  %10694 = vmatprep.subr.bf16.mxu0 %v11789_v3  ;;  %v3799_v58 = vadd.f32 %v3794_v57, %v12501_v37 }
0x1300   : > { %10690 = vmatprep.mubr.msk.bf16.mxu1 %vm11790_vm0, %v11789_v3 }
0x1305   : > { %10685 = vmatmul.mubr.msk.bf16.vlgmr.msra.gmra.mxu0 %vm1689_vm4, %v12588_v5 }
0x1306   : > { %v4423_v35 = vpop.permute.xlu1 %4422  ;;  %10696 = vmatprep.mubr.msk.bf16.mxu0 %vm11790_vm0, %v11789_v3 }
0x1307   : > { %v4428_v59 = vsel %vm1689_vm4, %v4423_v35, 0  ;;  %v3800_v35 = vsel %vm1431_vm3, %v3799_v58, 0.0 }
0x1308   : > { %10689 = vmatpush3.bf16.xpose.msra.mxu1 %v4428_v59 }
0x1309   : > { %10700 = vmatprep.subr.bf16.mxu1 %v11789_v3 }
0x130f   : > { %10691 = vmatmul.mubr.msk.bf16.vlgmr.msra.gmra.mxu1 %vm1689_vm4, %v12593_v47 }
0x1310   : > { %10702 = vmatprep.mubr.msk.bf16.mxu1 %vm11790_vm0, %v11789_v3 }
0x13b5   : > { %v4317_v40 = vpop.f32.mrf.mxu1 }
0x13b6   : > { %v4318_v61 = vadd.f32 %v4317_v40, %v3853_v60 }
0x13b7   : > { %v10674_v54 = vpop.f32.mrf.mxu1 }
0x13b8   : > { %v4470_v56 = vsel %vm1883_vm5, %v4318_v61, -inf }
0x13b9   : > { %4471 = vmax.xlane.f32.xlu0 %v4470_v56  ;;  %v4320_v62 = vpop.f32.mrf.mxu1 }
0x13bb   : > { %v10675_v63 = vpop.f32.mrf.mxu1 }
0x13bf   : > { %v4366_v0 = vpop.f32.mrf.mxu1 }
0x13c0   : > { %v4367_v1 = vadd.f32 %v4366_v0, %v3853_v60 }
0x13c1   : > { %v10680_v2 = vpop.f32.mrf.mxu1 }
0x13c2   : > { %v4473_v55 = vsel %vm1883_vm5, %v4367_v1, -inf }
0x13c3   : > { %v4369_v4 = vpop.f32.mrf.mxu1  ;;  %4474 = vmax.xlane.f32.xlu1 %v4473_v55 }
0x13c5   : > { %v10681_v6 = vpop.f32.mrf.mxu1  ;;  %v4415_v7 = vpop.f32.mrf.mxu0 }
0x13c6   : > { %v4416_v8 = vadd.f32 %v4415_v7, %v3853_v60 }
0x13c7   : > { %v10686_v12 = vpop.f32.mrf.mxu0 }
0x13c8   : > { %v4476_v14 = vsel %vm1883_vm5, %v4416_v8, -inf }
0x13c9   : > { %4477 = vmax.xlane.f32.xlu0 %v4476_v14  ;;  %v4418_v16 = vpop.f32.mrf.mxu0 }
0x13cb   : > { %v10687_v15 = vpop.f32.mrf.mxu0 }
0x13cf   : > { %v4464_v21 = vpop.f32.mrf.mxu1 }
0x13d0   : > { %v4465_v17 = vadd.f32 %v4464_v21, %v3853_v60  ;;  %v11439_v21 = vld [vmem:[%s13534_s10] sm:$0xff]  }
0x13d1   : > { %v10692_v18 = vpop.f32.mrf.mxu1 }
0x13d2   : > { %v4479_v19 = vsel %vm1883_vm5, %v4465_v17, -inf }
0x13d3   : > { %v4467_v22 = vpop.f32.mrf.mxu1  ;;  %4480 = vmax.xlane.f32.xlu0 %v4479_v19  ;;  %v11440_v19 = vld [vmem:[%s13534_s10 + $0x8] sm:$0xff]  }
0x13d4   : > { %4518 = vrot.lane.b32.xlu1 %v12578_v20, %s13533_s6 }
0x13d5   : > { %v10693_v23 = vpop.f32.mrf.mxu1 }
0x13d6   : > { %v11441_v23 = vld [vmem:[%s13534_s10 + $0x10] sm:$0xff]  }
0x1442   : > { %v4472_v24 = vpop.xlane.xlu0 %4471 }
0x1443   : > { %v4482_v25 = vsub.f32 %v4318_v61, %v4472_v24 }
0x1445   : > { %v4486_v26 = vmul.f32 1.442695, %v4482_v25 }
0x1447   : > { %11601 = vpow2.f32 %v4486_v26 }
0x144c   : > { %v4475_v29 = vpop.xlane.xlu1 %4474 }
0x144d   : > { %v4483_v33 = vsub.f32 %v4367_v1, %v4475_v29 }
0x144f   : > { %v4488_v34 = vmul.f32 1.442695, %v4483_v33 }
0x1450   : > { %v4519_v9 = vpop.permute.xlu1 %4518 }
0x1451   : > { %11603 = vpow2.f32 %v4488_v34  ;;  %v4524_v36 = vsel %vm1937_vm6, %v4519_v9, 0  ;;  %v11442_v9 = vld [vmem:[%s13534_s10 + $0x18] sm:$0xff]  }
0x1452   : > { %10695 = vmatpush3.bf16.msra.mxu0 %v4524_v36  ;;  %v4478_v38 = vpop.xlane.xlu0 %4477 }
0x1453   : > { %v4484_v39 = vsub.f32 %v4416_v8, %v4478_v38  ;;  %10706 = vmatprep.subr.bf16.mxu0 %v11789_v3 }
0x1454   : > { %v11602_v42 = vpop.eup %11601 }
0x1455   : > { %v4490_v43 = vmul.f32 1.442695, %v4484_v39  ;;  %v4494_v20 = vsel %vm1883_vm5, %v11602_v42, 0.0 }
0x1456   : > { %4495 = vadd.xlane.f32.xlu1 %v4494_v20 }
0x1457   : > { %11605 = vpow2.f32 %v4490_v43 }
0x145c   : > { %v4481_v44 = vpop.xlane.xlu0 %4480 }
0x145d   : > { %v4485_v45 = vsub.f32 %v4465_v17, %v4481_v44 }
0x145e   : > { %v11604_v46 = vpop.eup %11603 }
0x145f   : > { %v4492_v11 = vmul.f32 1.442695, %v4485_v45  ;;  %v4497_v41 = vsel %vm1883_vm5, %v11604_v46, 0.0 }
0x1460   : > { %4498 = vadd.xlane.f32.xlu0 %v4497_v41 }
0x1461   : > { %11607 = vpow2.f32 %v4492_v11 }
0x1464   : > { %v11606_v48 = vpop.eup %11605 }
0x1465   : > { %v4500_v50 = vsel %vm1883_vm5, %v11606_v48, 0.0 }
0x1466   : > { %4501 = vadd.xlane.f32.xlu1 %v4500_v50 }
0x146e   : > { %v11608_v51 = vpop.eup %11607 }
0x146f   : > { %v4503_v52 = vsel %vm1883_vm5, %v11608_v51, 0.0 }
0x1470   : > { %4504 = vadd.xlane.f32.xlu0 %v4503_v52 }
0x1477   : > { %4614 = vrot.lane.b32.xlu1 %v12588_v5, %s13533_s6 }
0x147b   : > { %4662 = vrot.lane.b32.xlu1 %v12593_v47, %s13533_s6 }
0x1486   : > { %4566 = vrot.lane.b32.xlu0 %v12583_v32, %s13533_s6 }
0x14a5   : > { %3801 = vadd.xlane.f32.xlu0 %v3800_v35 }
0x14df   : > { %v4496_v59 = vpop.xlane.xlu1 %4495 }
0x14e0   : > { %11609 = vrcp.f32 %v4496_v59 }
0x14e9   : > { %v4499_v60 = vpop.xlane.xlu0 %4498 }
0x14ea   : > { %11611 = vrcp.f32 %v4499_v60 }
0x14ed   : > { %v11610_v40 = vpop.eup %11609 }
0x14ee   : > { %v4507_v5 = vmul.f32 %v11610_v40, %v11602_v42 }
0x14ef   : > { %v4502_v61 = vpop.xlane.xlu1 %4501 }
0x14f0   : > { %11613 = vrcp.f32 %v4502_v61  ;;  %v4514_v47 = vpack.c.bf16 %v4507_v5, %v4507_v5 }
0x14f2   : > { %10697 = vmatmul.mubr.msk.bf16.vlgmr.msra.gmra.mxu0 %vm1883_vm5, %v4514_v47 }
0x14f3   : > { %v4615_v32 = vpop.permute.xlu1 %4614  ;;  %10708 = vmatprep.mubr.msk.bf16.mxu0 %vm11790_vm0, %v11789_v3 }
0x14f4   : > { %v4620_v37 = vsel %vm1937_vm6, %v4615_v32, 0 }
0x14f5   : > { %10707 = vmatpush3.bf16.msra.mxu0 %v4620_v37 }
0x14f6   : > { %10718 = vmatprep.subr.bf16.mxu0 %v11789_v3 }
0x14f7   : > { %v11612_v13 = vpop.eup %11611  ;;  %v4663_v2 = vpop.permute.xlu1 %4662 }
0x14f8   : > { %v4509_v56 = vmul.f32 %v11612_v13, %v11604_v46  ;;  %v4668_v6 = vsel %vm1937_vm6, %v4663_v2, 0 }
0x14f9   : > { %v4505_v54 = vpop.xlane.xlu0 %4504 }
0x14fa   : > { %11615 = vrcp.f32 %v4505_v54  ;;  %v4515_v55 = vpack.c.bf16 %v4509_v56, %v4509_v56 }
0x14fd   : > { %v11614_v62 = vpop.eup %11613  ;;  %v4567_v63 = vpop.permute.xlu0 %4566 }
0x14fe   : > { %v4572_v0 = vsel %vm1937_vm6, %v4567_v63, 0  ;;  %v4511_v1 = vmul.f32 %v11614_v62, %v11606_v48 }
0x14ff   : > { %10701 = vmatpush3.bf16.msra.mxu1 %v4572_v0 }
0x1500   : > { %v4516_v4 = vpack.c.bf16 %v4511_v1, %v4511_v1  ;;  %10712 = vmatprep.subr.bf16.mxu1 %v11789_v3 }
0x1502   : > { %10703 = vmatmul.mubr.msk.bf16.vlgmr.msra.gmra.mxu1 %vm1883_vm5, %v4515_v55  ;;  %10709 = vmatmul.mubr.msk.bf16.vlgmr.msra.gmra.mxu0 %vm1883_vm5, %v4516_v4  ;;  %v3816_v4 = vrot.slane %v12492_v30, %v12317_v10 }
0x1503   : > { %10713 = vmatpush3.bf16.msra.mxu1 %v4668_v6  ;;  %10714 = vmatprep.mubr.msk.bf16.mxu1 %vm11790_vm0, %v11789_v3  ;;  %v9553_v6 = vld [vmem:[%s13535_s12] ss:$0 sm:$0xff] }
0x1504   : > { %10720 = vmatprep.mubr.msk.bf16.mxu0 %vm11790_vm0, %v11789_v3  ;;  %10724 = vmatprep.subr.bf16.mxu1 %v11789_v3 }
0x1505   : > { %10719 = vmatpush3.bf16.msra.mxu0 %v11439_v21 }
0x1506   : > { %10730 = vmatprep.subr.bf16.mxu0 %v11789_v3 }
0x1507   : > { %v11616_v7 = vpop.eup %11615 }
0x1508   : > { %v4513_v8 = vmul.f32 %v11616_v7, %v11608_v51 }
0x150a   : > { %v4517_v12 = vpack.c.bf16 %v4513_v8, %v4513_v8 }
0x150c   : > { %10715 = vmatmul.mubr.msk.bf16.vlgmr.msra.gmra.mxu1 %vm1883_vm5, %v4517_v12 }
0x150d   : > { %10726 = vmatprep.mubr.msk.bf16.mxu1 %vm11790_vm0, %v11789_v3  ;;  %10725 = vmatpush3.bf16.msra.mxu1 %v11440_v19 }
0x150e   : > { %10736 = vmatprep.subr.bf16.mxu1 %v11789_v3 }
0x152e   : > { %v3802_v14 = vpop.xlane.xlu0 %3801 }
0x152f   : > { %v3803_v16 = vmul.f32 0.015625, %v3802_v14 }
0x1531   : > { %v12666_v15 = vsub.f32 %v3799_v58, %v3803_v16 }
0x1533   : > { %v3805_v17 = vmul.f32 %v12666_v15, %v12666_v15 }
0x1535   : > { %v3806_v18 = vsel %vm1431_vm3, %v3805_v17, 0.0  ;;  %v3821_v17 = vrot.slane %v12495_v31, %v12317_v10 }
0x1536   : > { %3807 = vadd.xlane.f32.xlu1 %v3806_v18 }
0x15b2   : > { %v4560_v22 = vpop.f32.mrf.mxu0 }
0x15b3   : > { %v4710_v24 = vpack.c.bf16 %v4560_v22, %v4560_v22 }
0x15b4   : > { %v10698_v25 = vpop.f32.mrf.mxu0 }
0x15b5   : > { %10721 = vmatmul.mubr.msk.bf16.vlgmr.msra.gmra.mxu0 %vm1689_vm4, %v4710_v24 }
0x15b6   : > { %v4563_v26 = vpop.f32.mrf.mxu0  ;;  %10731 = vmatpush3.bf16.msra.mxu0 %v11441_v23  ;;  %10732 = vmatprep.mubr.msk.bf16.mxu0 %vm11790_vm0, %v11789_v3 }
0x15b7   : > { %10742 = vmatprep.subr.bf16.mxu0 %v11789_v3 }
0x15b8   : > { %v10699_v29 = vpop.f32.mrf.mxu0 }
0x15bf   : > { %v3808_v51 = vpop.xlane.xlu1 %3807 }
0x15c0   : > { %v3809_v53 = vmul.f32 0.015625, %v3808_v51 }
0x15c2   : > { %v4608_v33 = vpop.f32.mrf.mxu1  ;;  %v4656_v34 = vpop.f32.mrf.mxu0  ;;  %v3810_v35 = vadd.f32 1e-05, %v3809_v53 }
0x15c3   : > { %v4711_v36 = vpack.c.bf16 %v4608_v33, %v4608_v33  ;;  %v4712_v38 = vpack.c.bf16 %v4656_v34, %v4656_v34 }
0x15c4   : > { %v10704_v39 = vpop.f32.mrf.mxu1  ;;  %v10710_v42 = vpop.f32.mrf.mxu0  ;;  %11617 = vrsqrt.f32 %v3810_v35 }
0x15c5   : > { %10727 = vmatmul.mubr.msk.bf16.vlgmr.msra.gmra.mxu1 %vm1689_vm4, %v4711_v36  ;;  %10733 = vmatmul.mubr.msk.bf16.vlgmr.msra.gmra.mxu0 %vm1689_vm4, %v4712_v38  ;;  %v11443_v36 = vld [vmem:[%s13536_s13 + $0x18] sm:$0xff]   ;;  %v11445_v39 = vld [vmem:[%s13536_s13 + $0x10] sm:$0xff]  }
0x15c6   : > { %v4611_v43 = vpop.f32.mrf.mxu1  ;;  %v4659_v20 = vpop.f32.mrf.mxu0  ;;  %10737 = vmatpush3.bf16.msra.mxu1 %v11442_v9  ;;  %10738 = vmatprep.mubr.msk.bf16.mxu1 %vm11790_vm0, %v11789_v3  ;;  %v11444_v38 = vld [vmem:[%s13536_s13 + $0x38] sm:$0xff]   ;;  %v11446_v42 = vld [vmem:[%s13536_s13 + $0x30] sm:$0xff]  }
0x15c7   : > { %10754 = vmatprep.subr.bf16.mxu1 %v11789_v3  ;;  %10750 = vmatprep.mubr.msk.bf16.mxu0 %vm11790_vm0, %v11789_v3  ;;  %v11447_v43 = vld [vmem:[%s13536_s13 + $0x8] sm:$0xff]  }
0x15c8   : > { %v10705_v44 = vpop.f32.mrf.mxu1  ;;  %v10711_v45 = vpop.f32.mrf.mxu0  ;;  %10743 = vmatpush3.bf16.msra.mxu0 %v11443_v36  ;;  %v11448_v20 = vld [vmem:[%s13536_s13 + $0x28] sm:$0xff]  }
0x15c9   : > { %10744 = vmatprep.subr.bf16.mxu0 %v11789_v3  ;;  %v11449_v44 = vld [vmem:[%s13536_s13] sm:$0xff]  }
0x15ca   : > { %v11450_v45 = vld [vmem:[%s13536_s13 + $0x20] sm:$0xff]  }
0x15cc   : > { %v4704_v46 = vpop.f32.mrf.mxu1  ;;  %10745 = vmatpush3.bf16.msra.mxu0 %v11445_v39 }
0x15cd   : > { %v4713_v11 = vpack.c.bf16 %v4704_v46, %v4704_v46  ;;  %10746 = vmatprep.subr.bf16.mxu0 %v11789_v3 }
0x15ce   : > { %v10716_v41 = vpop.f32.mrf.mxu1 }
0x15cf   : > { %10739 = vmatmul.mubr.msk.bf16.vlgmr.msra.gmra.mxu1 %vm1689_vm4, %v4713_v11 }
0x15d0   : > { %v4707_v48 = vpop.f32.mrf.mxu1  ;;  %10762 = vmatprep.mubr.msk.bf16.mxu1 %vm11790_vm0, %v11789_v3  ;;  %10755 = vmatpush3.bf16.msra.mxu1 %v11444_v38 }
0x15d1   : > { %v11618_v63 = vpop.eup %11617  ;;  %10756 = vmatprep.subr.bf16.mxu1 %v11789_v3  ;;  %10747 = vmatpush3.bf16.msra.mxu0 %v11447_v43  ;;  %v12727_v48 = vld [vmem:[%s13537_s14] sm:$0x7] }
0x15d2   : > { %v10717_v50 = vpop.f32.mrf.mxu1  ;;  %v3812_v55 = vmul.f32 %v11618_v63, %v12666_v15  ;;  %10748 = vmatprep.subr.bf16.mxu0 %v11789_v3  ;;  %v4941_v51 = vrot.slane %v12727_v48, %v12275_v28  ;;  %v11459_v63 = vld [vmem:[%s13539_s19 + $0x18] sm:$0xff]  }
0x15d3   : > { %v12730_v50 = vld [vmem:[%s13538_s16] sm:$0x7] }
0x15d4   : > { %v3817_v21 = vmul.f32 %v3816_v4, %v3812_v55  ;;  %10757 = vmatpush3.bf16.msra.mxu1 %v11446_v42  ;;  %v11462_v55 = vld [vmem:[%s13539_s19 + $0x30] sm:$0xff]  }
0x15d5   : > { %10758 = vmatprep.subr.bf16.mxu1 %v11789_v3  ;;  %10749 = vmatpush3.bf16.msra.mxu0 %v11449_v44 }
0x15d6   : > { %v3822_v15 = vadd.f32 %v3821_v17, %v3817_v21  ;;  %10766 = vmatprep.subr.bf16.mxu0 %v11789_v3  ;;  %v11466_v21 = vld [vmem:[%s13539_s19 + $0x20] sm:$0xff]  }
0x15d8   : > { %v3825_v30 = vsel %vm1431_vm3, %v3822_v15, 0.0  ;;  %10759 = vmatpush3.bf16.msra.mxu1 %v11448_v20 }
0x15d9   : > { %10760 = vmatprep.subr.bf16.mxu1 %v11789_v3 }
0x15dc   : > { %10761 = vmatpush3.bf16.msra.mxu1 %v11450_v45 }
0x15dd   : > { %10778 = vmatprep.subr.bf16.mxu1 %v11789_v3 }
0x1675   : > { %v4757_v52 = vpop.f32.mrf.mxu0 }
0x1676   : > { %v4910_v13 = vsel %vm1431_vm3, %v4757_v52, 0.0 }
0x1677   : > { %v10722_v57 = vpop.f32.mrf.mxu0 }
0x1679   : > { %v4760_v58 = vpop.f32.mrf.mxu0 }
0x167a   : > { %v4946_v58 = vrot.slane %v12730_v50, %v12275_v28 }
0x167b   : > { %v10723_v59 = vpop.f32.mrf.mxu0 }
0x1685   : > { %v4806_v60 = vpop.f32.mrf.mxu1  ;;  %v4855_v40 = vpop.f32.mrf.mxu0 }
0x1686   : > { %v4911_v47 = vsel %vm1431_vm3, %v4806_v60, 0.0  ;;  %v4913_v0 = vsel %vm1431_vm3, %v4855_v40, 0.0  ;;  %v11451_v40 = vld [vmem:[%s13536_s13 + $0x58] sm:$0xff]  }
0x1687   : > { %v10728_v5 = vpop.f32.mrf.mxu1  ;;  %v10734_v61 = vpop.f32.mrf.mxu0  ;;  %v4912_v54 = vadd.f32 %v4911_v47, %v4910_v13  ;;  %v11455_v13 = vld [vmem:[%s13536_s13 + $0x48] sm:$0xff]  }
0x1688   : > { %v11452_v5 = vld [vmem:[%s13536_s13 + $0x78] sm:$0xff]  }
0x1689   : > { %v4809_v32 = vpop.f32.mrf.mxu1  ;;  %v4858_v37 = vpop.f32.mrf.mxu0  ;;  %v4914_v1 = vadd.f32 %v4913_v0, %v4912_v54  ;;  %v11456_v54 = vld [vmem:[%s13536_s13 + $0x68] sm:$0xff]   ;;  %v11460_v0 = vld [vmem:[%s13539_s19 + $0x38] sm:$0xff]  }
0x168a   : > { %v11453_v32 = vld [vmem:[%s13536_s13 + $0x50] sm:$0xff]  }
0x168b   : > { %v10729_v56 = vpop.f32.mrf.mxu1  ;;  %v10735_v62 = vpop.f32.mrf.mxu0  ;;  %v11454_v37 = vld [vmem:[%s13536_s13 + $0x70] sm:$0xff]  }
0x168c   : > { %v11457_v56 = vld [vmem:[%s13536_s13 + $0x40] sm:$0xff]  }
0x168d   : > { %v11458_v62 = vld [vmem:[%s13536_s13 + $0x60] sm:$0xff]  }
0x168f   : > { %v4904_v2 = vpop.f32.mrf.mxu1 }
0x1690   : > { %v4915_v7 = vsel %vm1431_vm3, %v4904_v2, 0.0  ;;  %v11461_v2 = vld [vmem:[%s13539_s19 + $0x10] sm:$0xff]  }
0x1691   : > { %v4916_v8 = vadd.f32 %v4915_v7, %v4914_v1  ;;  %v10740_v12 = vpop.f32.mrf.mxu1  ;;  %v11463_v7 = vld [vmem:[%s13539_s19 + $0x8] sm:$0xff]  }
0x1693   : > { %v4923_v14 = vadd.f32 %v9553_v6, %v4916_v8  ;;  %v4907_v16 = vpop.f32.mrf.mxu1  ;;  %v9509_v6 = vld [vmem:[%s13540_s20] ss:$0 sm:$0xff]  ;;  %v11464_v8 = vld [vmem:[%s13539_s19 + $0x28] sm:$0xff]   ;;  %s13543_s20 = sld [smem:[#allocation30_spill]] }
0x1694   : > { %v11465_v16 = vld [vmem:[%s13539_s19] sm:$0xff]  }
0x1695   : > { %v10741_v18 = vpop.f32.mrf.mxu1  ;;  %v4924_v19 = vadd.f32 %v4923_v14, %v12537_v49  ;;  %v9510_v14 = vld [vmem:[%s13541_s21] ss:$0 sm:$0xff]  ;;  %s13542_s21 = sld [smem:[#allocation32_spill]] }
0x1696   : > { %v11467_v18 = vld [vmem:[%s13539_s19 + $0x58] sm:$0xff]  }
0x1697   : > { %v4925_v22 = vsel %vm1431_vm3, %v4924_v19, 0.0 }
0x1698   : > { %4926 = vadd.xlane.f32.xlu0 %v4925_v22 }
0x169c   : > { %3826 = vadd.xlane.f32.xlu0 %v3825_v30  ;;  %v11470_v30 = vld [vmem:[%s13539_s19 + $0x70] sm:$0xff]  }
0x1721   : > { %v4927_v23 = vpop.xlane.xlu0 %4926 }
0x1722   : > { %v4928_v24 = vmul.f32 0.015625, %v4927_v23  ;;  %v11471_v23 = vld [vmem:[%s13539_s19 + $0x48] sm:$0xff]  }
0x1724   : > { %v4929_v25 = vsub.f32 %v4924_v19, %v4928_v24  ;;  %v11468_v19 = vld [vmem:[%s13539_s19 + $0x78] sm:$0xff]   ;;  %v11472_v24 = vld [vmem:[%s13539_s19 + $0x68] sm:$0xff]  }
0x1725   : > { %v3827_v26 = vpop.xlane.xlu0 %3826 }
0x1726   : > { %v3828_v29 = vmul.f32 0.015625, %v3827_v26  ;;  %v4930_v31 = vmul.f32 %v4929_v25, %v4929_v25  ;;  %v11474_v26 = vld [vmem:[%s13539_s19 + $0x60] sm:$0xff]  }
0x1728   : > { %v12704_v33 = vsub.f32 %v3822_v15, %v3828_v29  ;;  %v4931_v49 = vsel %vm1431_vm3, %v4930_v31, 0.0  ;;  %v11469_v15 = vld [vmem:[%s13539_s19 + $0x50] sm:$0xff]  }
0x1729   : > { %4932 = vadd.xlane.f32.xlu1 %v4931_v49 }
0x172a   : > { %v3830_v34 = vmul.f32 %v12704_v33, %v12704_v33 }
0x172c   : > { %v3831_v9 = vsel %vm1431_vm3, %v3830_v34, 0.0 }
0x172d   : > { %3832 = vadd.xlane.f32.xlu0 %v3831_v9 }
0x17b2   : > { %v4933_v46 = vpop.xlane.xlu1 %4932 }
0x17b3   : > { %v4934_v11 = vmul.f32 0.015625, %v4933_v46 }
0x17b5   : > { %v4935_v41 = vadd.f32 1e-05, %v4934_v11 }
0x17b6   : > { %v3833_v53 = vpop.xlane.xlu0 %3832 }
0x17b7   : > { %11619 = vrsqrt.f32 %v4935_v41  ;;  %v3834_v35 = vmul.f32 0.015625, %v3833_v53  ;;  %v9578_v41 = vld [vmem:[%s13542_s21] ss:$0 sm:$0xff] }
0x17b9   : > { %v3835_v61 = vadd.f32 1e-05, %v3834_v35 }
0x17bb   : > { %11621 = vrsqrt.f32 %v3835_v61  ;;  %v9554_v61 = vld [vmem:[%s13543_s20] ss:$0 sm:$0xff] }
0x17c4   : > { %v11620_v52 = vpop.eup %11619 }
0x17c5   : > { %v4937_v57 = vmul.f32 %v11620_v52, %v4929_v25  ;;  %v11473_v25 = vld [vmem:[%s13539_s19 + $0x40] sm:$0xff]  }
0x17c7   : > { %v4942_v59 = vmul.f32 %v4941_v51, %v4937_v57  ;;  %v9579_v51 = vld [vmem:[%s13542_s21 + $0x1] ss:$0 sm:$0xff] }
0x17c8   : > { %v11622_v1 = vpop.eup %11621 }
0x17c9   : > { %v12736_v60 = vadd.f32 %v4946_v58, %v4942_v59  ;;  %v3837_v4 = vmul.f32 %v11622_v1, %v12704_v33 }
0x17cb   : > { %v4948_v47 = vpack.c.bf16 %v12736_v60, %v12736_v60  ;;  %v3844_v12 = vmul.f32 %v9509_v6, %v3837_v4  ;;  %v9581_v4 = vld [vmem:[%s13542_s21 + $0x3] ss:$0 sm:$0xff] }
0x17cd   : > { %10751 = vmatmul.mubr.msk.bf16.vlgmr.msra.gmra.mxu0 %vm1431_vm3, %v4948_v47  ;;  %10763 = vmatmul.mubr.msk.bf16.vlgmr.msra.gmra.mxu1 %vm1431_vm3, %v4948_v47  ;;  %v3851_v17 = vadd.f32 %v9510_v14, %v3844_v12 }
0x17ce   : > { %10767 = vmatpush3.bf16.msra.mxu0 %v11451_v40  ;;  %10779 = vmatpush3.bf16.msra.mxu1 %v11452_v5 }
0x17cf   : > { %10768 = vmatprep.subr.bf16.mxu0 %v11789_v3  ;;  %10780 = vmatprep.subr.bf16.mxu1 %v11789_v3  ;;  %v12787_v22 = vpack.c.bf16 %v3851_v17, %v3851_v17 }
0x17d0   : > { %10774 = vmatprep.mubr.msk.bf16.mxu0 %vm11790_vm0, %v11789_v3  ;;  %10786 = vmatprep.mubr.msk.bf16.mxu1 %vm11790_vm0, %v11789_v3 }
0x17d2   : > { %10769 = vmatpush3.bf16.msra.mxu0 %v11453_v32  ;;  %10781 = vmatpush3.bf16.msra.mxu1 %v11454_v37 }
0x17d3   : > { %10770 = vmatprep.subr.bf16.mxu0 %v11789_v3  ;;  %10782 = vmatprep.subr.bf16.mxu1 %v11789_v3 }
0x17d6   : > { %10771 = vmatpush3.bf16.msra.mxu0 %v11455_v13  ;;  %10783 = vmatpush3.bf16.msra.mxu1 %v11456_v54 }
0x17d7   : > { %10772 = vmatprep.subr.bf16.mxu0 %v11789_v3  ;;  %10784 = vmatprep.subr.bf16.mxu1 %v11789_v3 }
0x17da   : > { %10773 = vmatpush3.bf16.msra.mxu0 %v11457_v56  ;;  %10785 = vmatpush3.bf16.msra.mxu1 %v11458_v62 }
0x17db   : > { %10790 = vmatprep.subr.bf16.mxu0 %v11789_v3  ;;  %10802 = vmatprep.subr.bf16.mxu1 %v11789_v3 }
0x17dd   : > { %10775 = vmatmul.mubr.msk.bf16.vlgmr.msra.gmra.mxu0 %vm1431_vm3, %v4948_v47  ;;  %10787 = vmatmul.mubr.msk.bf16.vlgmr.msra.gmra.mxu1 %vm1431_vm3, %v4948_v47  ;;  %v9555_v47 = vld [vmem:[%s13543_s20 + $0x1] ss:$0 sm:$0xff] }
0x17de   : > { %10791 = vmatpush3.bf16.msra.mxu0 %v11459_v63  ;;  %10803 = vmatpush3.bf16.msra.mxu1 %v11460_v0 }
0x17df   : > { %10792 = vmatprep.subr.bf16.mxu0 %v11789_v3  ;;  %10804 = vmatprep.subr.bf16.mxu1 %v11789_v3 }
0x17e0   : > { %10798 = vmatprep.mubr.msk.bf16.mxu0 %vm11790_vm0, %v11789_v3  ;;  %10810 = vmatprep.mubr.msk.bf16.mxu1 %vm11790_vm0, %v11789_v3 }
0x17e2   : > { %10793 = vmatpush3.bf16.msra.mxu0 %v11461_v2  ;;  %10805 = vmatpush3.bf16.msra.mxu1 %v11462_v55  ;;  %v9580_v55 = vld [vmem:[%s13542_s21 + $0x2] ss:$0 sm:$0xff] }
0x17e3   : > { %10794 = vmatprep.subr.bf16.mxu0 %v11789_v3  ;;  %10806 = vmatprep.subr.bf16.mxu1 %v11789_v3 }
0x17e6   : > { %10795 = vmatpush3.bf16.msra.mxu0 %v11463_v7  ;;  %10807 = vmatpush3.bf16.msra.mxu1 %v11464_v8 }
0x17e7   : > { %10796 = vmatprep.subr.bf16.mxu0 %v11789_v3  ;;  %10808 = vmatprep.subr.bf16.mxu1 %v11789_v3 }
0x17ea   : > { %10797 = vmatpush3.bf16.msra.mxu0 %v11465_v16  ;;  %10809 = vmatpush3.bf16.msra.mxu1 %v11466_v21 }
0x17eb   : > { %10814 = vmatprep.subr.bf16.mxu0 %v11789_v3  ;;  %10826 = vmatprep.subr.bf16.mxu1 %v11789_v3 }
0x17ed   : > { %10799 = vmatmul.mubr.msk.bf16.vlgmr.msra.gmra.mxu0 %vm1431_vm3, %v12787_v22  ;;  %10811 = vmatmul.mubr.msk.bf16.vlgmr.msra.gmra.mxu1 %vm1431_vm3, %v12787_v22 }
0x17ee   : > { %10815 = vmatpush3.bf16.msra.mxu0 %v11467_v18  ;;  %10827 = vmatpush3.bf16.msra.mxu1 %v11468_v19  ;;  %v9556_v18 = vld [vmem:[%s13543_s20 + $0x2] ss:$0 sm:$0xff]  ;;  %v9557_v19 = vld [vmem:[%s13543_s20 + $0x3] ss:$0 sm:$0xff] }
0x17ef   : > { %10816 = vmatprep.subr.bf16.mxu0 %v11789_v3  ;;  %10828 = vmatprep.subr.bf16.mxu1 %v11789_v3 }
0x17f0   : > { %10822 = vmatprep.mubr.msk.bf16.mxu0 %vm11790_vm0, %v11789_v3  ;;  %10834 = vmatprep.mubr.msk.bf16.mxu1 %vm11790_vm0, %v11789_v3 }
0x17f2   : > { %10817 = vmatpush3.bf16.msra.mxu0 %v11469_v15  ;;  %10829 = vmatpush3.bf16.msra.mxu1 %v11470_v30 }
0x17f3   : > { %10818 = vmatprep.subr.bf16.mxu0 %v11789_v3  ;;  %10830 = vmatprep.subr.bf16.mxu1 %v11789_v3 }
0x17f6   : > { %10819 = vmatpush3.bf16.msra.mxu0 %v11471_v23  ;;  %10831 = vmatpush3.bf16.msra.mxu1 %v11472_v24 }
0x17f7   : > { %10820 = vmatprep.subr.bf16.mxu0 %v11789_v3  ;;  %10832 = vmatprep.subr.bf16.mxu1 %v11789_v3 }
0x17fa   : > { %10821 = vmatpush3.bf16.msra.mxu0 %v11473_v25  ;;  %10833 = vmatpush3.bf16.msra.mxu1 %v11474_v26 }
0x17fb   : > { %10838 = vmatprep.subr.bf16.mxu0 %v11789_v3  ;;  %10844 = vmatprep.subr.bf16.mxu1 %v11789_v3 }
0x17fd   : > { %10823 = vmatmul.mubr.msk.bf16.vlgmr.msra.gmra.mxu0 %vm1431_vm3, %v12787_v22  ;;  %10835 = vmatmul.mubr.msk.bf16.vlgmr.msra.gmra.mxu1 %vm1431_vm3, %v12787_v22 }
0x17fe   : > { %10840 = vmatprep.mubr.msk.bf16.mxu0 %vm11790_vm0, %v11789_v3  ;;  %10846 = vmatprep.mubr.msk.bf16.mxu1 %vm11790_vm0, %v11789_v3 }
0x188d   : > { %v5070_v29 = vpop.f32.mrf.mxu0  ;;  %v5134_v31 = vpop.f32.mrf.mxu1 }
0x188e   : > { %v5071_v63 = vadd.f32 %v9554_v61, %v5070_v29  ;;  %v5135_v0 = vadd.f32 %v9555_v47, %v5134_v31 }
0x188f   : > { %v10752_v33 = vpop.f32.mrf.mxu0  ;;  %v10764_v49 = vpop.f32.mrf.mxu1 }
0x1890   : > { %v5596_v1 = vpack.c.bf16 %v5071_v63, %v5071_v63  ;;  %v5597_v2 = vpack.c.bf16 %v5135_v0, %v5135_v0 }
0x1891   : > { %v5073_v34 = vpop.f32.mrf.mxu0  ;;  %v5137_v9 = vpop.f32.mrf.mxu1 }
0x1893   : > { %v10753_v36 = vpop.f32.mrf.mxu0  ;;  %v10765_v38 = vpop.f32.mrf.mxu1 }
0x1894   : > { %v11683_v36 = vld [vmem:[%s12178_s15] ss:$0 sm:$0xff] }
0x189d   : > { %v5198_v39 = vpop.f32.mrf.mxu0  ;;  %v5262_v42 = vpop.f32.mrf.mxu1 }
0x189e   : > { %v5199_v29 = vadd.f32 %v9556_v18, %v5198_v39  ;;  %v5263_v31 = vadd.f32 %v9557_v19, %v5262_v42 }
0x189f   : > { %v10776_v43 = vpop.f32.mrf.mxu0  ;;  %v10788_v20 = vpop.f32.mrf.mxu1 }
0x18a0   : > { %v5598_v33 = vpack.c.bf16 %v5199_v29, %v5199_v29  ;;  %v5599_v49 = vpack.c.bf16 %v5263_v31, %v5263_v31 }
0x18a1   : > { %v5201_v44 = vpop.f32.mrf.mxu0  ;;  %v5265_v45 = vpop.f32.mrf.mxu1 }
0x18a3   : > { %v10777_v46 = vpop.f32.mrf.mxu0  ;;  %v10789_v11 = vpop.f32.mrf.mxu1 }
0x18ad   : > { %v5389_v52 = vpop.f32.mrf.mxu0  ;;  %v5453_v53 = vpop.f32.mrf.mxu1 }
0x18ae   : > { %v5390_v57 = vadd.f32 %v9578_v41, %v5389_v52  ;;  %v5454_v58 = vadd.f32 %v9579_v51, %v5453_v53 }
0x18af   : > { %v10800_v35 = vpop.f32.mrf.mxu0  ;;  %v10812_v59 = vpop.f32.mrf.mxu1 }
0x18b0   : > { %v12823_v40 = vpack.c.bf16 %v5390_v57, %v5390_v57  ;;  %v12825_v5 = vpack.c.bf16 %v5454_v58, %v5454_v58 }
0x18b1   : > { %v5392_v32 = vpop.f32.mrf.mxu0  ;;  %v5456_v37 = vpop.f32.mrf.mxu1 }
0x18b2   : > { %v5608_v13 = vsel %vm1689_vm4, %v12823_v40, 0  ;;  %v5654_v54 = vsel %vm1689_vm4, %v12825_v5, 0 }
0x18b3   : > { %v10801_v56 = vpop.f32.mrf.mxu0  ;;  %v10813_v62 = vpop.f32.mrf.mxu1  ;;  %10839 = vmatpush3.bf16.xpose.msra.mxu0 %v5608_v13  ;;  %10845 = vmatpush3.bf16.xpose.msra.mxu1 %v5654_v54 }
0x18b4   : > { %10850 = vmatprep.subr.bf16.mxu0 %v11789_v3  ;;  %10856 = vmatprep.subr.bf16.mxu1 %v11789_v3 }
0x18ba   : > { %10841 = vmatmul.mubr.msk.bf16.vlgmr.msra.gmra.mxu0 %vm1689_vm4, %v5596_v1  ;;  %10847 = vmatmul.mubr.msk.bf16.vlgmr.msra.gmra.mxu1 %vm1689_vm4, %v5597_v2 }
0x18bb   : > { %10852 = vmatprep.mubr.msk.bf16.mxu0 %vm11790_vm0, %v11789_v3  ;;  %10858 = vmatprep.mubr.msk.bf16.mxu1 %vm11790_vm0, %v11789_v3 }
0x18bd   : > { %v5517_v6 = vpop.f32.mrf.mxu0  ;;  %v5581_v7 = vpop.f32.mrf.mxu1 }
0x18be   : > { %v5518_v8 = vadd.f32 %v9580_v55, %v5517_v6  ;;  %v5582_v12 = vadd.f32 %v9581_v4, %v5581_v7 }
0x18bf   : > { %v10824_v14 = vpop.f32.mrf.mxu0  ;;  %v10836_v16 = vpop.f32.mrf.mxu1 }
0x18c0   : > { %v12843_v21 = vpack.c.bf16 %v5518_v8, %v5518_v8  ;;  %v12845_v17 = vpack.c.bf16 %v5582_v12, %v5582_v12 }
0x18c1   : > { %v5520_v15 = vpop.f32.mrf.mxu0  ;;  %v5584_v30 = vpop.f32.mrf.mxu1 }
0x18c2   : > { %v5700_v23 = vsel %vm1689_vm4, %v12843_v21, 0  ;;  %v5746_v24 = vsel %vm1689_vm4, %v12845_v17, 0 }
0x18c3   : > { %v10825_v25 = vpop.f32.mrf.mxu0  ;;  %v10837_v26 = vpop.f32.mrf.mxu1  ;;  %10851 = vmatpush3.bf16.xpose.msra.mxu0 %v5700_v23  ;;  %10857 = vmatpush3.bf16.xpose.msra.mxu1 %v5746_v24 }
0x18c4   : > { %10862 = vmatprep.subr.bf16.mxu0 %v11789_v3  ;;  %10868 = vmatprep.subr.bf16.mxu1 %v11789_v3 }
0x18ca   : > { %10853 = vmatmul.mubr.msk.bf16.vlgmr.msra.gmra.mxu0 %vm1689_vm4, %v5598_v33  ;;  %10859 = vmatmul.mubr.msk.bf16.vlgmr.msra.gmra.mxu1 %vm1689_vm4, %v5599_v49 }
0x18cb   : > { %10864 = vmatprep.mubr.msk.bf16.mxu0 %vm11790_vm0, %v11789_v3  ;;  %10870 = vmatprep.mubr.msk.bf16.mxu1 %vm11790_vm0, %v11789_v3 }
0x197a   : > { %v5644_v34 = vpop.f32.mrf.mxu0  ;;  %v5690_v9 = vpop.f32.mrf.mxu1 }
0x197b   : > { %v5645_v38 = vadd.f32 %v11683_v36, %v5644_v34  ;;  %v5691_v39 = vadd.f32 %v11683_v36, %v5690_v9 }
0x197c   : > { %v10842_v42 = vpop.f32.mrf.mxu0  ;;  %v10848_v43 = vpop.f32.mrf.mxu1 }
0x197d   : > { %v5791_v20 = vsel %vm1883_vm5, %v5691_v39, -inf  ;;  %v5788_v44 = vsel %vm1883_vm5, %v5645_v38, -inf }
0x197e   : > { %5792 = vmax.xlane.f32.xlu0 %v5791_v20  ;;  %v5693_v45 = vpop.f32.mrf.mxu1  ;;  %5789 = vmax.xlane.f32.xlu1 %v5788_v44  ;;  %v5647_v46 = vpop.f32.mrf.mxu0 }
0x1980   : > { %v10843_v11 = vpop.f32.mrf.mxu0  ;;  %v10849_v41 = vpop.f32.mrf.mxu1 }
0x198a   : > { %v5736_v51 = vpop.f32.mrf.mxu0  ;;  %v5782_v52 = vpop.f32.mrf.mxu1 }
0x198b   : > { %v5737_v53 = vadd.f32 %v11683_v36, %v5736_v51  ;;  %v5783_v57 = vadd.f32 %v11683_v36, %v5782_v52  ;;  %v11475_v51 = vld [vmem:[%s13544_s24] sm:$0xff]   ;;  %v11476_v52 = vld [vmem:[%s13544_s24 + $0x8] sm:$0xff]  }
0x198c   : > { %v10854_v58 = vpop.f32.mrf.mxu0  ;;  %v10860_v35 = vpop.f32.mrf.mxu1 }
0x198d   : > { %v5797_v59 = vsel %vm1883_vm5, %v5783_v57, -inf  ;;  %v5794_v61 = vsel %vm1883_vm5, %v5737_v53, -inf }
0x198e   : > { %5798 = vmax.xlane.f32.xlu0 %v5797_v59  ;;  %v5785_v47 = vpop.f32.mrf.mxu1  ;;  %5795 = vmax.xlane.f32.xlu1 %v5794_v61  ;;  %v5739_v32 = vpop.f32.mrf.mxu0 }
0x198f   : > { %v11478_v47 = vld [vmem:[%s13544_s24 + $0x18] sm:$0xff]  }
0x1990   : > { %v10855_v37 = vpop.f32.mrf.mxu0  ;;  %v10861_v13 = vpop.f32.mrf.mxu1 }
0x199f   : > { %5837 = vrot.lane.b32.xlu1 %v12823_v40, %s13531_s5 }
0x1a07   : > { %v5793_v54 = vpop.xlane.xlu0 %5792  ;;  %v5790_v56 = vpop.xlane.xlu1 %5789 }
0x1a08   : > { %v5801_v62 = vsub.f32 %v5691_v39, %v5793_v54  ;;  %v5800_v63 = vsub.f32 %v5645_v38, %v5790_v56 }
0x1a0a   : > { %v5806_v0 = vmul.f32 1.442695, %v5801_v62  ;;  %v5804_v1 = vmul.f32 1.442695, %v5800_v63 }
0x1a0c   : > { %11623 = vpow2.f32 %v5806_v0 }
0x1a0d   : > { %11625 = vpow2.f32 %v5804_v1 }
0x1a17   : > { %v5799_v2 = vpop.xlane.xlu0 %5798  ;;  %v5796_v55 = vpop.xlane.xlu1 %5795 }
0x1a18   : > { %v5803_v4 = vsub.f32 %v5783_v57, %v5799_v2  ;;  %v5802_v6 = vsub.f32 %v5737_v53, %v5796_v55  ;;  %v11477_v57 = vld [vmem:[%s13544_s24 + $0x10] sm:$0xff]  }
0x1a19   : > { %v11624_v7 = vpop.eup %11623 }
0x1a1a   : > { %v11626_v8 = vpop.eup %11625  ;;  %v5810_v12 = vmul.f32 1.442695, %v5803_v4  ;;  %v5808_v14 = vmul.f32 1.442695, %v5802_v6  ;;  %v5815_v16 = vsel %vm1883_vm5, %v11624_v7, 0.0 }
0x1a1b   : > { %5816 = vadd.xlane.f32.xlu0 %v5815_v16  ;;  %v5812_v40 = vsel %vm1883_vm5, %v11626_v8, 0.0  ;;  %v5838_v18 = vpop.permute.xlu1 %5837 }
0x1a1c   : > { %11627 = vpow2.f32 %v5810_v12  ;;  %5813 = vadd.xlane.f32.xlu1 %v5812_v40  ;;  %v5843_v19 = vsel %vm1937_vm6, %v5838_v18, 0 }
0x1a1d   : > { %11629 = vpow2.f32 %v5808_v14  ;;  %10863 = vmatpush3.bf16.msra.mxu0 %v5843_v19 }
0x1a1e   : > { %10874 = vmatprep.subr.bf16.mxu0 %v11789_v3 }
0x1a29   : > { %v11628_v15 = vpop.eup %11627 }
0x1a2a   : > { %v11630_v30 = vpop.eup %11629  ;;  %v5821_v23 = vsel %vm1883_vm5, %v11628_v15, 0.0 }
0x1a2b   : > { %5822 = vadd.xlane.f32.xlu0 %v5821_v23  ;;  %v5818_v24 = vsel %vm1883_vm5, %v11630_v30, 0.0 }
0x1a2c   : > { %5819 = vadd.xlane.f32.xlu1 %v5818_v24 }
0x1a3d   : > { %5935 = vrot.lane.b32.xlu1 %v12843_v21, %s13531_s5 }
0x1a41   : > { %5984 = vrot.lane.b32.xlu1 %v12845_v17, %s13531_s5  ;;  %5886 = vrot.lane.b32.xlu0 %v12825_v5, %s13531_s5 }
0x1aa4   : > { %v5817_v25 = vpop.xlane.xlu0 %5816 }
0x1aa5   : > { %v5814_v26 = vpop.xlane.xlu1 %5813 }
0x1aa6   : > { %11631 = vrcp.f32 %v5814_v26 }
0x1aa7   : > { %11633 = vrcp.f32 %v5817_v25 }
0x1ab3   : > { %v11632_v29 = vpop.eup %11631 }
0x1ab4   : > { %v11634_v31 = vpop.eup %11633  ;;  %v5825_v33 = vmul.f32 %v11632_v29, %v11626_v8  ;;  %v5823_v49 = vpop.xlane.xlu0 %5822 }
0x1ab5   : > { %11635 = vrcp.f32 %v5823_v49  ;;  %v5820_v34 = vpop.xlane.xlu1 %5819  ;;  %v5827_v36 = vmul.f32 %v11634_v31, %v11624_v7 }
0x1ab6   : > { %v5832_v9 = vpack.c.bf16 %v5825_v33, %v5825_v33  ;;  %11637 = vrcp.f32 %v5820_v34 }
0x1ab7   : > { %v5833_v39 = vpack.c.bf16 %v5827_v36, %v5827_v36 }
0x1ab8   : > { %10865 = vmatmul.mubr.msk.bf16.vlgmr.msra.gmra.mxu0 %vm1883_vm5, %v5832_v9  ;;  %v5887_v21 = vpop.permute.xlu0 %5886  ;;  %v9618_v9 = vld [vmem:[%s13545_s27] ss:$0 sm:$0xff] }
0x1ab9   : > { %v5892_v17 = vsel %vm1937_vm6, %v5887_v21, 0  ;;  %v5936_v38 = vpop.permute.xlu1 %5935  ;;  %10876 = vmatprep.mubr.msk.bf16.mxu0 %vm11790_vm0, %v11789_v3 }
0x1aba   : > { %v5941_v5 = vsel %vm1937_vm6, %v5936_v38, 0  ;;  %10869 = vmatpush3.bf16.msra.mxu1 %v5892_v17 }
0x1abb   : > { %10875 = vmatpush3.bf16.msra.mxu0 %v5941_v5  ;;  %10880 = vmatprep.subr.bf16.mxu1 %v11789_v3 }
0x1abc   : > { %10886 = vmatprep.subr.bf16.mxu0 %v11789_v3 }
0x1abd   : > { %v5985_v42 = vpop.permute.xlu1 %5984  ;;  %10871 = vmatmul.mubr.msk.bf16.vlgmr.msra.gmra.mxu1 %vm1883_vm5, %v5833_v39 }
0x1abe   : > { %v5990_v43 = vsel %vm1937_vm6, %v5985_v42, 0  ;;  %10882 = vmatprep.mubr.msk.bf16.mxu1 %vm11790_vm0, %v11789_v3 }
0x1abf   : > { %10881 = vmatpush3.bf16.msra.mxu1 %v5990_v43 }
0x1ac0   : > { %10892 = vmatprep.subr.bf16.mxu1 %v11789_v3 }
0x1ac2   : > { %v11636_v20 = vpop.eup %11635 }
0x1ac3   : > { %v11638_v44 = vpop.eup %11637  ;;  %v5831_v45 = vmul.f32 %v11636_v20, %v11628_v15 }
0x1ac4   : > { %v5829_v46 = vmul.f32 %v11638_v44, %v11630_v30 }
0x1ac5   : > { %v5835_v11 = vpack.c.bf16 %v5831_v45, %v5831_v45 }
0x1ac6   : > { %v5834_v41 = vpack.c.bf16 %v5829_v46, %v5829_v46 }
0x1ac7   : > { %10883 = vmatmul.mubr.msk.bf16.vlgmr.msra.gmra.mxu1 %vm1883_vm5, %v5835_v11 }
0x1ac8   : > { %10877 = vmatmul.mubr.msk.bf16.vlgmr.msra.gmra.mxu0 %vm1883_vm5, %v5834_v41  ;;  %10894 = vmatprep.mubr.msk.bf16.mxu1 %vm11790_vm0, %v11789_v3 }
0x1ac9   : > { %10888 = vmatprep.mubr.msk.bf16.mxu0 %vm11790_vm0, %v11789_v3  ;;  %10887 = vmatpush3.bf16.msra.mxu0 %v11475_v51  ;;  %v11479_v51 = vld [vmem:[%s13546_s29 + $0x18] sm:$0xff]  }
0x1aca   : > { %10898 = vmatprep.subr.bf16.mxu0 %v11789_v3  ;;  %10893 = vmatpush3.bf16.msra.mxu1 %v11476_v52  ;;  %v11480_v52 = vld [vmem:[%s13546_s29 + $0x10] sm:$0xff]  }
0x1acb   : > { %10904 = vmatprep.subr.bf16.mxu1 %v11789_v3 }
0x1b78   : > { %v5879_v53 = vpop.f32.mrf.mxu0 }
0x1b79   : > { %v6032_v58 = vpack.c.bf16 %v5879_v53, %v5879_v53  ;;  %v11482_v53 = vld [vmem:[%s13546_s29] sm:$0xff]  }
0x1b7a   : > { %v10866_v35 = vpop.f32.mrf.mxu0 }
0x1b7b   : > { %10889 = vmatmul.mubr.msk.bf16.vlgmr.msra.gmra.mxu0 %vm1689_vm4, %v6032_v58  ;;  %v11484_v58 = vld [vmem:[%s13547_s30 + $0x30] sm:$0xff]   ;;  %v11485_v35 = vld [vmem:[%s13547_s30 + $0x28] sm:$0xff]  }
0x1b7c   : > { %v5882_v59 = vpop.f32.mrf.mxu0  ;;  %10899 = vmatpush3.bf16.msra.mxu0 %v11477_v57  ;;  %10900 = vmatprep.mubr.msk.bf16.mxu0 %vm11790_vm0, %v11789_v3  ;;  %v11483_v57 = vld [vmem:[%s13547_s30 + $0x38] sm:$0xff]  }
0x1b7d   : > { %v5928_v61 = vpop.f32.mrf.mxu1  ;;  %10910 = vmatprep.subr.bf16.mxu0 %v11789_v3  ;;  %v11486_v59 = vld [vmem:[%s13547_s30 + $0x20] sm:$0xff]  }
0x1b7e   : > { %v10867_v32 = vpop.f32.mrf.mxu0  ;;  %v6033_v37 = vpack.c.bf16 %v5928_v61, %v5928_v61  ;;  %v11487_v61 = vld [vmem:[%s13547_s30 + $0x18] sm:$0xff]  }
0x1b7f   : > { %v10872_v13 = vpop.f32.mrf.mxu1 }
0x1b80   : > { %10895 = vmatmul.mubr.msk.bf16.vlgmr.msra.gmra.mxu1 %vm1689_vm4, %v6033_v37 }
0x1b81   : > { %v5931_v54 = vpop.f32.mrf.mxu1  ;;  %10905 = vmatpush3.bf16.msra.mxu1 %v11478_v47  ;;  %10906 = vmatprep.mubr.msk.bf16.mxu1 %vm11790_vm0, %v11789_v3  ;;  %v11488_v47 = vld [vmem:[%s13547_s30 + $0x10] sm:$0xff]  }
0x1b82   : > { %10922 = vmatprep.subr.bf16.mxu1 %v11789_v3  ;;  %v6263_v54 = vrot.slane %v12727_v48, %v12317_v10 }
0x1b83   : > { %v10873_v56 = vpop.f32.mrf.mxu1 }
0x1b87   : > { %v6026_v62 = vpop.f32.mrf.mxu1 }
0x1b88   : > { %v5977_v63 = vpop.f32.mrf.mxu0  ;;  %v6035_v0 = vpack.c.bf16 %v6026_v62, %v6026_v62  ;;  %v6268_v62 = vrot.slane %v12730_v50, %v12317_v10 }
0x1b89   : > { %v6034_v1 = vpack.c.bf16 %v5977_v63, %v5977_v63  ;;  %v10884_v2 = vpop.f32.mrf.mxu1 }
0x1b8a   : > { %v10878_v55 = vpop.f32.mrf.mxu0  ;;  %10907 = vmatmul.mubr.msk.bf16.vlgmr.msra.gmra.mxu1 %vm1689_vm4, %v6035_v0 }
0x1b8b   : > { %10901 = vmatmul.mubr.msk.bf16.vlgmr.msra.gmra.mxu0 %vm1689_vm4, %v6034_v1  ;;  %v6029_v4 = vpop.f32.mrf.mxu1  ;;  %10938 = vmatprep.mubr.msk.bf16.mxu1 %vm11790_vm0, %v11789_v3  ;;  %v11489_v55 = vld [vmem:[%s13547_s30 + $0x8] sm:$0xff]  }
0x1b8c   : > { %v5980_v6 = vpop.f32.mrf.mxu0  ;;  %10918 = vmatprep.mubr.msk.bf16.mxu0 %vm11790_vm0, %v11789_v3  ;;  %10911 = vmatpush3.bf16.msra.mxu0 %v11479_v51  ;;  %v11490_v4 = vld [vmem:[%s13547_s30] sm:$0xff]  }
0x1b8d   : > { %v10885_v7 = vpop.f32.mrf.mxu1  ;;  %10912 = vmatprep.subr.bf16.mxu0 %v11789_v3  ;;  %10923 = vmatpush3.bf16.msra.mxu1 %v11483_v57  ;;  %v9619_v6 = vld [vmem:[%s13548_s18] ss:$0 sm:$0xff]  ;;  %v11499_v57 = vld [vmem:[%s13528_s26 + $0xb8] sm:$0xff]  }
0x1b8e   : > { %v10879_v8 = vpop.f32.mrf.mxu0  ;;  %10924 = vmatprep.subr.bf16.mxu1 %v11789_v3 }
0x1b90   : > { %10913 = vmatpush3.bf16.msra.mxu0 %v11480_v52 }
0x1b91   : > { %10914 = vmatprep.subr.bf16.mxu0 %v11789_v3  ;;  %10925 = vmatpush3.bf16.msra.mxu1 %v11484_v58 }
0x1b92   : > { %10926 = vmatprep.subr.bf16.mxu1 %v11789_v3 }
0x1b95   : > { %10927 = vmatpush3.bf16.msra.mxu1 %v11485_v35  ;;  %v11503_v35 = vld [vmem:[%s13528_s26 + $0xf8] sm:$0xff]  }
0x1b96   : > { %10928 = vmatprep.subr.bf16.mxu1 %v11789_v3 }
0x1b99   : > { %10929 = vmatpush3.bf16.msra.mxu1 %v11486_v59  ;;  %v11504_v59 = vld [vmem:[%s13528_s26 + $0xf0] sm:$0xff]  }
0x1b9a   : > { %10930 = vmatprep.subr.bf16.mxu1 %v11789_v3 }
0x1b9d   : > { %10931 = vmatpush3.bf16.msra.mxu1 %v11487_v61  ;;  %v11505_v61 = vld [vmem:[%s13528_s26 + $0xe8] sm:$0xff]  }
0x1b9e   : > { %10932 = vmatprep.subr.bf16.mxu1 %v11789_v3 }
0x1ba1   : > { %10933 = vmatpush3.bf16.msra.mxu1 %v11488_v47  ;;  %v11506_v47 = vld [vmem:[%s13528_s26 + $0xe0] sm:$0xff]  }
0x1ba2   : > { %10934 = vmatprep.subr.bf16.mxu1 %v11789_v3 }
0x1ba5   : > { %10935 = vmatpush3.bf16.msra.mxu1 %v11489_v55 }
0x1ba6   : > { %10936 = vmatprep.subr.bf16.mxu1 %v11789_v3 }
0x1ba9   : > { %10937 = vmatpush3.bf16.msra.mxu1 %v11490_v4 }
0x1baa   : > { %10966 = vmatprep.subr.bf16.mxu1 %v11789_v3 }
0x1c3b   : > { %v6079_v12 = vpop.f32.mrf.mxu0 }
0x1c3c   : > { %v6232_v24 = vsel %vm1431_vm3, %v6079_v12, 0.0 }
0x1c3d   : > { %v10890_v14 = vpop.f32.mrf.mxu0 }
0x1c3f   : > { %v6082_v16 = vpop.f32.mrf.mxu0 }
0x1c40   : > { %v6128_v40 = vpop.f32.mrf.mxu1 }
0x1c41   : > { %v10891_v18 = vpop.f32.mrf.mxu0  ;;  %v6233_v23 = vsel %vm1431_vm3, %v6128_v40, 0.0 }
0x1c42   : > { %v10896_v19 = vpop.f32.mrf.mxu1  ;;  %v6234_v26 = vadd.f32 %v6233_v23, %v6232_v24 }
0x1c43   : > { %v9625_v19 = vld [vmem:[%s13549_s2] ss:$0 sm:$0xff] }
0x1c44   : > { %v6131_v15 = vpop.f32.mrf.mxu1 }
0x1c46   : > { %v10897_v30 = vpop.f32.mrf.mxu1 }
0x1c4a   : > { %v6226_v25 = vpop.f32.mrf.mxu1 }
0x1c4b   : > { %v6177_v29 = vpop.f32.mrf.mxu0  ;;  %v6237_v36 = vsel %vm1431_vm3, %v6226_v25, 0.0 }
0x1c4c   : > { %v6235_v31 = vsel %vm1431_vm3, %v6177_v29, 0.0  ;;  %v10908_v33 = vpop.f32.mrf.mxu1 }
0x1c4d   : > { %v6236_v49 = vadd.f32 %v6235_v31, %v6234_v26  ;;  %v10902_v34 = vpop.f32.mrf.mxu0 }
0x1c4e   : > { %v6229_v21 = vpop.f32.mrf.mxu1 }
0x1c4f   : > { %v6238_v17 = vadd.f32 %v6237_v36, %v6236_v49  ;;  %v6180_v38 = vpop.f32.mrf.mxu0  ;;  %v11491_v36 = vld [vmem:[%s13528_s26 + $0x98] sm:$0xff]  }
0x1c50   : > { %v10909_v5 = vpop.f32.mrf.mxu1  ;;  %v11492_v21 = vld [vmem:[%s13528_s26 + $0xd8] sm:$0xff]   ;;  %v11494_v38 = vld [vmem:[%s13528_s26 + $0xd0] sm:$0xff]  }
0x1c51   : > { %v6245_v39 = vadd.f32 %v9618_v9, %v6238_v17  ;;  %v10903_v42 = vpop.f32.mrf.mxu0  ;;  %v11493_v17 = vld [vmem:[%s13528_s26 + $0x90] sm:$0xff]   ;;  %v11495_v5 = vld [vmem:[%s13528_s26 + $0x88] sm:$0xff]  }
0x1c52   : > { %v11497_v42 = vld [vmem:[%s13528_s26 + $0x80] sm:$0xff]  }
0x1c53   : > { %v6246_v43 = vadd.f32 %v6245_v39, %v12736_v60  ;;  %v11481_v60 = vld [vmem:[%s13546_s29 + $0x8] sm:$0xff]  }
0x1c54   : > { %10915 = vmatpush3.bf16.msra.mxu0 %v11481_v60  ;;  %v11496_v39 = vld [vmem:[%s13528_s26 + $0xc8] sm:$0xff]  }
0x1c55   : > { %v6247_v20 = vsel %vm1431_vm3, %v6246_v43, 0.0  ;;  %10916 = vmatprep.subr.bf16.mxu0 %v11789_v3 }
0x1c56   : > { %6248 = vadd.xlane.f32.xlu0 %v6247_v20 }
0x1c58   : > { %10917 = vmatpush3.bf16.msra.mxu0 %v11482_v53 }
0x1c59   : > { %10942 = vmatprep.subr.bf16.mxu0 %v11789_v3 }
0x1cdf   : > { %v6249_v44 = vpop.xlane.xlu0 %6248 }
0x1ce0   : > { %v6250_v45 = vmul.f32 0.015625, %v6249_v44 }
0x1ce2   : > { %v6251_v46 = vsub.f32 %v6246_v43, %v6250_v45  ;;  %v11498_v43 = vld [vmem:[%s13528_s26 + $0xc0] sm:$0xff]  }
0x1ce4   : > { %v6252_v11 = vmul.f32 %v6251_v46, %v6251_v46 }
0x1ce6   : > { %v6253_v41 = vsel %vm1431_vm3, %v6252_v11, 0.0 }
0x1ce7   : > { %6254 = vadd.xlane.f32.xlu1 %v6253_v41 }
0x1d70   : > { %v6255_v32 = vpop.xlane.xlu1 %6254 }
0x1d71   : > { %v6256_v37 = vmul.f32 0.015625, %v6255_v32  ;;  %v9672_v32 = vld [vmem:[%s13530_s4 + $0x4] ss:$0 sm:$0xff] }
0x1d73   : > { %v6257_v13 = vadd.f32 1e-05, %v6256_v37 }
0x1d75   : > { %11639 = vrsqrt.f32 %v6257_v13  ;;  %v9674_v13 = vld [vmem:[%s13530_s4 + $0x6] ss:$0 sm:$0xff] }
0x1d82   : > { %v11640_v56 = vpop.eup %11639 }
0x1d83   : > { %v6259_v63 = vmul.f32 %v11640_v56, %v6251_v46  ;;  %v12980_v46 = vsub.s32 2, %v12272_v27  ;;  %v11500_v27 = vld [vmem:[%s13528_s26 + $0xb0] sm:$0xff]  }
0x1d85   : > { %v6264_v0 = vmul.f32 %v6263_v54, %v6259_v63  ;;  %v6483_v11 = vrot.slane %v12727_v48, %v12980_v46  ;;  %v6488_v51 = vrot.slane %v12730_v50, %v12980_v46  ;;  %v11501_v48 = vld [vmem:[%s13528_s26 + $0xa8] sm:$0xff]   ;;  %v11502_v50 = vld [vmem:[%s13528_s26 + $0xa0] sm:$0xff]  }
0x1d87   : > { %v6269_v1 = vadd.f32 %v6268_v62, %v6264_v0 }
0x1d89   : > { %v6270_v2 = vpack.c.bf16 %v6269_v1, %v6269_v1 }
0x1d8b   : > { %10919 = vmatmul.mubr.msk.bf16.vlgmr.msra.gmra.mxu0 %vm1431_vm3, %v6270_v2 }
0x1d8c   : > { %10950 = vmatprep.mubr.msk.bf16.mxu0 %vm11790_vm0, %v11789_v3  ;;  %10943 = vmatpush3.bf16.msra.mxu0 %v11491_v36 }
0x1d8d   : > { %10944 = vmatprep.subr.bf16.mxu0 %v11789_v3 }
0x1d90   : > { %10945 = vmatpush3.bf16.msra.mxu0 %v11493_v17 }
0x1d91   : > { %10946 = vmatprep.subr.bf16.mxu0 %v11789_v3 }
0x1d94   : > { %10947 = vmatpush3.bf16.msra.mxu0 %v11495_v5  ;;  %v11684_v5 = vld [vmem:[%s12623_s8] sm:$0xff]  ;;  %s1236_s8 = sand.u32 1, %s11738_s1  }
0x1d95   : > { %10948 = vmatprep.subr.bf16.mxu0 %v11789_v3  ;;  %s9317_s2 = sshll.u32 %s1236_s8, 3 }
0x1d98   : > { %10949 = vmatpush3.bf16.msra.mxu0 %v11497_v42 }
0x1d99   : > { %10954 = vmatprep.subr.bf16.mxu0 %v11789_v3 }
0x1e4b   : > { %v6347_v7 = vpop.f32.mrf.mxu0 }
0x1e4c   : > { %v6348_v8 = vadd.f32 %v9619_v6, %v6347_v7 }
0x1e4d   : > { %v10920_v12 = vpop.f32.mrf.mxu0 }
0x1e4e   : > { %v6353_v14 = vmax.f32 %v6348_v8, 0.0  ;;  %v9673_v8 = vld [vmem:[%s13530_s4 + $0x5] ss:$0 sm:$0xff] }
0x1e4f   : > { %v6350_v16 = vpop.f32.mrf.mxu0 }
0x1e50   : > { %v6354_v40 = vpack.c.bf16 %v6353_v14, %v6353_v14 }
0x1e51   : > { %v10921_v18 = vpop.f32.mrf.mxu0 }
0x1e52   : > { %10939 = vmatmul.mubr.bf16.vlgmr.msra.gmra.mxu1 %v6354_v40 }
0x1e53   : > { %10974 = vmatprep.mubr.msk.bf16.mxu1 %vm11790_vm0, %v11789_v3  ;;  %10967 = vmatpush3.bf16.msra.mxu1 %v11492_v21 }
0x1e54   : > { %10968 = vmatprep.subr.bf16.mxu1 %v11789_v3 }
0x1e57   : > { %10969 = vmatpush3.bf16.msra.mxu1 %v11494_v38 }
0x1e58   : > { %10970 = vmatprep.subr.bf16.mxu1 %v11789_v3 }
0x1e5b   : > { %10971 = vmatpush3.bf16.msra.mxu1 %v11496_v39 }
0x1e5c   : > { %10972 = vmatprep.subr.bf16.mxu1 %v11789_v3 }
0x1e5f   : > { %10973 = vmatpush3.bf16.msra.mxu1 %v11498_v43 }
0x1e60   : > { %10990 = vmatprep.subr.bf16.mxu1 %v11789_v3 }
0x1f12   : > { %v6460_v15 = vpop.f32.mrf.mxu1 }
0x1f13   : > { %v6461_v30 = vadd.f32 %v9625_v19, %v6460_v15  ;;  %v9675_v15 = vld [vmem:[%s13530_s4 + $0x7] ss:$0 sm:$0xff] }
0x1f14   : > { %v10940_v23 = vpop.f32.mrf.mxu1 }
0x1f15   : > { %v6466_v24 = vadd.f32 %v6461_v30, %v6269_v1 }
0x1f16   : > { %v6463_v25 = vpop.f32.mrf.mxu1 }
0x1f17   : > { %v6467_v26 = vsel %vm1431_vm3, %v6466_v24, 0.0 }
0x1f18   : > { %6468 = vadd.xlane.f32.xlu0 %v6467_v26  ;;  %v10941_v29 = vpop.f32.mrf.mxu1 }
0x1fa1   : > { %v6469_v31 = vpop.xlane.xlu0 %6468 }
0x1fa2   : > { %v6470_v33 = vmul.f32 0.015625, %v6469_v31 }
0x1fa4   : > { %v6471_v49 = vsub.f32 %v6466_v24, %v6470_v33 }
0x1fa6   : > { %v6472_v34 = vmul.f32 %v6471_v49, %v6471_v49 }
0x1fa8   : > { %v6473_v9 = vsel %vm1431_vm3, %v6472_v34, 0.0 }
0x1fa9   : > { %6474 = vadd.xlane.f32.xlu0 %v6473_v9 }
0x2032   : > { %v6475_v20 = vpop.xlane.xlu0 %6474 }
0x2033   : > { %v6476_v44 = vmul.f32 0.015625, %v6475_v20 }
0x2035   : > { %v6477_v45 = vadd.f32 1e-05, %v6476_v44 }
0x2037   : > { %11641 = vrsqrt.f32 %v6477_v45 }
0x2044   : > { %v11642_v41 = vpop.eup %11641 }
0x2045   : > { %v6479_v52 = vmul.f32 %v11642_v41, %v6471_v49 }
0x2047   : > { %v6484_v60 = vmul.f32 %v6483_v11, %v6479_v52 }
0x2049   : > { %v12986_v53 = vadd.f32 %v6488_v51, %v6484_v60 }
0x204b   : > { %v6494_v58 = vpack.c.bf16 %v12986_v53, %v12986_v53 }
0x204d   : > { %10951 = vmatmul.mubr.msk.bf16.vlgmr.msra.gmra.mxu0 %vm1431_vm3, %v6494_v58  ;;  %10975 = vmatmul.mubr.msk.bf16.vlgmr.msra.gmra.mxu1 %vm1431_vm3, %v6494_v58 }
0x204e   : > { %10955 = vmatpush3.bf16.msra.mxu0 %v11499_v57  ;;  %10962 = vmatprep.mubr.msk.bf16.mxu0 %vm11790_vm0, %v11789_v3 }
0x204f   : > { %10956 = vmatprep.subr.bf16.mxu0 %v11789_v3  ;;  %10992 = vmatprep.mubr.msk.bf16.mxu1 %vm11790_vm0, %v11789_v3 }
0x2052   : > { %10957 = vmatpush3.bf16.msra.mxu0 %v11500_v27 }
0x2053   : > { %10958 = vmatprep.subr.bf16.mxu0 %v11789_v3 }
0x2056   : > { %10959 = vmatpush3.bf16.msra.mxu0 %v11501_v48 }
0x2057   : > { %10960 = vmatprep.subr.bf16.mxu0 %v11789_v3 }
0x205a   : > { %10961 = vmatpush3.bf16.msra.mxu0 %v11502_v50 }
0x205b   : > { %10978 = vmatprep.subr.bf16.mxu0 %v11789_v3 }
0x205d   : > { %10963 = vmatmul.mubr.msk.bf16.vlgmr.msra.gmra.mxu0 %vm1431_vm3, %v6494_v58 }
0x205e   : > { %10979 = vmatpush3.bf16.msra.mxu0 %v11503_v35  ;;  %10986 = vmatprep.mubr.msk.bf16.mxu0 %vm11790_vm0, %v11789_v3 }
0x205f   : > { %10980 = vmatprep.subr.bf16.mxu0 %v11789_v3 }
0x2062   : > { %10981 = vmatpush3.bf16.msra.mxu0 %v11504_v59 }
0x2063   : > { %10982 = vmatprep.subr.bf16.mxu0 %v11789_v3 }
0x2066   : > { %10983 = vmatpush3.bf16.msra.mxu0 %v11505_v61 }
0x2067   : > { %10984 = vmatprep.subr.bf16.mxu0 %v11789_v3 }
0x206a   : > { %10985 = vmatpush3.bf16.msra.mxu0 %v11506_v47 }
0x206b   : > { %11002 = vmatprep.subr.bf16.mxu0 %v11789_v3 }
0x206d   : > { %10987 = vmatmul.mubr.msk.bf16.vlgmr.msra.gmra.mxu0 %vm1431_vm3, %v6494_v58 }
0x206e   : > { %11004 = vmatprep.mubr.msk.bf16.mxu0 %vm11790_vm0, %v11789_v3 }
0x210d   : > { %v6618_v37 = vpop.f32.mrf.mxu0  ;;  %v6746_v54 = vpop.f32.mrf.mxu1 }
0x210e   : > { %v6619_v56 = vadd.f32 %v9672_v32, %v6618_v37  ;;  %v6747_v1 = vadd.f32 %v9674_v13, %v6746_v54 }
0x210f   : > { %v10952_v62 = vpop.f32.mrf.mxu0  ;;  %v10976_v63 = vpop.f32.mrf.mxu1 }
0x2110   : > { %v13020_v0 = vpack.c.bf16 %v6619_v56, %v6619_v56  ;;  %v13024_v7 = vpack.c.bf16 %v6747_v1, %v6747_v1 }
0x2111   : > { %v6621_v2 = vpop.f32.mrf.mxu0  ;;  %v6749_v55 = vpop.f32.mrf.mxu1 }
0x2112   : > { %6832 = vrot.lane.b32.xlu1 %v13020_v0, %s13531_s5 }
0x2113   : > { %v10953_v4 = vpop.f32.mrf.mxu0  ;;  %v10977_v6 = vpop.f32.mrf.mxu1 }
0x2116   : > { %6930 = vrot.lane.b32.xlu1 %v13024_v7, %s13531_s5 }
0x211d   : > { %v6682_v12 = vpop.f32.mrf.mxu0 }
0x211e   : > { %v6683_v14 = vadd.f32 %v9673_v8, %v6682_v12 }
0x211f   : > { %v10964_v16 = vpop.f32.mrf.mxu0 }
0x2120   : > { %v13029_v40 = vpack.c.bf16 %v6683_v14, %v6683_v14 }
0x2121   : > { %v6685_v18 = vpop.f32.mrf.mxu0 }
0x2122   : > { %6881 = vrot.lane.b32.xlu0 %v13029_v40, %s13531_s5 }
0x2123   : > { %v10965_v19 = vpop.f32.mrf.mxu0 }
0x212d   : > { %v6810_v30 = vpop.f32.mrf.mxu0 }
0x212e   : > { %v6811_v23 = vadd.f32 %v9675_v15, %v6810_v30 }
0x212f   : > { %v10988_v24 = vpop.f32.mrf.mxu0 }
0x2130   : > { %v13034_v25 = vpack.c.bf16 %v6811_v23, %v6811_v23 }
0x2131   : > { %v6813_v26 = vpop.f32.mrf.mxu0 }
0x2132   : > { %6979 = vrot.lane.b32.xlu1 %v13034_v25, %s13531_s5 }
0x2133   : > { %v10989_v29 = vpop.f32.mrf.mxu0 }
0x2184   : > { %v6833_v31 = vpop.permute.xlu1 %6832 }
0x2185   : > { %v6838_v33 = vsel %vm1689_vm4, %v6833_v31, 0 }
0x2186   : > { %10991 = vmatpush3.bf16.xpose.msra.mxu1 %v6838_v33 }
0x2187   : > { %10996 = vmatprep.subr.bf16.mxu1 %v11789_v3 }
0x2188   : > { %v6931_v49 = vpop.permute.xlu1 %6930 }
0x2189   : > { %v6936_v34 = vsel %vm1689_vm4, %v6931_v49, 0 }
0x218a   : > { %11003 = vmatpush3.bf16.xpose.msra.mxu0 %v6936_v34 }
0x218b   : > { %11014 = vmatprep.subr.bf16.mxu0 %v11789_v3 }
0x218d   : > { %10993 = vmatmul.mubr.msk.bf16.vlgmr.msra.gmra.mxu1 %vm1689_vm4, %v13020_v0 }
0x218e   : > { %10998 = vmatprep.mubr.msk.bf16.mxu1 %vm11790_vm0, %v11789_v3 }
0x2191   : > { %11005 = vmatmul.mubr.msk.bf16.vlgmr.msra.gmra.mxu0 %vm1689_vm4, %v13024_v7 }
0x2192   : > { %11016 = vmatprep.mubr.msk.bf16.mxu0 %vm11790_vm0, %v11789_v3 }
0x2194   : > { %v6882_v9 = vpop.permute.xlu0 %6881 }
0x2195   : > { %v6887_v36 = vsel %vm1689_vm4, %v6882_v9, 0 }
0x2196   : > { %10997 = vmatpush3.bf16.xpose.msra.mxu1 %v6887_v36 }
0x2197   : > { %11008 = vmatprep.subr.bf16.mxu1 %v11789_v3 }
0x219d   : > { %10999 = vmatmul.mubr.msk.bf16.vlgmr.msra.gmra.mxu1 %vm1689_vm4, %v13029_v40 }
0x219e   : > { %11010 = vmatprep.mubr.msk.bf16.mxu1 %vm11790_vm0, %v11789_v3 }
0x21a4   : > { %v6980_v21 = vpop.permute.xlu1 %6979 }
0x21a5   : > { %v6985_v17 = vsel %vm1689_vm4, %v6980_v21, 0 }
0x21a6   : > { %11009 = vmatpush3.bf16.xpose.msra.mxu1 %v6985_v17 }
0x21a7   : > { %11020 = vmatprep.subr.bf16.mxu1 %v11789_v3 }
0x21ad   : > { %11011 = vmatmul.mubr.msk.bf16.vlgmr.msra.gmra.mxu1 %vm1689_vm4, %v13034_v25 }
0x21ae   : > { %11022 = vmatprep.mubr.msk.bf16.mxu1 %vm11790_vm0, %v11789_v3 }
0x224d   : > { %v6874_v38 = vpop.f32.mrf.mxu1 }
0x224e   : > { %v6875_v39 = vadd.f32 %v11684_v5, %v6874_v38 }
0x224f   : > { %v10994_v42 = vpop.f32.mrf.mxu1 }
0x2250   : > { %v7027_v43 = vsel %vm1883_vm5, %v6875_v39, -inf }
0x2251   : > { %v6877_v20 = vpop.f32.mrf.mxu1  ;;  %7028 = vmax.xlane.f32.xlu0 %v7027_v43  ;;  %v6972_v44 = vpop.f32.mrf.mxu0 }
0x2252   : > { %v6973_v45 = vadd.f32 %v11684_v5, %v6972_v44 }
0x2253   : > { %v10995_v11 = vpop.f32.mrf.mxu1  ;;  %v11006_v41 = vpop.f32.mrf.mxu0 }
0x2254   : > { %v7033_v51 = vsel %vm1883_vm5, %v6973_v45, -inf }
0x2255   : > { %7034 = vmax.xlane.f32.xlu0 %v7033_v51  ;;  %v6975_v52 = vpop.f32.mrf.mxu0 }
0x2256   : > { %v11507_v52 = vld [vmem:[%s13534_s10 + $0x20] sm:$0xff]  }
0x2257   : > { %v11007_v60 = vpop.f32.mrf.mxu0 }
0x2258   : > { %v11509_v60 = vld [vmem:[%s13534_s10 + $0x28] sm:$0xff]  }
0x225d   : > { %v6923_v57 = vpop.f32.mrf.mxu1 }
0x225e   : > { %v6924_v58 = vadd.f32 %v11684_v5, %v6923_v57 }
0x225f   : > { %v11000_v27 = vpop.f32.mrf.mxu1 }
0x2260   : > { %v7030_v48 = vsel %vm1883_vm5, %v6924_v58, -inf }
0x2261   : > { %v6926_v50 = vpop.f32.mrf.mxu1  ;;  %7031 = vmax.xlane.f32.xlu1 %v7030_v48 }
0x2263   : > { %v11001_v35 = vpop.f32.mrf.mxu1 }
0x226d   : > { %v7021_v59 = vpop.f32.mrf.mxu1 }
0x226e   : > { %v7022_v61 = vadd.f32 %v11684_v5, %v7021_v59 }
0x226f   : > { %v11012_v47 = vpop.f32.mrf.mxu1 }
0x2270   : > { %v7036_v32 = vsel %vm1883_vm5, %v7022_v61, -inf }
0x2271   : > { %v7024_v37 = vpop.f32.mrf.mxu1  ;;  %7037 = vmax.xlane.f32.xlu0 %v7036_v32 }
0x2272   : > { %7075 = vrot.lane.b32.xlu1 %v13020_v0, %s13533_s6 }
0x2273   : > { %v11013_v13 = vpop.f32.mrf.mxu1 }
0x22da   : > { %v7029_v54 = vpop.xlane.xlu0 %7028 }
0x22db   : > { %v7039_v56 = vsub.f32 %v6875_v39, %v7029_v54  ;;  %v11510_v54 = vld [vmem:[%s13534_s10 + $0x38] sm:$0xff]  }
0x22dd   : > { %v7043_v62 = vmul.f32 1.442695, %v7039_v56 }
0x22de   : > { %v7035_v63 = vpop.xlane.xlu0 %7034 }
0x22df   : > { %11643 = vpow2.f32 %v7043_v62  ;;  %v7041_v1 = vsub.f32 %v6973_v45, %v7035_v63 }
0x22e1   : > { %v7047_v2 = vmul.f32 1.442695, %v7041_v1 }
0x22e3   : > { %11645 = vpow2.f32 %v7047_v2 }
0x22ea   : > { %v7032_v55 = vpop.xlane.xlu1 %7031 }
0x22eb   : > { %v7040_v4 = vsub.f32 %v6924_v58, %v7032_v55  ;;  %v11508_v58 = vld [vmem:[%s13534_s10 + $0x30] sm:$0xff]  }
0x22ec   : > { %v11644_v6 = vpop.eup %11643 }
0x22ed   : > { %v7045_v8 = vmul.f32 1.442695, %v7040_v4  ;;  %v7051_v12 = vsel %vm1883_vm5, %v11644_v6, 0.0 }
0x22ee   : > { %v7076_v14 = vpop.permute.xlu1 %7075  ;;  %7052 = vadd.xlane.f32.xlu1 %v7051_v12 }
0x22ef   : > { %11647 = vpow2.f32 %v7045_v8  ;;  %v7081_v0 = vsel %vm1937_vm6, %v7076_v14, 0 }
0x22f0   : > { %v11646_v16 = vpop.eup %11645  ;;  %11015 = vmatpush3.bf16.msra.mxu0 %v7081_v0 }
0x22f1   : > { %v7057_v18 = vsel %vm1883_vm5, %v11646_v16, 0.0  ;;  %11026 = vmatprep.subr.bf16.mxu0 %v11789_v3 }
0x22f2   : > { %7058 = vadd.xlane.f32.xlu1 %v7057_v18 }
0x22fa   : > { %v7038_v19 = vpop.xlane.xlu0 %7037 }
0x22fb   : > { %v7042_v15 = vsub.f32 %v7022_v61, %v7038_v19 }
0x22fc   : > { %v11648_v30 = vpop.eup %11647 }
0x22fd   : > { %v7049_v23 = vmul.f32 1.442695, %v7042_v15  ;;  %v7054_v24 = vsel %vm1883_vm5, %v11648_v30, 0.0 }
0x22fe   : > { %7055 = vadd.xlane.f32.xlu0 %v7054_v24 }
0x22ff   : > { %11649 = vpow2.f32 %v7049_v23 }
0x2303   : > { %7171 = vrot.lane.b32.xlu1 %v13024_v7, %s13533_s6 }
0x2307   : > { %7219 = vrot.lane.b32.xlu1 %v13034_v25, %s13533_s6 }
0x230c   : > { %v11650_v26 = vpop.eup %11649 }
0x230d   : > { %v7060_v29 = vsel %vm1883_vm5, %v11650_v26, 0.0 }
0x230e   : > { %7061 = vadd.xlane.f32.xlu0 %v7060_v29 }
0x2324   : > { %7123 = vrot.lane.b32.xlu0 %v13029_v40, %s13533_s6  ;;  %s1238_s6 = scalar_lea.vmem [#allocation2], %s9317_s2 }
0x2325   : > { %s9181_s4 = sshll.u32 %s1238_s6, 4  ;;  %s13394_s4 = int_to_ptr.vmem [resolvable:$true] %s9181_s4 }
0x2377   : > { %v7053_v31 = vpop.xlane.xlu1 %7052 }
0x2378   : > { %11651 = vrcp.f32 %v7053_v31 }
0x237b   : > { %v7059_v33 = vpop.xlane.xlu1 %7058 }
0x237c   : > { %11653 = vrcp.f32 %v7059_v33 }
0x237f   : > { %v7172_v9 = vpop.permute.xlu1 %7171 }
0x2380   : > { %v7177_v17 = vsel %vm1937_vm6, %v7172_v9, 0 }
0x2383   : > { %v7220_v20 = vpop.permute.xlu1 %7219 }
0x2384   : > { %v7225_v45 = vsel %vm1937_vm6, %v7220_v20, 0 }
0x2385   : > { %v11652_v49 = vpop.eup %11651 }
0x2386   : > { %v7064_v34 = vmul.f32 %v11652_v49, %v11644_v6 }
0x2387   : > { %v7056_v36 = vpop.xlane.xlu0 %7055 }
0x2388   : > { %v7071_v21 = vpack.c.bf16 %v7064_v34, %v7064_v34  ;;  %11655 = vrcp.f32 %v7056_v36 }
0x2389   : > { %v11654_v7 = vpop.eup %11653 }
0x238a   : > { %11017 = vmatmul.mubr.msk.bf16.vlgmr.msra.gmra.mxu0 %vm1883_vm5, %v7071_v21  ;;  %v7068_v40 = vmul.f32 %v11654_v7, %v11646_v16  ;;  %v9721_v21 = vld [vmem:[%s13535_s12 + $0x1] ss:$0 sm:$0xff] }
0x238b   : > { %11027 = vmatpush3.bf16.msra.mxu0 %v7177_v17  ;;  %11028 = vmatprep.mubr.msk.bf16.mxu0 %vm11790_vm0, %v11789_v3 }
0x238c   : > { %11038 = vmatprep.subr.bf16.mxu0 %v11789_v3  ;;  %v7073_v25 = vpack.c.bf16 %v7068_v40, %v7068_v40 }
0x2392   : > { %11029 = vmatmul.mubr.msk.bf16.vlgmr.msra.gmra.mxu0 %vm1883_vm5, %v7073_v25 }
0x2393   : > { %11040 = vmatprep.mubr.msk.bf16.mxu0 %vm11790_vm0, %v11789_v3  ;;  %11039 = vmatpush3.bf16.msra.mxu0 %v11507_v52  ;;  %v11514_v52 = vld [vmem:[%s13536_s13 + $0xb0] sm:$0xff]  }
0x2394   : > { %11050 = vmatprep.subr.bf16.mxu0 %v11789_v3 }
0x2395   : > { %v11656_v38 = vpop.eup %11655 }
0x2396   : > { %v7066_v39 = vmul.f32 %v11656_v38, %v11648_v30 }
0x2397   : > { %v7062_v5 = vpop.xlane.xlu0 %7061 }
0x2398   : > { %11657 = vrcp.f32 %v7062_v5  ;;  %v7072_v44 = vpack.c.bf16 %v7066_v39, %v7066_v39 }
0x239b   : > { %v7124_v42 = vpop.permute.xlu0 %7123 }
0x239c   : > { %v7129_v43 = vsel %vm1937_vm6, %v7124_v42, 0 }
0x239d   : > { %11021 = vmatpush3.bf16.msra.mxu1 %v7129_v43 }
0x239e   : > { %11032 = vmatprep.subr.bf16.mxu1 %v11789_v3 }
0x23a0   : > { %11023 = vmatmul.mubr.msk.bf16.vlgmr.msra.gmra.mxu1 %vm1883_vm5, %v7072_v44 }
0x23a1   : > { %11033 = vmatpush3.bf16.msra.mxu1 %v7225_v45  ;;  %11034 = vmatprep.mubr.msk.bf16.mxu1 %vm11790_vm0, %v11789_v3 }
0x23a2   : > { %11044 = vmatprep.subr.bf16.mxu1 %v11789_v3 }
0x23a5   : > { %v11658_v11 = vpop.eup %11657 }
0x23a6   : > { %v7070_v41 = vmul.f32 %v11658_v11, %v11650_v26 }
0x23a8   : > { %v7074_v51 = vpack.c.bf16 %v7070_v41, %v7070_v41  ;;  %v11511_v41 = vld [vmem:[%s13536_s13 + $0x98] sm:$0xff]  }
0x23aa   : > { %11035 = vmatmul.mubr.msk.bf16.vlgmr.msra.gmra.mxu1 %vm1883_vm5, %v7074_v51  ;;  %v11512_v51 = vld [vmem:[%s13536_s13 + $0xb8] sm:$0xff]  }
0x23ab   : > { %11046 = vmatprep.mubr.msk.bf16.mxu1 %vm11790_vm0, %v11789_v3  ;;  %11045 = vmatpush3.bf16.msra.mxu1 %v11509_v60  ;;  %v11515_v60 = vld [vmem:[%s13536_s13 + $0x88] sm:$0xff]  }
0x23ac   : > { %11056 = vmatprep.subr.bf16.mxu1 %v11789_v3 }
0x244a   : > { %v7117_v57 = vpop.f32.mrf.mxu0 }
0x244b   : > { %v7267_v27 = vpack.c.bf16 %v7117_v57, %v7117_v57  ;;  %v11516_v57 = vld [vmem:[%s13536_s13 + $0xa8] sm:$0xff]  }
0x244c   : > { %v11018_v48 = vpop.f32.mrf.mxu0 }
0x244d   : > { %11041 = vmatmul.mubr.msk.bf16.vlgmr.msra.gmra.mxu0 %vm1689_vm4, %v7267_v27  ;;  %v11518_v27 = vld [vmem:[%s13536_s13 + $0xa0] sm:$0xff]  }
0x244e   : > { %v7120_v50 = vpop.f32.mrf.mxu0  ;;  %11051 = vmatpush3.bf16.msra.mxu0 %v11508_v58  ;;  %11052 = vmatprep.mubr.msk.bf16.mxu0 %vm11790_vm0, %v11789_v3  ;;  %v11517_v58 = vld [vmem:[%s13536_s13 + $0x80] sm:$0xff]  }
0x244f   : > { %11062 = vmatprep.subr.bf16.mxu0 %v11789_v3 }
0x2450   : > { %v11019_v35 = vpop.f32.mrf.mxu0 }
0x2452   : > { %v7213_v59 = vpop.f32.mrf.mxu0 }
0x2453   : > { %v7269_v61 = vpack.c.bf16 %v7213_v59, %v7213_v59  ;;  %v13144_v59 = vld [vmem:[%s13537_s14 + $0x4] sm:$0x7] }
0x2454   : > { %v11030_v47 = vpop.f32.mrf.mxu0 }
0x2455   : > { %11053 = vmatmul.mubr.msk.bf16.vlgmr.msra.gmra.mxu0 %vm1689_vm4, %v7269_v61  ;;  %v13147_v61 = vld [vmem:[%s13538_s16 + $0x4] sm:$0x7]  ;;  %v7498_v47 = vrot.slane %v13144_v59, %v12275_v28 }
0x2456   : > { %v7216_v32 = vpop.f32.mrf.mxu0  ;;  %11070 = vmatprep.mubr.msk.bf16.mxu0 %vm11790_vm0, %v11789_v3  ;;  %11063 = vmatpush3.bf16.msra.mxu0 %v11511_v41  ;;  %v9819_v41 = vld [vmem:[%s13542_s21 + $0x5] ss:$0 sm:$0xff] }
0x2457   : > { %11064 = vmatprep.subr.bf16.mxu0 %v11789_v3 }
0x2458   : > { %v11031_v37 = vpop.f32.mrf.mxu0 }
0x2460   : > { %v7165_v13 = vpop.f32.mrf.mxu1 }
0x2461   : > { %v7268_v56 = vpack.c.bf16 %v7165_v13, %v7165_v13  ;;  %v7503_v13 = vrot.slane %v13147_v61, %v12275_v28  ;;  %v11522_v28 = vld [vmem:[%s13536_s13 + $0xf0] sm:$0xff]  }
0x2462   : > { %v11024_v62 = vpop.f32.mrf.mxu1 }
0x2463   : > { %11047 = vmatmul.mubr.msk.bf16.vlgmr.msra.gmra.mxu1 %vm1689_vm4, %v7268_v56  ;;  %v11519_v62 = vld [vmem:[%s13536_s13 + $0xd8] sm:$0xff]  }
0x2464   : > { %v7168_v63 = vpop.f32.mrf.mxu1  ;;  %11057 = vmatpush3.bf16.msra.mxu1 %v11510_v54  ;;  %11058 = vmatprep.mubr.msk.bf16.mxu1 %vm11790_vm0, %v11789_v3 }
0x2465   : > { %11074 = vmatprep.subr.bf16.mxu1 %v11789_v3  ;;  %v11520_v63 = vld [vmem:[%s13536_s13 + $0xf8] sm:$0xff]  }
0x2466   : > { %v11025_v1 = vpop.f32.mrf.mxu1 }
0x246a   : > { %v7261_v2 = vpop.f32.mrf.mxu1 }
0x246b   : > { %v7270_v55 = vpack.c.bf16 %v7261_v2, %v7261_v2  ;;  %v11521_v2 = vld [vmem:[%s13536_s13 + $0xd0] sm:$0xff]  }
0x246c   : > { %v11036_v4 = vpop.f32.mrf.mxu1 }
0x246d   : > { %11059 = vmatmul.mubr.msk.bf16.vlgmr.msra.gmra.mxu1 %vm1689_vm4, %v7270_v55  ;;  %v11523_v55 = vld [vmem:[%s13536_s13 + $0xc8] sm:$0xff]  }
0x246e   : > { %v7264_v6 = vpop.f32.mrf.mxu1  ;;  %11082 = vmatprep.mubr.msk.bf16.mxu1 %vm11790_vm0, %v11789_v3  ;;  %11075 = vmatpush3.bf16.msra.mxu1 %v11512_v51  ;;  %v11524_v4 = vld [vmem:[%s13536_s13 + $0xe8] sm:$0xff]  }
0x246f   : > { %11076 = vmatprep.subr.bf16.mxu1 %v11789_v3  ;;  %v11525_v6 = vld [vmem:[%s13536_s13 + $0xc0] sm:$0xff]  }
0x2470   : > { %v11037_v8 = vpop.f32.mrf.mxu1 }
0x2471   : > { %v11526_v8 = vld [vmem:[%s13536_s13 + $0xe0] sm:$0xff]  }
0x2472   : > { %11077 = vmatpush3.bf16.msra.mxu1 %v11514_v52 }
0x2473   : > { %11078 = vmatprep.subr.bf16.mxu1 %v11789_v3 }
0x2476   : > { %11079 = vmatpush3.bf16.msra.mxu1 %v11516_v57 }
0x2477   : > { %11080 = vmatprep.subr.bf16.mxu1 %v11789_v3 }
0x247a   : > { %11081 = vmatpush3.bf16.msra.mxu1 %v11518_v27 }
0x247b   : > { %11098 = vmatprep.subr.bf16.mxu1 %v11789_v3 }
0x250d   : > { %v7314_v12 = vpop.f32.mrf.mxu0 }
0x250e   : > { %v7467_v31 = vsel %vm1431_vm3, %v7314_v12, 0.0  ;;  %v11527_v12 = vld [vmem:[%s13539_s19 + $0x98] sm:$0xff]  }
0x250f   : > { %v11042_v14 = vpop.f32.mrf.mxu0 }
0x2510   : > { %v11528_v14 = vld [vmem:[%s13539_s19 + $0xb8] sm:$0xff]  }
0x2511   : > { %v7317_v0 = vpop.f32.mrf.mxu0 }
0x2512   : > { %v11529_v0 = vld [vmem:[%s13539_s19 + $0x90] sm:$0xff]  }
0x2513   : > { %v11043_v16 = vpop.f32.mrf.mxu0 }
0x2514   : > { %v11530_v16 = vld [vmem:[%s13539_s19 + $0xb0] sm:$0xff]  }
0x2515   : > { %v7412_v18 = vpop.f32.mrf.mxu0 }
0x2516   : > { %v7470_v34 = vsel %vm1431_vm3, %v7412_v18, 0.0  ;;  %v11531_v18 = vld [vmem:[%s13539_s19 + $0x88] sm:$0xff]  }
0x2517   : > { %v11054_v19 = vpop.f32.mrf.mxu0 }
0x2518   : > { %v11532_v19 = vld [vmem:[%s13539_s19 + $0xa8] sm:$0xff]  }
0x2519   : > { %v7415_v15 = vpop.f32.mrf.mxu0 }
0x251a   : > { %v11533_v15 = vld [vmem:[%s13539_s19 + $0x80] sm:$0xff]  }
0x251b   : > { %v11055_v30 = vpop.f32.mrf.mxu0 }
0x251c   : > { %v11534_v30 = vld [vmem:[%s13539_s19 + $0xa0] sm:$0xff]  }
0x2523   : > { %v7363_v23 = vpop.f32.mrf.mxu1 }
0x2524   : > { %v7468_v26 = vsel %vm1431_vm3, %v7363_v23, 0.0  ;;  %v11535_v23 = vld [vmem:[%s13539_s19 + $0xd8] sm:$0xff]  }
0x2525   : > { %v11048_v24 = vpop.f32.mrf.mxu1  ;;  %v7469_v33 = vadd.f32 %v7468_v26, %v7467_v31  ;;  %v11537_v26 = vld [vmem:[%s13539_s19 + $0xd0] sm:$0xff]   ;;  %v11539_v31 = vld [vmem:[%s13539_s19 + $0xc8] sm:$0xff]  }
0x2526   : > { %v11536_v24 = vld [vmem:[%s13539_s19 + $0xf8] sm:$0xff]  }
0x2527   : > { %v7366_v29 = vpop.f32.mrf.mxu1  ;;  %v7471_v36 = vadd.f32 %v7470_v34, %v7469_v33  ;;  %v11540_v33 = vld [vmem:[%s13539_s19 + $0xe8] sm:$0xff]   ;;  %v11542_v34 = vld [vmem:[%s13539_s19 + $0xe0] sm:$0xff]  }
0x2528   : > { %v11538_v29 = vld [vmem:[%s13539_s19 + $0xf0] sm:$0xff]  }
0x2529   : > { %v11049_v49 = vpop.f32.mrf.mxu1 }
0x252a   : > { %v11541_v49 = vld [vmem:[%s13539_s19 + $0xc0] sm:$0xff]  }
0x252d   : > { %v7461_v9 = vpop.f32.mrf.mxu1 }
0x252e   : > { %v7472_v7 = vsel %vm1431_vm3, %v7461_v9, 0.0 }
0x252f   : > { %v7473_v17 = vadd.f32 %v7472_v7, %v7471_v36  ;;  %v11060_v40 = vpop.f32.mrf.mxu1 }
0x2531   : > { %v7480_v25 = vadd.f32 %v9721_v21, %v7473_v17  ;;  %v7464_v38 = vpop.f32.mrf.mxu1 }
0x2533   : > { %v11061_v5 = vpop.f32.mrf.mxu1  ;;  %v7481_v39 = vadd.f32 %v7480_v25, %v12986_v53  ;;  %v11513_v53 = vld [vmem:[%s13536_s13 + $0x90] sm:$0xff]  }
0x2534   : > { %11065 = vmatpush3.bf16.msra.mxu0 %v11513_v53 }
0x2535   : > { %v7482_v42 = vsel %vm1431_vm3, %v7481_v39, 0.0  ;;  %11066 = vmatprep.subr.bf16.mxu0 %v11789_v3 }
0x2536   : > { %7483 = vadd.xlane.f32.xlu0 %v7482_v42 }
0x2538   : > { %11067 = vmatpush3.bf16.msra.mxu0 %v11515_v60 }
0x2539   : > { %11068 = vmatprep.subr.bf16.mxu0 %v11789_v3 }
0x253c   : > { %11069 = vmatpush3.bf16.msra.mxu0 %v11517_v58 }
0x253d   : > { %11086 = vmatprep.subr.bf16.mxu0 %v11789_v3 }
0x25bf   : > { %v7484_v43 = vpop.xlane.xlu0 %7483 }
0x25c0   : > { %v7485_v20 = vmul.f32 0.015625, %v7484_v43 }
0x25c2   : > { %v7486_v44 = vsub.f32 %v7481_v39, %v7485_v20 }
0x25c4   : > { %v7487_v45 = vmul.f32 %v7486_v44, %v7486_v44 }
0x25c6   : > { %v7488_v11 = vsel %vm1431_vm3, %v7487_v45, 0.0 }
0x25c7   : > { %7489 = vadd.xlane.f32.xlu1 %v7488_v11  ;;  %v9818_v11 = vld [vmem:[%s13542_s21 + $0x4] ss:$0 sm:$0xff] }
0x2650   : > { %v7490_v48 = vpop.xlane.xlu1 %7489 }
0x2651   : > { %v7491_v50 = vmul.f32 0.015625, %v7490_v48 }
0x2653   : > { %v7492_v35 = vadd.f32 1e-05, %v7491_v50  ;;  %v9758_v50 = vld [vmem:[%s13543_s20 + $0x4] ss:$0 sm:$0xff] }
0x2655   : > { %11659 = vrsqrt.f32 %v7492_v35  ;;  %v9759_v35 = vld [vmem:[%s13543_s20 + $0x5] ss:$0 sm:$0xff] }
0x2662   : > { %v11660_v32 = vpop.eup %11659 }
0x2663   : > { %v7494_v37 = vmul.f32 %v11660_v32, %v7486_v44 }
0x2665   : > { %v7499_v54 = vmul.f32 %v7498_v47, %v7494_v37 }
0x2667   : > { %v13153_v56 = vadd.f32 %v7503_v13, %v7499_v54 }
0x2669   : > { %v7505_v1 = vpack.c.bf16 %v13153_v56, %v13153_v56 }
0x266b   : > { %11071 = vmatmul.mubr.msk.bf16.vlgmr.msra.gmra.mxu0 %vm1431_vm3, %v7505_v1  ;;  %11083 = vmatmul.mubr.msk.bf16.vlgmr.msra.gmra.mxu1 %vm1431_vm3, %v7505_v1 }
0x266c   : > { %11087 = vmatpush3.bf16.msra.mxu0 %v11519_v62  ;;  %11099 = vmatpush3.bf16.msra.mxu1 %v11520_v63 }
0x266d   : > { %11088 = vmatprep.subr.bf16.mxu0 %v11789_v3  ;;  %11100 = vmatprep.subr.bf16.mxu1 %v11789_v3 }
0x266e   : > { %11094 = vmatprep.mubr.msk.bf16.mxu0 %vm11790_vm0, %v11789_v3  ;;  %11106 = vmatprep.mubr.msk.bf16.mxu1 %vm11790_vm0, %v11789_v3 }
0x2670   : > { %11089 = vmatpush3.bf16.msra.mxu0 %v11521_v2  ;;  %11101 = vmatpush3.bf16.msra.mxu1 %v11522_v28 }
0x2671   : > { %11090 = vmatprep.subr.bf16.mxu0 %v11789_v3  ;;  %11102 = vmatprep.subr.bf16.mxu1 %v11789_v3 }
0x2674   : > { %11091 = vmatpush3.bf16.msra.mxu0 %v11523_v55  ;;  %11103 = vmatpush3.bf16.msra.mxu1 %v11524_v4  ;;  %v9820_v55 = vld [vmem:[%s13542_s21 + $0x6] ss:$0 sm:$0xff]  ;;  %v9821_v4 = vld [vmem:[%s13542_s21 + $0x7] ss:$0 sm:$0xff] }
0x2675   : > { %11092 = vmatprep.subr.bf16.mxu0 %v11789_v3  ;;  %11104 = vmatprep.subr.bf16.mxu1 %v11789_v3 }
0x2678   : > { %11093 = vmatpush3.bf16.msra.mxu0 %v11525_v6  ;;  %11105 = vmatpush3.bf16.msra.mxu1 %v11526_v8 }
0x2679   : > { %11110 = vmatprep.subr.bf16.mxu0 %v11789_v3  ;;  %11122 = vmatprep.subr.bf16.mxu1 %v11789_v3 }
0x267b   : > { %11095 = vmatmul.mubr.msk.bf16.vlgmr.msra.gmra.mxu0 %vm1431_vm3, %v7505_v1  ;;  %11107 = vmatmul.mubr.msk.bf16.vlgmr.msra.gmra.mxu1 %vm1431_vm3, %v7505_v1 }
0x267c   : > { %11111 = vmatpush3.bf16.msra.mxu0 %v11527_v12  ;;  %11123 = vmatpush3.bf16.msra.mxu1 %v11528_v14 }
0x267d   : > { %11112 = vmatprep.subr.bf16.mxu0 %v11789_v3  ;;  %11124 = vmatprep.subr.bf16.mxu1 %v11789_v3 }
0x267e   : > { %11118 = vmatprep.mubr.msk.bf16.mxu0 %vm11790_vm0, %v11789_v3  ;;  %11130 = vmatprep.mubr.msk.bf16.mxu1 %vm11790_vm0, %v11789_v3 }
0x2680   : > { %11113 = vmatpush3.bf16.msra.mxu0 %v11529_v0  ;;  %11125 = vmatpush3.bf16.msra.mxu1 %v11530_v16 }
0x2681   : > { %11114 = vmatprep.subr.bf16.mxu0 %v11789_v3  ;;  %11126 = vmatprep.subr.bf16.mxu1 %v11789_v3 }
0x2684   : > { %11115 = vmatpush3.bf16.msra.mxu0 %v11531_v18  ;;  %11127 = vmatpush3.bf16.msra.mxu1 %v11532_v19 }
0x2685   : > { %11116 = vmatprep.subr.bf16.mxu0 %v11789_v3  ;;  %11128 = vmatprep.subr.bf16.mxu1 %v11789_v3 }
0x2688   : > { %11117 = vmatpush3.bf16.msra.mxu0 %v11533_v15  ;;  %11129 = vmatpush3.bf16.msra.mxu1 %v11534_v30  ;;  %v9760_v15 = vld [vmem:[%s13543_s20 + $0x6] ss:$0 sm:$0xff]  ;;  %v9761_v30 = vld [vmem:[%s13543_s20 + $0x7] ss:$0 sm:$0xff] }
0x2689   : > { %11134 = vmatprep.subr.bf16.mxu0 %v11789_v3  ;;  %11146 = vmatprep.subr.bf16.mxu1 %v11789_v3 }
0x268b   : > { %11119 = vmatmul.mubr.msk.bf16.vlgmr.msra.gmra.mxu0 %vm1431_vm3, %v12787_v22  ;;  %11131 = vmatmul.mubr.msk.bf16.vlgmr.msra.gmra.mxu1 %vm1431_vm3, %v12787_v22 }
0x268c   : > { %11135 = vmatpush3.bf16.msra.mxu0 %v11535_v23  ;;  %11147 = vmatpush3.bf16.msra.mxu1 %v11536_v24 }
0x268d   : > { %11136 = vmatprep.subr.bf16.mxu0 %v11789_v3  ;;  %11148 = vmatprep.subr.bf16.mxu1 %v11789_v3 }
0x268e   : > { %11142 = vmatprep.mubr.msk.bf16.mxu0 %vm11790_vm0, %v11789_v3  ;;  %11154 = vmatprep.mubr.msk.bf16.mxu1 %vm11790_vm0, %v11789_v3 }
0x2690   : > { %11137 = vmatpush3.bf16.msra.mxu0 %v11537_v26  ;;  %11149 = vmatpush3.bf16.msra.mxu1 %v11538_v29 }
0x2691   : > { %11138 = vmatprep.subr.bf16.mxu0 %v11789_v3  ;;  %11150 = vmatprep.subr.bf16.mxu1 %v11789_v3 }
0x2694   : > { %11139 = vmatpush3.bf16.msra.mxu0 %v11539_v31  ;;  %11151 = vmatpush3.bf16.msra.mxu1 %v11540_v33 }
0x2695   : > { %11140 = vmatprep.subr.bf16.mxu0 %v11789_v3  ;;  %11152 = vmatprep.subr.bf16.mxu1 %v11789_v3 }
0x2698   : > { %11141 = vmatpush3.bf16.msra.mxu0 %v11541_v49  ;;  %11153 = vmatpush3.bf16.msra.mxu1 %v11542_v34 }
0x2699   : > { %11158 = vmatprep.subr.bf16.mxu0 %v11789_v3  ;;  %11164 = vmatprep.subr.bf16.mxu1 %v11789_v3 }
0x269b   : > { %11143 = vmatmul.mubr.msk.bf16.vlgmr.msra.gmra.mxu0 %vm1431_vm3, %v12787_v22  ;;  %11155 = vmatmul.mubr.msk.bf16.vlgmr.msra.gmra.mxu1 %vm1431_vm3, %v12787_v22 }
0x269c   : > { %11160 = vmatprep.mubr.msk.bf16.mxu0 %vm11790_vm0, %v11789_v3  ;;  %11166 = vmatprep.mubr.msk.bf16.mxu1 %vm11790_vm0, %v11789_v3 }
0x272b   : > { %v7629_v9 = vpop.f32.mrf.mxu0  ;;  %v7693_v36 = vpop.f32.mrf.mxu1 }
0x272c   : > { %v7630_v63 = vadd.f32 %v9758_v50, %v7629_v9  ;;  %v7694_v1 = vadd.f32 %v9759_v35, %v7693_v36 }
0x272d   : > { %v11072_v21 = vpop.f32.mrf.mxu0  ;;  %v11084_v7 = vpop.f32.mrf.mxu1 }
0x272e   : > { %v8156_v2 = vpack.c.bf16 %v7630_v63, %v7630_v63  ;;  %v8157_v28 = vpack.c.bf16 %v7694_v1, %v7694_v1 }
0x272f   : > { %v7632_v17 = vpop.f32.mrf.mxu0  ;;  %v7696_v40 = vpop.f32.mrf.mxu1 }
0x2730   : > { %v11685_v17 = vld [vmem:[%s12178_s15] ss:$0 sm:$0xff]  ;;  %s9918_s15 = sshll.u32 %s12025_s0, 7  ;;  %s11793_s0 = smov [#allocation2]  }
0x2731   : > { %v11073_v25 = vpop.f32.mrf.mxu0  ;;  %v11085_v38 = vpop.f32.mrf.mxu1  ;;  %s13392_s10 = scalar_lea.hbm %s12002_s3, %s9918_s15  ;;  %s11690_s2 = sshll.u32 %s11793_s0, 4  ;;  %s11691_s2 = int_to_ptr.vmem [resolvable:$false] %s11690_s2 }
0x2732   : > { %s11692_s15 = scalar_lea.vmem %s11691_s2, 256  ;;  %p11693_p0 = scmp.lt.s32.totalorder %s13394_s4, %s11691_s2 }
0x273b   : > { %v7757_v5 = vpop.f32.mrf.mxu0  ;;  %v7821_v39 = vpop.f32.mrf.mxu1 }
0x273c   : > { %v7758_v49 = vadd.f32 %v9760_v15, %v7757_v5  ;;  %v7822_v34 = vadd.f32 %v9761_v30, %v7821_v39 }
0x273d   : > { %v11096_v42 = vpop.f32.mrf.mxu0  ;;  %v11108_v22 = vpop.f32.mrf.mxu1 }
0x273e   : > { %v8158_v9 = vpack.c.bf16 %v7758_v49, %v7758_v49  ;;  %v8159_v36 = vpack.c.bf16 %v7822_v34, %v7822_v34 }
0x273f   : > { %v7760_v43 = vpop.f32.mrf.mxu0  ;;  %v7824_v20 = vpop.f32.mrf.mxu1 }
0x2741   : > { %v11097_v44 = vpop.f32.mrf.mxu0  ;;  %v11109_v45 = vpop.f32.mrf.mxu1 }
0x274b   : > { %v7947_v51 = vpop.f32.mrf.mxu0  ;;  %v8011_v53 = vpop.f32.mrf.mxu1 }
0x274c   : > { %v7948_v52 = vadd.f32 %v9818_v11, %v7947_v51  ;;  %v8012_v60 = vadd.f32 %v9819_v41, %v8011_v53 }
0x274d   : > { %v11120_v57 = vpop.f32.mrf.mxu0  ;;  %v11132_v58 = vpop.f32.mrf.mxu1 }
0x274e   : > { %v13235_v27 = vpack.c.bf16 %v7948_v52, %v7948_v52  ;;  %v13237_v48 = vpack.c.bf16 %v8012_v60, %v8012_v60 }
0x274f   : > { %v7950_v47 = vpop.f32.mrf.mxu0  ;;  %v8014_v32 = vpop.f32.mrf.mxu1 }
0x2750   : > { %v8168_v37 = vsel %vm1689_vm4, %v13235_v27, 0  ;;  %v8214_v13 = vsel %vm1689_vm4, %v13237_v48, 0 }
0x2751   : > { %v11121_v54 = vpop.f32.mrf.mxu0  ;;  %v11133_v62 = vpop.f32.mrf.mxu1  ;;  %11159 = vmatpush3.bf16.xpose.msra.mxu0 %v8168_v37  ;;  %11165 = vmatpush3.bf16.xpose.msra.mxu1 %v8214_v13 }
0x2752   : > { %11170 = vmatprep.subr.bf16.mxu0 %v11789_v3  ;;  %11176 = vmatprep.subr.bf16.mxu1 %v11789_v3 }
0x2758   : > { %11161 = vmatmul.mubr.msk.bf16.vlgmr.msra.gmra.mxu0 %vm1689_vm4, %v8156_v2  ;;  %11167 = vmatmul.mubr.msk.bf16.vlgmr.msra.gmra.mxu1 %vm1689_vm4, %v8157_v28 }
0x2759   : > { %11172 = vmatprep.mubr.msk.bf16.mxu0 %vm11790_vm0, %v11789_v3  ;;  %11178 = vmatprep.mubr.msk.bf16.mxu1 %vm11790_vm0, %v11789_v3 }
0x275b   : > { %v8075_v6 = vpop.f32.mrf.mxu0  ;;  %v8139_v8 = vpop.f32.mrf.mxu1 }
0x275c   : > { %v8076_v12 = vadd.f32 %v9820_v55, %v8075_v6  ;;  %v8140_v14 = vadd.f32 %v9821_v4, %v8139_v8 }
0x275d   : > { %v11144_v0 = vpop.f32.mrf.mxu0  ;;  %v11156_v16 = vpop.f32.mrf.mxu1 }
0x275e   : > { %v13255_v18 = vpack.c.bf16 %v8076_v12, %v8076_v12  ;;  %v13257_v19 = vpack.c.bf16 %v8140_v14, %v8140_v14 }
0x275f   : > { %v8078_v23 = vpop.f32.mrf.mxu0  ;;  %v8142_v24 = vpop.f32.mrf.mxu1 }
0x2760   : > { %v8260_v26 = vsel %vm1689_vm4, %v13255_v18, 0  ;;  %v8306_v29 = vsel %vm1689_vm4, %v13257_v19, 0 }
0x2761   : > { %v11145_v31 = vpop.f32.mrf.mxu0  ;;  %v11157_v33 = vpop.f32.mrf.mxu1  ;;  %11171 = vmatpush3.bf16.xpose.msra.mxu0 %v8260_v26  ;;  %11177 = vmatpush3.bf16.xpose.msra.mxu1 %v8306_v29 }
0x2762   : > { %11182 = vmatprep.subr.bf16.mxu0 %v11789_v3  ;;  %11188 = vmatprep.subr.bf16.mxu1 %v11789_v3 }
0x2768   : > { %11173 = vmatmul.mubr.msk.bf16.vlgmr.msra.gmra.mxu0 %vm1689_vm4, %v8158_v9  ;;  %11179 = vmatmul.mubr.msk.bf16.vlgmr.msra.gmra.mxu1 %vm1689_vm4, %v8159_v36 }
0x2769   : > { %11184 = vmatprep.mubr.msk.bf16.mxu0 %vm11790_vm0, %v11789_v3  ;;  %11190 = vmatprep.mubr.msk.bf16.mxu1 %vm11790_vm0, %v11789_v3 }
0x2818   : > { %v8204_v21 = vpop.f32.mrf.mxu0  ;;  %v8250_v7 = vpop.f32.mrf.mxu1 }
0x2819   : > { %v8205_v40 = vadd.f32 %v11685_v17, %v8204_v21  ;;  %v8251_v5 = vadd.f32 %v11685_v17, %v8250_v7 }
0x281a   : > { %v11162_v25 = vpop.f32.mrf.mxu0  ;;  %v11168_v38 = vpop.f32.mrf.mxu1 }
0x281b   : > { %v8348_v39 = vsel %vm1883_vm5, %v8205_v40, -inf  ;;  %v8351_v44 = vsel %vm1883_vm5, %v8251_v5, -inf }
0x281c   : > { %v8253_v42 = vpop.f32.mrf.mxu1  ;;  %8349 = vmax.xlane.f32.xlu0 %v8348_v39  ;;  %v8207_v22 = vpop.f32.mrf.mxu0 }
0x281e   : > { %v11163_v43 = vpop.f32.mrf.mxu0  ;;  %v11169_v20 = vpop.f32.mrf.mxu1 }
0x281f   : > { %v11543_v20 = vld [vmem:[%s13544_s24 + $0x20] sm:$0xff]  }
0x2820   : > { %8352 = vmax.xlane.f32.xlu0 %v8351_v44  ;;  %v11544_v44 = vld [vmem:[%s13544_s24 + $0x28] sm:$0xff]  }
0x2828   : > { %v8296_v45 = vpop.f32.mrf.mxu0  ;;  %v8342_v11 = vpop.f32.mrf.mxu1 }
0x2829   : > { %v8297_v41 = vadd.f32 %v11685_v17, %v8296_v45  ;;  %v8343_v51 = vadd.f32 %v11685_v17, %v8342_v11  ;;  %v11545_v11 = vld [vmem:[%s13544_s24 + $0x30] sm:$0xff]  }
0x282a   : > { %v11174_v53 = vpop.f32.mrf.mxu0  ;;  %v11180_v52 = vpop.f32.mrf.mxu1 }
0x282b   : > { %v8357_v60 = vsel %vm1883_vm5, %v8343_v51, -inf  ;;  %v8354_v57 = vsel %vm1883_vm5, %v8297_v41, -inf }
0x282c   : > { %v8345_v58 = vpop.f32.mrf.mxu1  ;;  %8358 = vmax.xlane.f32.xlu0 %v8357_v60  ;;  %8355 = vmax.xlane.f32.xlu1 %v8354_v57  ;;  %v8299_v50 = vpop.f32.mrf.mxu0  ;;  %v11546_v57 = vld [vmem:[%s13544_s24 + $0x38] sm:$0xff]  }
0x282e   : > { %v11175_v35 = vpop.f32.mrf.mxu0  ;;  %v11181_v47 = vpop.f32.mrf.mxu1 }
0x283d   : > { %8397 = vrot.lane.b32.xlu1 %v13235_v27, %s13531_s5 }
0x28a5   : > { %v8350_v32 = vpop.xlane.xlu0 %8349 }
0x28a6   : > { %v8360_v37 = vsub.f32 %v8205_v40, %v8350_v32 }
0x28a8   : > { %v8364_v13 = vmul.f32 1.442695, %v8360_v37 }
0x28a9   : > { %v8353_v54 = vpop.xlane.xlu0 %8352 }
0x28aa   : > { %11661 = vpow2.f32 %v8364_v13  ;;  %v8361_v62 = vsub.f32 %v8251_v5, %v8353_v54 }
0x28ac   : > { %v8366_v63 = vmul.f32 1.442695, %v8361_v62 }
0x28ae   : > { %11663 = vpow2.f32 %v8366_v63 }
0x28b5   : > { %v8359_v1 = vpop.xlane.xlu0 %8358  ;;  %v8356_v2 = vpop.xlane.xlu1 %8355 }
0x28b6   : > { %v8363_v28 = vsub.f32 %v8343_v51, %v8359_v1  ;;  %v8362_v55 = vsub.f32 %v8297_v41, %v8356_v2 }
0x28b7   : > { %v11662_v4 = vpop.eup %11661 }
0x28b8   : > { %v8370_v6 = vmul.f32 1.442695, %v8363_v28  ;;  %v8368_v8 = vmul.f32 1.442695, %v8362_v55  ;;  %v8372_v12 = vsel %vm1883_vm5, %v11662_v4, 0.0 }
0x28b9   : > { %8373 = vadd.xlane.f32.xlu1 %v8372_v12  ;;  %v8398_v14 = vpop.permute.xlu1 %8397 }
0x28ba   : > { %11665 = vpow2.f32 %v8370_v6  ;;  %v8403_v27 = vsel %vm1937_vm6, %v8398_v14, 0 }
0x28bb   : > { %v11664_v0 = vpop.eup %11663  ;;  %11667 = vpow2.f32 %v8368_v8  ;;  %11183 = vmatpush3.bf16.msra.mxu0 %v8403_v27 }
0x28bc   : > { %v8375_v16 = vsel %vm1883_vm5, %v11664_v0, 0.0  ;;  %11194 = vmatprep.subr.bf16.mxu0 %v11789_v3 }
0x28bd   : > { %8376 = vadd.xlane.f32.xlu0 %v8375_v16 }
0x28c7   : > { %v11666_v15 = vpop.eup %11665 }
0x28c8   : > { %v11668_v30 = vpop.eup %11667  ;;  %v8381_v23 = vsel %vm1883_vm5, %v11666_v15, 0.0 }
0x28c9   : > { %8382 = vadd.xlane.f32.xlu0 %v8381_v23  ;;  %v8378_v24 = vsel %vm1883_vm5, %v11668_v30, 0.0 }
0x28ca   : > { %8379 = vadd.xlane.f32.xlu1 %v8378_v24 }
0x28db   : > { %8495 = vrot.lane.b32.xlu1 %v13255_v18, %s13531_s5 }
0x28df   : > { %8544 = vrot.lane.b32.xlu1 %v13257_v19, %s13531_s5  ;;  %8446 = vrot.lane.b32.xlu0 %v13237_v48, %s13531_s5  ;;  %s13551_s5 = sld [smem:[#allocation41_spill]] }
0x2942   : > { %v8374_v26 = vpop.xlane.xlu1 %8373 }
0x2943   : > { %11669 = vrcp.f32 %v8374_v26 }
0x2946   : > { %v8377_v29 = vpop.xlane.xlu0 %8376 }
0x2947   : > { %11671 = vrcp.f32 %v8377_v29 }
0x2950   : > { %v11670_v31 = vpop.eup %11669 }
0x2951   : > { %v8385_v33 = vmul.f32 %v11670_v31, %v11662_v4 }
0x2952   : > { %v8383_v49 = vpop.xlane.xlu0 %8382 }
0x2953   : > { %v8392_v34 = vpack.c.bf16 %v8385_v33, %v8385_v33  ;;  %11673 = vrcp.f32 %v8383_v49  ;;  %v8380_v9 = vpop.xlane.xlu1 %8379 }
0x2954   : > { %v11672_v36 = vpop.eup %11671  ;;  %11675 = vrcp.f32 %v8380_v9 }
0x2955   : > { %v8387_v21 = vmul.f32 %v11672_v36, %v11664_v0  ;;  %11185 = vmatmul.mubr.msk.bf16.vlgmr.msra.gmra.mxu0 %vm1883_vm5, %v8392_v34  ;;  %v9867_v34 = vld [vmem:[%s13545_s27 + $0x1] ss:$0 sm:$0xff] }
0x2956   : > { %v8447_v18 = vpop.permute.xlu0 %8446  ;;  %11196 = vmatprep.mubr.msk.bf16.mxu0 %vm11790_vm0, %v11789_v3 }
0x2957   : > { %v8452_v48 = vsel %vm1937_vm6, %v8447_v18, 0  ;;  %v8496_v19 = vpop.permute.xlu1 %8495  ;;  %v8393_v17 = vpack.c.bf16 %v8387_v21, %v8387_v21 }
0x2958   : > { %v8501_v7 = vsel %vm1937_vm6, %v8496_v19, 0  ;;  %11189 = vmatpush3.bf16.msra.mxu1 %v8452_v48 }
0x2959   : > { %11195 = vmatpush3.bf16.msra.mxu0 %v8501_v7  ;;  %11200 = vmatprep.subr.bf16.mxu1 %v11789_v3 }
0x295a   : > { %11206 = vmatprep.subr.bf16.mxu0 %v11789_v3 }
0x295b   : > { %v8545_v40 = vpop.permute.xlu1 %8544  ;;  %11191 = vmatmul.mubr.msk.bf16.vlgmr.msra.gmra.mxu1 %vm1883_vm5, %v8393_v17 }
0x295c   : > { %v8550_v25 = vsel %vm1937_vm6, %v8545_v40, 0  ;;  %11202 = vmatprep.mubr.msk.bf16.mxu1 %vm11790_vm0, %v11789_v3 }
0x295d   : > { %11201 = vmatpush3.bf16.msra.mxu1 %v8550_v25 }
0x295e   : > { %11212 = vmatprep.subr.bf16.mxu1 %v11789_v3 }
0x2960   : > { %v11674_v38 = vpop.eup %11673 }
0x2961   : > { %v11676_v5 = vpop.eup %11675  ;;  %v8391_v39 = vmul.f32 %v11674_v38, %v11666_v15 }
0x2962   : > { %v8389_v42 = vmul.f32 %v11676_v5, %v11668_v30 }
0x2963   : > { %v8395_v22 = vpack.c.bf16 %v8391_v39, %v8391_v39 }
0x2964   : > { %v8394_v43 = vpack.c.bf16 %v8389_v42, %v8389_v42 }
0x2965   : > { %11203 = vmatmul.mubr.msk.bf16.vlgmr.msra.gmra.mxu1 %vm1883_vm5, %v8395_v22  ;;  %v11547_v22 = vld [vmem:[%s13546_s29 + $0x38] sm:$0xff]  }
0x2966   : > { %11197 = vmatmul.mubr.msk.bf16.vlgmr.msra.gmra.mxu0 %vm1883_vm5, %v8394_v43  ;;  %11214 = vmatprep.mubr.msk.bf16.mxu1 %vm11790_vm0, %v11789_v3  ;;  %v11548_v43 = vld [vmem:[%s13546_s29 + $0x30] sm:$0xff]  }
0x2967   : > { %11208 = vmatprep.mubr.msk.bf16.mxu0 %vm11790_vm0, %v11789_v3  ;;  %11207 = vmatpush3.bf16.msra.mxu0 %v11543_v20  ;;  %v11550_v20 = vld [vmem:[%s13546_s29 + $0x20] sm:$0xff]  }
0x2968   : > { %11218 = vmatprep.subr.bf16.mxu0 %v11789_v3  ;;  %11213 = vmatpush3.bf16.msra.mxu1 %v11544_v44  ;;  %v11551_v44 = vld [vmem:[%s13547_s30 + $0x78] sm:$0xff]  }
0x2969   : > { %11224 = vmatprep.subr.bf16.mxu1 %v11789_v3 }
0x2a15   : > { %v8439_v45 = vpop.f32.mrf.mxu0 }
0x2a16   : > { %v8592_v41 = vpack.c.bf16 %v8439_v45, %v8439_v45  ;;  %v11552_v45 = vld [vmem:[%s13547_s30 + $0x70] sm:$0xff]  }
0x2a17   : > { %v11186_v51 = vpop.f32.mrf.mxu0 }
0x2a18   : > { %11209 = vmatmul.mubr.msk.bf16.vlgmr.msra.gmra.mxu0 %vm1689_vm4, %v8592_v41  ;;  %v11554_v41 = vld [vmem:[%s13547_s30 + $0x60] sm:$0xff]   ;;  %v11555_v51 = vld [vmem:[%s13547_s30 + $0x58] sm:$0xff]  }
0x2a19   : > { %v8442_v53 = vpop.f32.mrf.mxu0  ;;  %11219 = vmatpush3.bf16.msra.mxu0 %v11545_v11  ;;  %11220 = vmatprep.mubr.msk.bf16.mxu0 %vm11790_vm0, %v11789_v3  ;;  %v11553_v11 = vld [vmem:[%s13547_s30 + $0x68] sm:$0xff]  }
0x2a1a   : > { %11230 = vmatprep.subr.bf16.mxu0 %v11789_v3  ;;  %v11556_v53 = vld [vmem:[%s13547_s30 + $0x50] sm:$0xff]  }
0x2a1b   : > { %v11187_v52 = vpop.f32.mrf.mxu0  ;;  %v8488_v60 = vpop.f32.mrf.mxu1 }
0x2a1c   : > { %v8593_v58 = vpack.c.bf16 %v8488_v60, %v8488_v60 }
0x2a1d   : > { %v11192_v50 = vpop.f32.mrf.mxu1 }
0x2a1e   : > { %11215 = vmatmul.mubr.msk.bf16.vlgmr.msra.gmra.mxu1 %vm1689_vm4, %v8593_v58  ;;  %v8823_v58 = vrot.slane %v13144_v59, %v12317_v10 }
0x2a1f   : > { %v8491_v35 = vpop.f32.mrf.mxu1  ;;  %11225 = vmatpush3.bf16.msra.mxu1 %v11546_v57  ;;  %11226 = vmatprep.mubr.msk.bf16.mxu1 %vm11790_vm0, %v11789_v3 }
0x2a20   : > { %11242 = vmatprep.subr.bf16.mxu1 %v11789_v3 }
0x2a21   : > { %v11193_v47 = vpop.f32.mrf.mxu1 }
0x2a22   : > { %v8828_v47 = vrot.slane %v13147_v61, %v12317_v10 }
0x2a25   : > { %v8586_v32 = vpop.f32.mrf.mxu1 }
0x2a26   : > { %v8537_v37 = vpop.f32.mrf.mxu0  ;;  %v8595_v13 = vpack.c.bf16 %v8586_v32, %v8586_v32 }
0x2a27   : > { %v8594_v54 = vpack.c.bf16 %v8537_v37, %v8537_v37  ;;  %v11204_v62 = vpop.f32.mrf.mxu1 }
0x2a28   : > { %v11198_v63 = vpop.f32.mrf.mxu0  ;;  %11227 = vmatmul.mubr.msk.bf16.vlgmr.msra.gmra.mxu1 %vm1689_vm4, %v8595_v13  ;;  %v11558_v62 = vld [vmem:[%s13547_s30 + $0x40] sm:$0xff]  }
0x2a29   : > { %11221 = vmatmul.mubr.msk.bf16.vlgmr.msra.gmra.mxu0 %vm1689_vm4, %v8594_v54  ;;  %v8589_v1 = vpop.f32.mrf.mxu1  ;;  %11258 = vmatprep.mubr.msk.bf16.mxu1 %vm11790_vm0, %v11789_v3  ;;  %v11557_v54 = vld [vmem:[%s13547_s30 + $0x48] sm:$0xff]   ;;  %v9877_v63 = vld [vmem:[%s13548_s18 + $0x1] ss:$0 sm:$0xff] }
0x2a2a   : > { %v8540_v2 = vpop.f32.mrf.mxu0  ;;  %11238 = vmatprep.mubr.msk.bf16.mxu0 %vm11790_vm0, %v11789_v3  ;;  %11231 = vmatpush3.bf16.msra.mxu0 %v11547_v22 }
0x2a2b   : > { %v11205_v28 = vpop.f32.mrf.mxu1  ;;  %11232 = vmatprep.subr.bf16.mxu0 %v11789_v3  ;;  %11243 = vmatpush3.bf16.msra.mxu1 %v11551_v44 }
0x2a2c   : > { %v11199_v55 = vpop.f32.mrf.mxu0  ;;  %11244 = vmatprep.subr.bf16.mxu1 %v11789_v3 }
0x2a2e   : > { %11233 = vmatpush3.bf16.msra.mxu0 %v11548_v43 }
0x2a2f   : > { %11234 = vmatprep.subr.bf16.mxu0 %v11789_v3  ;;  %11245 = vmatpush3.bf16.msra.mxu1 %v11552_v45  ;;  %v9910_v45 = vld [vmem:[%s13552_s9] ss:$0 sm:$0xff]  ;;  %s11686_s9 = scalar_lea.vmem %s13394_s4, 128 }
0x2a30   : > { %11246 = vmatprep.subr.bf16.mxu1 %v11789_v3  ;;  %p11687_p11 = scmp.ne.s32.totalorder %s13394_s4, %s11686_s9  ;;  %p11694_p1 = scmp.lt.s32.totalorder %s11692_s15, %s11686_s9 }
0x2a32   : > { %p11688_p12 = pnand %p11687_p11, %p12042_p5  ;;  %p11695_p2 = por %p11694_p1, %p11693_p0 }
0x2a33   : > { %11247 = vmatpush3.bf16.msra.mxu1 %v11553_v11 }
0x2a34   : > { %11248 = vmatprep.subr.bf16.mxu1 %v11789_v3  ;;  %p11689_p13 = pneg %p11688_p12 }
0x2a36   : > { %p11696_p3 = pnand %p11695_p2, %p11689_p13 }
0x2a37   : > { %11249 = vmatpush3.bf16.msra.mxu1 %v11554_v41 }
0x2a38   : > { %11250 = vmatprep.subr.bf16.mxu1 %v11789_v3 }
0x2a3b   : > { %11251 = vmatpush3.bf16.msra.mxu1 %v11555_v51 }
0x2a3c   : > { %11252 = vmatprep.subr.bf16.mxu1 %v11789_v3 }
0x2a3f   : > { %11253 = vmatpush3.bf16.msra.mxu1 %v11556_v53 }
0x2a40   : > { %11254 = vmatprep.subr.bf16.mxu1 %v11789_v3 }
0x2a43   : > { %11255 = vmatpush3.bf16.msra.mxu1 %v11557_v54 }
0x2a44   : > { %11256 = vmatprep.subr.bf16.mxu1 %v11789_v3 }
0x2a47   : > { %11257 = vmatpush3.bf16.msra.mxu1 %v11558_v62 }
0x2ad8   : > { %v8639_v4 = vpop.f32.mrf.mxu0 }
0x2ad9   : > { %v8792_v30 = vsel %vm1431_vm3, %v8639_v4, 0.0 }
0x2ada   : > { %v11210_v6 = vpop.f32.mrf.mxu0 }
0x2adc   : > { %v8642_v8 = vpop.f32.mrf.mxu0 }
0x2add   : > { %v9900_v8 = vld [vmem:[%s13550_s11 + $0x1] ss:$0 sm:$0xff] }
0x2ade   : > { %v11211_v12 = vpop.f32.mrf.mxu0  ;;  %v8688_v14 = vpop.f32.mrf.mxu1 }
0x2adf   : > { %v8793_v15 = vsel %vm1431_vm3, %v8688_v14, 0.0 }
0x2ae0   : > { %v11216_v27 = vpop.f32.mrf.mxu1  ;;  %v8794_v24 = vadd.f32 %v8793_v15, %v8792_v30 }
0x2ae2   : > { %v8691_v0 = vpop.f32.mrf.mxu1 }
0x2ae4   : > { %v11217_v16 = vpop.f32.mrf.mxu1 }
0x2ae8   : > { %v8786_v23 = vpop.f32.mrf.mxu1 }
0x2ae9   : > { %v8737_v26 = vpop.f32.mrf.mxu0  ;;  %v8797_v9 = vsel %vm1431_vm3, %v8786_v23, 0.0 }
0x2aea   : > { %v8795_v29 = vsel %vm1431_vm3, %v8737_v26, 0.0  ;;  %v11228_v31 = vpop.f32.mrf.mxu1 }
0x2aeb   : > { %v8796_v33 = vadd.f32 %v8795_v29, %v8794_v24  ;;  %v11222_v49 = vpop.f32.mrf.mxu0 }
0x2aec   : > { %v8789_v36 = vpop.f32.mrf.mxu1 }
0x2aed   : > { %v8798_v21 = vadd.f32 %v8797_v9, %v8796_v33  ;;  %v8740_v18 = vpop.f32.mrf.mxu0  ;;  %v9047_v9 = vrot.slane %v13144_v59, %v12980_v46  ;;  %v11559_v59 = vld [vmem:[%s11992_s17 + $0x18] sm:$0xff]  }
0x2aee   : > { %v11229_v48 = vpop.f32.mrf.mxu1  ;;  %v9052_v18 = vrot.slane %v13147_v61, %v12980_v46  ;;  %v11560_v46 = vld [vmem:[%s11992_s17 + $0x10] sm:$0xff]   ;;  %v11561_v61 = vld [vmem:[%s11992_s17 + $0x8] sm:$0xff]  }
0x2aef   : > { %v8805_v19 = vadd.f32 %v9867_v34, %v8798_v21  ;;  %v11223_v7 = vpop.f32.mrf.mxu0 }
0x2af1   : > { %v8806_v17 = vadd.f32 %v8805_v19, %v13153_v56  ;;  %v11549_v56 = vld [vmem:[%s13546_s29 + $0x28] sm:$0xff]  }
0x2af2   : > { %11235 = vmatpush3.bf16.msra.mxu0 %v11549_v56 }
0x2af3   : > { %v8807_v40 = vsel %vm1431_vm3, %v8806_v17, 0.0  ;;  %11236 = vmatprep.subr.bf16.mxu0 %v11789_v3 }
0x2af4   : > { %8808 = vadd.xlane.f32.xlu0 %v8807_v40 }
0x2af6   : > { %11237 = vmatpush3.bf16.msra.mxu0 %v11550_v20  ;;  %v9909_v20 = vld [vmem:[%s13551_s5] ss:$0 sm:$0xff]  ;;  %s9168_s5 = scalar_lea.sflag [#allocation3], %s1236_s8 }
0x2af7   : > { %11262 = vmatprep.subr.bf16.mxu0 %v11789_v3 }
0x2b7d   : > { %v8809_v25 = vpop.xlane.xlu0 %8808 }
0x2b7e   : > { %v8810_v38 = vmul.f32 0.015625, %v8809_v25 }
0x2b80   : > { %v8811_v5 = vsub.f32 %v8806_v17, %v8810_v38 }
0x2b82   : > { %v8812_v39 = vmul.f32 %v8811_v5, %v8811_v5 }
0x2b84   : > { %v8813_v42 = vsel %vm1431_vm3, %v8812_v39, 0.0  ;;  %v11562_v39 = vld [vmem:[%s11992_s17] sm:$0xff]  }
0x2b85   : > { %8814 = vadd.xlane.f32.xlu1 %v8813_v42 }
0x2c0e   : > { %v8815_v52 = vpop.xlane.xlu1 %8814 }
0x2c0f   : > { %v8816_v60 = vmul.f32 0.015625, %v8815_v52 }
0x2c11   : > { %v8817_v57 = vadd.f32 1e-05, %v8816_v60 }
0x2c13   : > { %11677 = vrsqrt.f32 %v8817_v57 }
0x2c20   : > { %v11678_v50 = vpop.eup %11677 }
0x2c21   : > { %v8819_v35 = vmul.f32 %v11678_v50, %v8811_v5 }
0x2c23   : > { %v8824_v32 = vmul.f32 %v8823_v58, %v8819_v35 }
0x2c25   : > { %v8829_v37 = vadd.f32 %v8828_v47, %v8824_v32 }
0x2c27   : > { %v8830_v13 = vpack.c.bf16 %v8829_v37, %v8829_v37 }
0x2c29   : > { %11239 = vmatmul.mubr.msk.bf16.vlgmr.msra.gmra.mxu0 %vm1431_vm3, %v8830_v13 }
0x2c2a   : > { %11270 = vmatprep.mubr.msk.bf16.mxu0 %vm11790_vm0, %v11789_v3  ;;  %11263 = vmatpush3.bf16.msra.mxu0 %v11559_v59 }
0x2c2b   : > { %11264 = vmatprep.subr.bf16.mxu0 %v11789_v3 }
0x2c2e   : > { %11265 = vmatpush3.bf16.msra.mxu0 %v11560_v46 }
0x2c2f   : > { %11266 = vmatprep.subr.bf16.mxu0 %v11789_v3 }
0x2c32   : > { %11267 = vmatpush3.bf16.msra.mxu0 %v11561_v61 }
0x2c33   : > { %11268 = vmatprep.subr.bf16.mxu0 %v11789_v3  ;;  %v9911_v3 = vld [vmem:[%s11997_s25] ss:$0 sm:$0xff] }
0x2c36   : > { %11269 = vmatpush3.bf16.msra.mxu0 %v11562_v39 }
0x2ce9   : > { %v8909_v1 = vpop.f32.mrf.mxu0 }
0x2cea   : > { %v8910_v2 = vadd.f32 %v9877_v63, %v8909_v1 }
0x2ceb   : > { %v11240_v28 = vpop.f32.mrf.mxu0 }
0x2cec   : > { %v8915_v10 = vmax.f32 %v8910_v2, 0.0 }
0x2ced   : > { %v8912_v55 = vpop.f32.mrf.mxu0 }
0x2cee   : > { %v8916_v4 = vpack.c.bf16 %v8915_v10, %v8915_v10 }
0x2cef   : > { %v11241_v6 = vpop.f32.mrf.mxu0 }
0x2cf0   : > { %11259 = vmatmul.mubr.bf16.vlgmr.msra.gmra.mxu1 %v8916_v4 }
0x2db0   : > { %v9024_v12 = vpop.f32.mrf.mxu1 }
0x2db1   : > { %v9025_v14 = vadd.f32 %v9900_v8, %v9024_v12 }
0x2db2   : > { %v11260_v27 = vpop.f32.mrf.mxu1 }
0x2db3   : > { %v9030_v0 = vadd.f32 %v9025_v14, %v8829_v37 }
0x2db4   : > { %v9027_v16 = vpop.f32.mrf.mxu1 }
0x2db5   : > { %v9031_v15 = vsel %vm1431_vm3, %v9030_v0, 0.0 }
0x2db6   : > { %9032 = vadd.xlane.f32.xlu0 %v9031_v15  ;;  %v11261_v30 = vpop.f32.mrf.mxu1 }
0x2e3f   : > { %v9033_v23 = vpop.xlane.xlu0 %9032 }
0x2e40   : > { %v9034_v24 = vmul.f32 0.015625, %v9033_v23 }
0x2e42   : > { %v9035_v26 = vsub.f32 %v9030_v0, %v9034_v24 }
0x2e44   : > { %v9036_v29 = vmul.f32 %v9035_v26, %v9035_v26 }
0x2e46   : > { %v9037_v31 = vsel %vm1431_vm3, %v9036_v29, 0.0 }
0x2e47   : > { %9038 = vadd.xlane.f32.xlu0 %v9037_v31 }
0x2ed0   : > { %v9039_v33 = vpop.xlane.xlu0 %9038 }
0x2ed1   : > { %v9040_v49 = vmul.f32 0.015625, %v9039_v33 }
0x2ed3   : > { %v9041_v34 = vadd.f32 1e-05, %v9040_v49 }
0x2ed5   : > { %11679 = vrsqrt.f32 %v9041_v34 }
0x2ee2   : > { %v11680_v36 = vpop.eup %11679 }
0x2ee3   : > { %v9043_v21 = vmul.f32 %v11680_v36, %v9035_v26 }
0x2ee5   : > { %v9048_v48 = vmul.f32 %v9047_v9, %v9043_v21 }
0x2ee7   : > { %v9053_v19 = vadd.f32 %v9052_v18, %v9048_v48 }
0x2ee9   : > { %v9056_v7 = vsel %vm1431_vm3, %v9053_v19, 0.0 }
0x2eea   : > { %9057 = vadd.xlane.f32.xlu1 %v9056_v7 }
0x2f73   : > { %v9058_v17 = vpop.xlane.xlu1 %9057 }
0x2f74   : > { %v9059_v40 = vmul.f32 0.015625, %v9058_v17 }
0x2f76   : > { %v9060_v25 = vsub.f32 %v9053_v19, %v9059_v40 }
0x2f78   : > { %v9061_v38 = vmul.f32 %v9060_v25, %v9060_v25 }
0x2f7a   : > { %v9062_v5 = vsel %vm1431_vm3, %v9061_v38, 0.0 }
0x2f7b   : > { %9063 = vadd.xlane.f32.xlu0 %v9062_v5 }
0x3004   : > { %v9064_v42 = vpop.xlane.xlu0 %9063 }
0x3005   : > { %v9065_v22 = vmul.f32 0.015625, %v9064_v42 }
0x3007   : > { %v9066_v43 = vadd.f32 1e-05, %v9065_v22 }
0x3009   : > { %11681 = vrsqrt.f32 %v9066_v43 }
0x3016   : > { %v11682_v56 = vpop.eup %11681 }
0x3017   : > { %v9068_v44 = vmul.f32 %v11682_v56, %v9060_v25 }
0x3019   : > { %v9075_v11 = vmul.f32 %v9909_v20, %v9068_v44 }
0x301b   : > { %v9082_v41 = vadd.f32 %v9910_v45, %v9075_v11 }
0x301d   : > { %v9083_v51 = vpack.c.bf16 %v9082_v41, %v9082_v41 }
0x301f   : > { %11271 = vmatmul.mubr.msk.bf16.vlgmr.msra.gmra.mxu0 %vm1431_vm3, %v9083_v51 }
0x30df   : > { %v9160_v53 = vpop.f32.mrf.mxu0 }
0x30e0   : > { %v9161_v52 = vadd.f32 %v9911_v3, %v9160_v53 }
0x30e1   : > { %v11272_v60 = vpop.f32.mrf.mxu0 }
0x30e2   : > { %9166 = vst.msk [vmem:[%s1238_s6] sm:$0xff] %vm1270_vm1, %v9161_v52 }
0x30e3   : > { %v9163_v57 = vpop.f32.mrf.mxu0 }
0x30e4   : > { %11699 = shalt.err (!%p11696_p3)
}
0x30e5   : > { %s11700_s8 = scalar_lea.hbm %s13392_s10, 128  ;;  %s11704_s6 = scalar_lea.hbm %s12002_s3, 256 }
0x30e6   : > { %p11701_p4 = scmp.ne.s32.totalorder %s13392_s10, %s11700_s8  ;;  %p11705_p9 = scmp.lt.s32.totalorder %s13392_s10, %s12002_s3 }
0x30e7   : > { %p11706_p10 = scmp.lt.s32.totalorder %s11704_s6, %s11700_s8 }
0x30e8   : > { %p11702_p7 = pnand %p11701_p4, %p12042_p5 }
0x30e9   : > { %p11707_p11 = por %p11706_p10, %p11705_p9 }
0x30ea   : > { %p11703_p8 = pneg %p11702_p7 }
0x30ec   : > { %p11708_p12 = pnand %p11707_p11, %p11703_p8 }
0x30ee   : > { %11711 = shalt.err (!%p11708_p12)
}
0x30ef   : > { %11274 = dma.vmem_to_hbm [thread:$0]  (%p12042_p5), %s13394_s4, 128, %s13392_s10, %s9168_s5   ;;  %v11273_v58 = vpop.f32.mrf.mxu0 }
0x30f0 PF: > { %p11280_p13 = scmp.ge.s32.totalorder %s11746_s7, 2  ;;  %s9193_s9 = sand.u32 1, %s11734_s28  }
0x30f1   : > { %s9194_s0 = scalar_lea.sflag [#allocation3], %s9193_s9 }
0x30f2   : > { %p11277_p0 = pnand %p11280_p13, %p12046_p6 }
0x30f4   : > { %p11278_p1 = pneg %p11277_p0 }
0x30f6   : > { %11729 = dma.done.wait (%p11278_p1), %s9194_s0, 128  }
0x30f7   : > { %11731 = vsyncadd (%p11278_p1), %s9194_s0, 4294967168  ;;  %s13553_s7 = sld [smem:[#allocation44_spill]]  ;;  %s13556_s28 = smov %s11738_s1 }
0x30f8   : > { %s13554_s2 = sld [smem:[#allocation43_spill]] }
0x30f9   : > { %s13555_s22 = sld [smem:[#allocation45_spill]] }
0x30fd   : > { %p91_p2 = scmp.ge.s32.totalorder %s13553_s7, 4  }
0x30fe   : > { %s13557_s1 = smov %s13554_s2 }
0x30ff   : > { %s13558_s2 = smov %s13555_s22  ;;  %93 = sbr.rel (!%p91_p2) target bundleno = 93 (0x5d), region = 290 }
0x3104   :  { %9199 = vsyncpa [#allocation3], 1 }
0x3105   :  { %9201 = vsyncpa [#allocation3 + $0x1], 1 }

</bundles_post_ra>
